<compile_context>
chip_gen: v5e
topology: v5e:2x2
jax: 0.10.0
libtpu: 0.0.40
codegen_flags: <defaults>
</compile_context>

<pallas_src>
import functools

import jax
import jax.numpy as jnp
from jax.experimental import pallas as pl
from jax.experimental.pallas import tpu as pltpu


def _round_up(x, m):
    return (x + m - 1) // m * m


# ---------------------------------------------------------------------------
# Kernel
# ---------------------------------------------------------------------------
def decoder_kernel(x_ref, w1_ref, b1_ref, w2_ref, b2_ref, w3_ref, b3_ref, o_ref):
    d_out = o_ref.shape[-1]  # true (unpadded) output width, static (784)

    # Layer 1: (tm,160) @ (160,512) + ReLU.  bf16 operands, f32 MXU accumulation.
    x = x_ref[...].astype(jnp.bfloat16)
    h1 = jnp.dot(x, w1_ref[...], preferred_element_type=jnp.float32)
    h1 = jnp.maximum(h1 + b1_ref[...], 0.0)

    # Layer 2: (tm,512) @ (512,1024) + ReLU.
    h2 = jnp.dot(h1.astype(jnp.bfloat16), w2_ref[...],
                 preferred_element_type=jnp.float32)
    h2 = jnp.maximum(h2 + b2_ref[...], 0.0)

    # Layer 3: (tm,1024) @ (1024,896 padded) + Sigmoid, stored at true width 784.
    h3 = jnp.dot(h2.astype(jnp.bfloat16), w3_ref[...],
                 preferred_element_type=jnp.float32)
    h3 = (h3 + b3_ref[...])[:, :d_out]
    # sigmoid(x) == 0.5 * tanh(0.5 * x) + 0.5  (single EUP op + cheap VPU ops)
    o_ref[...] = (0.5 * jnp.tanh(0.5 * h3) + 0.5).astype(o_ref.dtype)


# ---------------------------------------------------------------------------
# One-time parameter preparation (do NOT call per forward pass)
# ---------------------------------------------------------------------------
def prepare_params(params):
    """Cast weights to bf16 (halves HBM weight traffic, native MXU rate; f32
    accumulation preserved) and zero-pad layer-3 outputs 784 -> 896 (= 7*128)
    for a lane-dense MXU N tile.  Biases stay f32 (added to the f32 acc).

    Returns (prepared_params, d_out) where d_out is the true output width.
    """
    d_out = int(params["b3"].shape[-1])
    pad = _round_up(d_out, 128) - d_out
    prep = {
        "w1": params["w1"].astype(jnp.bfloat16),
        "b1": params["b1"].astype(jnp.float32),
        "w2": params["w2"].astype(jnp.bfloat16),
        "b2": params["b2"].astype(jnp.float32),
        "w3": jnp.pad(params["w3"], ((0, 0), (0, pad))).astype(jnp.bfloat16),
        "b3": jnp.pad(params["b3"], ((0, 0), (0, pad))).astype(jnp.float32),
    }
    return prep, d_out


# ---------------------------------------------------------------------------
# Batch-tile selection (host-side, static shapes)
# ---------------------------------------------------------------------------
def _choose_tm(B):
    """Pick the batch tile.  Goals, in order:
      * low batch-padding waste (don't round B up to a much larger multiple),
      * >=2 grid steps when the batch is big enough, so both v7x TensorCores
        get work under dimension_semantics=("parallel",),
      * the largest tile satisfying the above (fewer grid steps -> less
        per-step pipeline overhead, better MXU amortization on v6e/v7x).
    """
    B8 = _round_up(B, 8)
    if B8 <= 64:                       # tiny batch: one tile, zero padding
        return B8
    best_tm, best_cost = B8, None
    for tm in sorted({512, 256, 128, B8}, reverse=True):
        if tm > B8 or tm % 8:
            continue
        b_pad = _round_up(B, tm)
        steps = b_pad // tm
        waste = (b_pad - B) / b_pad          # wasted MXU time + HBM writeback
        cost = waste + 0.01 * steps          # mild per-step pipeline overhead
        cost += 0.25 if steps == 1 else 0.0  # single step idles one v7x core
        if best_cost is None or cost < best_cost:
            best_tm, best_cost = tm, cost
    return best_tm


# ---------------------------------------------------------------------------
# Forward pass
# ---------------------------------------------------------------------------
@functools.partial(jax.jit, static_argnames=("d_out", "tm"))
def regularizing_decoder(x, prep, *, d_out, tm=None):
    """x: (B, 160) f32; prep: output of prepare_params (bf16 weights, padded L3)."""
    w1, b1, w2, b2, w3, b3 = (prep[k] for k in ("w1", "b1", "w2", "b2", "w3", "b3"))
    B, d_in = x.shape

    if tm is None:
        tm = _choose_tm(B)
    b_pad = _round_up(B, tm)
    if b_pad != B:
        x = jnp.pad(x, ((0, b_pad - B), (0, 0)))

    const = lambda i: (0, 0)  # weights/biases: same block every step -> VMEM-resident

    out = pl.pallas_call(
        decoder_kernel,
        out_shape=jax.ShapeDtypeStruct((b_pad, d_out), jnp.float32),
        grid=(b_pad // tm,),
        in_specs=[
            pl.BlockSpec((tm, d_in), lambda i: (i, 0)),   # x: tiled over batch
            pl.BlockSpec(w1.shape, const),
            pl.BlockSpec(b1.shape, const),
            pl.BlockSpec(w2.shape, const),
            pl.BlockSpec(b2.shape, const),
            pl.BlockSpec(w3.shape, const),
            pl.BlockSpec(b3.shape, const),
        ],
        out_specs=pl.BlockSpec((tm, d_out), lambda i: (i, 0)),  # true width (784)
        compiler_params=pltpu.CompilerParams(
            dimension_semantics=("parallel",),   # megacore split on v7x
            vmem_limit_bytes=32 << 20,           # ~15 MiB used at tm=512
        ),
    )(x, w1, b1, w2, b2, w3, b3)

    return out if b_pad == B else out[:B]


# ---------------------------------------------------------------------------
# Reference + test harness
# ---------------------------------------------------------------------------
def init_params(key, dims=(160, 512, 1024, 784)):
    """Deterministic PyTorch-style uniform(-1/sqrt(fan_in), 1/sqrt(fan_in)) init."""
    params = {}
    keys = jax.random.split(key, 6)
    for i in range(3):
        fan_in, fan_out = dims[i], dims[i + 1]
        bound = 1.0 / jnp.sqrt(jnp.float32(fan_in))
        params[f"w{i+1}"] = jax.random.uniform(
            keys[2 * i], (fan_in, fan_out), jnp.float32, -bound, bound)
        # biases kept 2D (1, out) so they broadcast cleanly over the batch tile
        params[f"b{i+1}"] = jax.random.uniform(
            keys[2 * i + 1], (1, fan_out), jnp.float32, -bound, bound)
    return params


def reference_f32(x, params):
    h = jnp.maximum(x @ params["w1"] + params["b1"], 0.0)
    h = jnp.maximum(h @ params["w2"] + params["b2"], 0.0)
    return jax.nn.sigmoid(h @ params["w3"] + params["b3"])


if __name__ == "__main__":
    dims = (160, 512, 1024, 784)
    batch = 8

    key = jax.random.PRNGKey(0)
    k_x, k_p = jax.random.split(key)
    x = jax.random.normal(k_x, (batch, dims[0]), jnp.float32)
    params = init_params(k_p, dims)

    # One-time weight prep (bf16 cast + lane padding), then the fused kernel.
    prep, d_out = prepare_params(params)
    out = regularizing_decoder(x, prep, d_out=d_out)
    out = jax.block_until_ready(out)

    ref = reference_f32(x, params)
    assert out.shape == (batch, dims[3])
    # bf16 weights/activations in the kernel vs f32 reference -> loose tolerance
    assert jnp.allclose(out, ref, atol=2e-2, rtol=0.0), "mismatch vs JAX reference"

    print("KERNEL_OK")
</pallas_src>

<mosaic_0001>
module attributes {stable_mosaic.version = 11 : i64} {
  func.func @decoder_kernel(%arg0: i32, %arg1: memref<8x160xf32, #tpu.memory_space<vmem>>, %arg2: memref<160x512xbf16, #tpu.memory_space<vmem>>, %arg3: memref<1x512xf32, #tpu.memory_space<vmem>>, %arg4: memref<512x1024xbf16, #tpu.memory_space<vmem>>, %arg5: memref<1x1024xf32, #tpu.memory_space<vmem>>, %arg6: memref<1024x896xbf16, #tpu.memory_space<vmem>>, %arg7: memref<1x896xf32, #tpu.memory_space<vmem>>, %arg8: memref<8x784xf32, #tpu.memory_space<vmem>>) attributes {dimension_semantics = [#tpu.dimension_semantics<parallel>], iteration_bounds = array<i64: 1>, scalar_prefetch = 0 : i64, scratch_operands = 0 : i64, tpu.core_type = #tpu.core_type<tc>, window_params = [{transform_indices = @transform_0, window_bounds = array<i64: 8, 160>}, {pipeline_mode = #tpu.pipeline_mode<synchronous>, transform_indices = @transform_1, window_bounds = array<i64: 160, 512>}, {pipeline_mode = #tpu.pipeline_mode<synchronous>, transform_indices = @transform_2, window_bounds = array<i64: 1, 512>}, {pipeline_mode = #tpu.pipeline_mode<synchronous>, transform_indices = @transform_3, window_bounds = array<i64: 512, 1024>}, {pipeline_mode = #tpu.pipeline_mode<synchronous>, transform_indices = @transform_4, window_bounds = array<i64: 1, 1024>}, {pipeline_mode = #tpu.pipeline_mode<synchronous>, transform_indices = @transform_5, window_bounds = array<i64: 1024, 896>}, {pipeline_mode = #tpu.pipeline_mode<synchronous>, transform_indices = @transform_6, window_bounds = array<i64: 1, 896>}, {transform_indices = @transform_7, window_bounds = array<i64: 8, 784>}]} {
    %c0 = arith.constant 0 : index
    %c0_0 = arith.constant 0 : index
    %0 = vector.load %arg1[%c0, %c0_0] : memref<8x160xf32, #tpu.memory_space<vmem>>, vector<8x160xf32>
    %1 = arith.truncf %0 : vector<8x160xf32> to vector<8x160xbf16>
    %c0_1 = arith.constant 0 : index
    %c0_2 = arith.constant 0 : index
    %2 = vector.load %arg2[%c0_1, %c0_2] : memref<160x512xbf16, #tpu.memory_space<vmem>>, vector<160x512xbf16>
    %cst = arith.constant dense<0.000000e+00> : vector<8x512xf32>
    %3 = tpu.matmul %1, %2, %cst {dimension_numbers = #tpu.dot_dimension_numbers<[1], [0], [0], [1], [0, 0, 1, 1], [], []>} : vector<8x160xbf16>, vector<160x512xbf16>, vector<8x512xf32> -> vector<8x512xf32>
    %c0_3 = arith.constant 0 : index
    %c0_4 = arith.constant 0 : index
    %4 = vector.load %arg3[%c0_3, %c0_4] : memref<1x512xf32, #tpu.memory_space<vmem>>, vector<1x512xf32>
    %5 = vector.broadcast %4 : vector<1x512xf32> to vector<8x512xf32>
    %6 = arith.addf %3, %5 : vector<8x512xf32>
    %cst_5 = arith.constant 0.000000e+00 : f32
    %7 = vector.broadcast %cst_5 : f32 to vector<8x512xf32>
    %8 = arith.maximumf %6, %7 : vector<8x512xf32>
    %9 = arith.truncf %8 : vector<8x512xf32> to vector<8x512xbf16>
    %c0_6 = arith.constant 0 : index
    %c0_7 = arith.constant 0 : index
    %10 = vector.load %arg4[%c0_6, %c0_7] : memref<512x1024xbf16, #tpu.memory_space<vmem>>, vector<512x1024xbf16>
    %cst_8 = arith.constant dense<0.000000e+00> : vector<8x1024xf32>
    %11 = tpu.matmul %9, %10, %cst_8 {dimension_numbers = #tpu.dot_dimension_numbers<[1], [0], [0], [1], [0, 0, 1, 1], [], []>} : vector<8x512xbf16>, vector<512x1024xbf16>, vector<8x1024xf32> -> vector<8x1024xf32>
    %c0_9 = arith.constant 0 : index
    %c0_10 = arith.constant 0 : index
    %12 = vector.load %arg5[%c0_9, %c0_10] : memref<1x1024xf32, #tpu.memory_space<vmem>>, vector<1x1024xf32>
    %13 = vector.broadcast %12 : vector<1x1024xf32> to vector<8x1024xf32>
    %14 = arith.addf %11, %13 : vector<8x1024xf32>
    %cst_11 = arith.constant 0.000000e+00 : f32
    %15 = vector.broadcast %cst_11 : f32 to vector<8x1024xf32>
    %16 = arith.maximumf %14, %15 : vector<8x1024xf32>
    %17 = arith.truncf %16 : vector<8x1024xf32> to vector<8x1024xbf16>
    %c0_12 = arith.constant 0 : index
    %c0_13 = arith.constant 0 : index
    %18 = vector.load %arg6[%c0_12, %c0_13] : memref<1024x896xbf16, #tpu.memory_space<vmem>>, vector<1024x896xbf16>
    %cst_14 = arith.constant dense<0.000000e+00> : vector<8x896xf32>
    %19 = tpu.matmul %17, %18, %cst_14 {dimension_numbers = #tpu.dot_dimension_numbers<[1], [0], [0], [1], [0, 0, 1, 1], [], []>} : vector<8x1024xbf16>, vector<1024x896xbf16>, vector<8x896xf32> -> vector<8x896xf32>
    %c0_15 = arith.constant 0 : index
    %c0_16 = arith.constant 0 : index
    %20 = vector.load %arg7[%c0_15, %c0_16] : memref<1x896xf32, #tpu.memory_space<vmem>>, vector<1x896xf32>
    %21 = vector.broadcast %20 : vector<1x896xf32> to vector<8x896xf32>
    %22 = arith.addf %19, %21 : vector<8x896xf32>
    %23 = vector.extract_strided_slice %22 {offsets = [0, 0], sizes = [8, 784], strides = [1, 1]} : vector<8x896xf32> to vector<8x784xf32>
    %cst_17 = arith.constant 5.000000e-01 : f32
    %24 = vector.broadcast %cst_17 : f32 to vector<8x784xf32>
    %25 = arith.mulf %24, %23 : vector<8x784xf32>
    %26 = math.tanh %25 : vector<8x784xf32>
    %cst_18 = arith.constant 5.000000e-01 : f32
    %27 = vector.broadcast %cst_18 : f32 to vector<8x784xf32>
    %28 = arith.mulf %27, %26 : vector<8x784xf32>
    %cst_19 = arith.constant 5.000000e-01 : f32
    %29 = vector.broadcast %cst_19 : f32 to vector<8x784xf32>
    %30 = arith.addf %28, %29 : vector<8x784xf32>
    %c0_20 = arith.constant 0 : index
    %c0_21 = arith.constant 0 : index
    %31 = vector.load %arg8[%c0_20, %c0_21] : memref<8x784xf32, #tpu.memory_space<vmem>>, vector<8x784xf32>
    tpu.vector_store %arg8[%c0_20, %c0_21], %30 {strides = array<i32>} : memref<8x784xf32, #tpu.memory_space<vmem>>, vector<8x784xf32>,
    return
  }
  func.func @transform_0(%arg0: i32) -> (i32, i32) {
    %c0_i32 = arith.constant 0 : i32
    %c0_i32_0 = arith.constant 0 : i32
    return %arg0, %c0_i32 : i32, i32
  }
  func.func @transform_1(%arg0: i32) -> (i32, i32) {
    %c0_i32 = arith.constant 0 : i32
    %c0_i32_0 = arith.constant 0 : i32
    %c0_i32_1 = arith.constant 0 : i32
    return %c0_i32, %c0_i32_0 : i32, i32
  }
  func.func @transform_2(%arg0: i32) -> (i32, i32) {
    %c0_i32 = arith.constant 0 : i32
    %c0_i32_0 = arith.constant 0 : i32
    %c0_i32_1 = arith.constant 0 : i32
    return %c0_i32, %c0_i32_0 : i32, i32
  }
  func.func @transform_3(%arg0: i32) -> (i32, i32) {
    %c0_i32 = arith.constant 0 : i32
    %c0_i32_0 = arith.constant 0 : i32
    %c0_i32_1 = arith.constant 0 : i32
    return %c0_i32, %c0_i32_0 : i32, i32
  }
  func.func @transform_4(%arg0: i32) -> (i32, i32) {
    %c0_i32 = arith.constant 0 : i32
    %c0_i32_0 = arith.constant 0 : i32
    %c0_i32_1 = arith.constant 0 : i32
    return %c0_i32, %c0_i32_0 : i32, i32
  }
  func.func @transform_5(%arg0: i32) -> (i32, i32) {
    %c0_i32 = arith.constant 0 : i32
    %c0_i32_0 = arith.constant 0 : i32
    %c0_i32_1 = arith.constant 0 : i32
    return %c0_i32, %c0_i32_0 : i32, i32
  }
  func.func @transform_6(%arg0: i32) -> (i32, i32) {
    %c0_i32 = arith.constant 0 : i32
    %c0_i32_0 = arith.constant 0 : i32
    %c0_i32_1 = arith.constant 0 : i32
    return %c0_i32, %c0_i32_0 : i32, i32
  }
  func.func @transform_7(%arg0: i32) -> (i32, i32) {
    %c0_i32 = arith.constant 0 : i32
    %c0_i32_0 = arith.constant 0 : i32
    return %arg0, %c0_i32 : i32, i32
  }
}

</mosaic_0001>

<bundles_post_ra>
// kernel: regularizing_decoder.1
= control target key start
LH: loop header
LB: loop body
LE: loop exit
PB: predicated region body
PF: predicated region fallthrough
CT: control target
= control target key end

     0   :  { %12 = vsyncpa [#allocation3], 0  ;;  %s10427_s0 = inlined_call_operand.hbm [shape: f32[8,160], index: 0, kind: input, shape index: {}]   ;;  %s10428_s1 = inlined_call_operand.hbm [shape: bf16[160,512], index: 1, kind: input, shape index: {}]   ;;  %s10429_s2 = inlined_call_operand.hbm [shape: f32[1,512], index: 2, kind: input, shape index: {}]   ;;  %s10430_s3 = inlined_call_operand.hbm [shape: bf16[512,1024], index: 3, kind: input, shape index: {}]   ;;  %s10431_s4 = inlined_call_operand.hbm [shape: f32[1,1024], index: 4, kind: input, shape index: {}]   ;;  %s10432_s5 = inlined_call_operand.hbm [shape: bf16[1024,896], index: 5, kind: input, shape index: {}]   ;;  %s10433_s6 = inlined_call_operand.hbm [shape: f32[1,896], index: 6, kind: input, shape index: {}]   ;;  %s10434_s7 = inlined_call_operand.hbm [shape: f32[8,784], index: 7, kind: output, shape index: {}]  }
   0x1   :  { %13 = vsyncpa [#allocation6], 0 }
   0x2   :  { %14 = vsyncpa [#allocation9], 0 }
   0x3   :  { %15 = vsyncpa [#allocation12], 0  ;;  %s32_s26 = sshll.u32 %s10428_s1, 4  ;;  %s33_s26 = int_to_ptr.hbm [resolvable:$true] %s32_s26 }
   0x4   :  { %16 = vsyncpa [#allocation4], 0  ;;  %s10058_s27 = smov [#allocation5]   ;;  %s56_s8 = sshll.u32 %s10430_s3, 4  ;;  %s57_s8 = int_to_ptr.hbm [resolvable:$true] %s56_s8 }
   0x5   :  { %s34_s28 = sshll.u32 %s10058_s27, 4  ;;  %s10059_s9 = smov 256   ;;  %s35_s28 = int_to_ptr.vmem [resolvable:$true] %s34_s28 }
   0x6   :  { %s10060_s10 = smov 16   ;;  %s10061_s11 = smov [#allocation8]  }
   0x7   :  { %40 = dma.hbm_to_vmem [thread:$0]  %s33_s26, 5120, %s35_s28, [#allocation6], %s10059_s9, %s10059_s9, %s10060_s10  }
   0x8   :  { %s58_s12 = sshll.u32 %s10061_s11, 4  ;;  %s10062_s13 = smov 512   ;;  %s59_s12 = int_to_ptr.vmem [resolvable:$true] %s58_s12 }
   0x9   :  { %s10063_s14 = smov 32   ;;  %s80_s16 = sshll.u32 %s10432_s5, 4  ;;  %s81_s16 = int_to_ptr.hbm [resolvable:$true] %s80_s16 }
   0xa   :  { %64 = dma.hbm_to_vmem [thread:$0]  %s57_s8, 32768, %s59_s12, [#allocation9], %s10062_s13, %s10062_s13, %s10063_s14  }
   0xb   :  { %s10064_s17 = smov [#allocation11]   ;;  %s22_s20 = sshll.u32 %s10427_s0, 4  ;;  %s23_s20 = int_to_ptr.hbm [resolvable:$true] %s22_s20 }
   0xc   :  { %s82_s18 = sshll.u32 %s10064_s17, 4  ;;  %s10065_s21 = smov 448   ;;  %s83_s18 = int_to_ptr.vmem [resolvable:$true] %s82_s18 }
   0xd   :  { %s10066_s22 = smov 28   ;;  %s10067_s23 = smov [#allocation2]  }
   0xe   :  { %88 = dma.hbm_to_vmem [thread:$0]  %s81_s16, 57344, %s83_s18, [#allocation12], %s10065_s21, %s10065_s21, %s10066_s22  }
   0xf   :  { %s24_s24 = sshll.u32 %s10067_s23, 4  ;;  %s46_s27 = sshll.u32 %s10429_s2, 4  ;;  %s25_s24 = int_to_ptr.vmem [resolvable:$true] %s24_s24  ;;  %s47_s27 = int_to_ptr.hbm [resolvable:$true] %s46_s27 }
  0x10   :  { %27 = dma.hbm_to_vmem [thread:$0]  %s23_s20, 256, %s25_s24, [#allocation3]  }
  0x11   :  { %s70_s29 = sshll.u32 %s10431_s4, 4  ;;  %s10068_s30 = smov [#allocation7]   ;;  %s71_s29 = int_to_ptr.hbm [resolvable:$true] %s70_s29 }
  0x12   :  { %s48_s8 = sshll.u32 %s10068_s30, 4  ;;  %s10069_s0 = smov [#allocation10]   ;;  %s49_s8 = int_to_ptr.vmem [resolvable:$true] %s48_s8 }
  0x13   :  { %51 = dma.hbm_to_vmem [thread:$0]  %s47_s27, 64, %s49_s8, [#allocation6]  }
  0x14   :  { %s72_s9 = sshll.u32 %s10069_s0, 4  ;;  %s94_s12 = sshll.u32 %s10433_s6, 4  ;;  %s73_s9 = int_to_ptr.vmem [resolvable:$true] %s72_s9  ;;  %s95_s12 = int_to_ptr.hbm [resolvable:$true] %s94_s12 }
  0x15   :  { %75 = dma.hbm_to_vmem [thread:$0]  %s71_s29, 128, %s73_s9, [#allocation9]  }
  0x16   :  { %s10070_s2 = smov [#allocation13]  }
  0x17   :  { %s96_s13 = sshll.u32 %s10070_s2, 4  ;;  %s97_s13 = int_to_ptr.vmem [resolvable:$true] %s96_s13 }
  0x18   :  { %99 = dma.hbm_to_vmem [thread:$0]  %s95_s12, 112, %s97_s13, [#allocation12]  }
  0x19   :  { %10048 = dma.done.wait [#allocation3], 256  }
  0x1a   :  { %10049 = vsyncadd [#allocation3], 4294967040 }
  0x1b   :  { %10050 = dma.done.wait [#allocation6], 5184  }
  0x1c   :  { %10051 = vsyncadd [#allocation6], 4294962112 }
  0x1d   :  { %10052 = dma.done.wait [#allocation9], 32896  }
  0x1e   :  { %10053 = vsyncadd [#allocation9], 4294934400 }
  0x1f   :  { %10054 = dma.done.wait [#allocation12], 57456  }
  0x20   :  { %10055 = vsyncadd [#allocation12], 4294909840  ;;  %v6215_v0 = vld [vmem:[#allocation5 + $0xe0] sm:$0xf]  ;;  %v9111_v1 = vld [vmem:[#allocation5 + $0xec] sm:$0xf0] }
  0x21   :  { %v6247_v2 = vld [vmem:[#allocation5 + $0x120] sm:$0xf]  ;;  %v6216_v3 = vor.u32 %v9111_v1, %v6215_v0  ;;  %v9119_v4 = vld [vmem:[#allocation5 + $0x12c] sm:$0xf0]  ;;  %v9109_v5 = vld [vmem:[#allocation5 + $0xe4] sm:$0xf] }
  0x22   :  { %v6217_v6 = vld [vmem:[#allocation5 + $0xf0] sm:$0xf0]  ;;  %v6248_v7 = vor.u32 %v9119_v4, %v6247_v2  ;;  %v6255_v9 = vld [vmem:[#allocation5 + $0x128] sm:$0xf]  ;;  %v9120_v10 = vld [vmem:[#allocation5 + $0x134] sm:$0xf0] }
  0x23   :  { %v6220_v8 = vor.u32 %v9109_v5, %v6217_v6  ;;  %v6199_v11 = vld [vmem:[#allocation5 + $0xc0] sm:$0xf]  ;;  %387 = vmatpush.bf16.msra.mxu0 %v6216_v3  ;;  %v6256_v12 = vor.u32 %v9120_v10, %v6255_v9  ;;  %v9107_v13 = vld [vmem:[#allocation5 + $0xcc] sm:$0xf0]  ;;  %v9105_v18 = vld [vmem:[#allocation5 + $0xc4] sm:$0xf] }
  0x24   :  { %v6231_v14 = vld [vmem:[#allocation5 + $0x100] sm:$0xf]  ;;  %v9115_v15 = vld [vmem:[#allocation5 + $0x10c] sm:$0xf0]  ;;  %406 = vmatpush.bf16.msra.mxu1 %v6248_v7  ;;  %v6200_v16 = vor.u32 %v9107_v13, %v6199_v11  ;;  %v6201_v19 = vld [vmem:[#allocation5 + $0xd0] sm:$0xf0] }
  0x25   :  { %413 = vmatpush.bf16.msra.mxu2 %v6220_v8  ;;  %v6232_v17 = vor.u32 %v9115_v15, %v6231_v14  ;;  %v6239_v20 = vld [vmem:[#allocation5 + $0x108] sm:$0xf]  ;;  %458 = vmatpush.bf16.msra.mxu3 %v6256_v12  ;;  %v6204_v21 = vor.u32 %v9105_v18, %v6201_v19  ;;  %v9116_v22 = vld [vmem:[#allocation5 + $0x114] sm:$0xf0]  ;;  %v9110_v27 = vld [vmem:[#allocation5 + $0xec] sm:$0xf] }
  0x26   :  { %v6223_v23 = vld [vmem:[#allocation5 + $0xe8] sm:$0xf]  ;;  %v9112_v24 = vld [vmem:[#allocation5 + $0xf4] sm:$0xf0]  ;;  %v6240_v25 = vor.u32 %v9116_v22, %v6239_v20  ;;  %v6225_v28 = vld [vmem:[#allocation5 + $0xf8] sm:$0xf0] }
  0x27   :  { %v6224_v26 = vor.u32 %v9112_v24, %v6223_v23  ;;  %v6183_v29 = vld [vmem:[#allocation5 + $0xa0] sm:$0xf]  ;;  %388 = vmatpush.bf16.msra.mxu0 %v6200_v16  ;;  %v6228_v30 = vor.u32 %v9110_v27, %v6225_v28  ;;  %v9103_v31 = vld [vmem:[#allocation5 + $0xac] sm:$0xf0]  ;;  %v9101_v32 = vld [vmem:[#allocation5 + $0xa4] sm:$0xf] }
  0x28   :  { %v6185_v33 = vld [vmem:[#allocation5 + $0xb0] sm:$0xf0]  ;;  %407 = vmatpush.bf16.msra.mxu1 %v6232_v17  ;;  %v6184_v34 = vor.u32 %v9103_v31, %v6183_v29  ;;  %v6207_v36 = vld [vmem:[#allocation5 + $0xc8] sm:$0xf]  ;;  %v9108_v37 = vld [vmem:[#allocation5 + $0xd4] sm:$0xf0] }
  0x29   :  { %414 = vmatpush.bf16.msra.mxu2 %v6204_v21  ;;  %v6188_v35 = vor.u32 %v9101_v32, %v6185_v33  ;;  %v9106_v38 = vld [vmem:[#allocation5 + $0xcc] sm:$0xf]  ;;  %459 = vmatpush.bf16.msra.mxu3 %v6240_v25  ;;  %v6208_v39 = vor.u32 %v9108_v37, %v6207_v36  ;;  %v6209_v40 = vld [vmem:[#allocation5 + $0xd8] sm:$0xf0]  ;;  %v6167_v41 = vld [vmem:[#allocation5 + $0x80] sm:$0xf] }
  0x2a   :  { %v9099_v42 = vld [vmem:[#allocation5 + $0x8c] sm:$0xf0]  ;;  %v6212_v43 = vor.u32 %v9106_v38, %v6209_v40  ;;  %v9097_v44 = vld [vmem:[#allocation5 + $0x84] sm:$0xf]  ;;  %v6169_v45 = vld [vmem:[#allocation5 + $0x90] sm:$0xf0] }
  0x2b   :  { %v6191_v46 = vld [vmem:[#allocation5 + $0xa8] sm:$0xf]  ;;  %389 = vmatpush.bf16.msra.mxu0 %v6184_v34  ;;  %v6168_v47 = vor.u32 %v9099_v42, %v6167_v41  ;;  %v9104_v48 = vld [vmem:[#allocation5 + $0xb4] sm:$0xf0]  ;;  %v9102_v49 = vld [vmem:[#allocation5 + $0xac] sm:$0xf]  ;;  %v6172_v51 = vor.u32 %v9097_v44, %v6169_v45 }
  0x2c   :  { %439 = vmatpush.bf16.msrb.mxu1 %v6224_v26  ;;  %v6193_v50 = vld [vmem:[#allocation5 + $0xb8] sm:$0xf0]  ;;  %v6151_v52 = vld [vmem:[#allocation5 + $0x60] sm:$0xf]  ;;  %v9095_v53 = vld [vmem:[#allocation5 + $0x6c] sm:$0xf0]  ;;  %v6192_v54 = vor.u32 %v9104_v48, %v6191_v46 }
  0x2d   :  { %465 = vmatpush.bf16.msrb.mxu3 %v6228_v30  ;;  %415 = vmatpush.bf16.msra.mxu2 %v6188_v35  ;;  %v9093_v55 = vld [vmem:[#allocation5 + $0x64] sm:$0xf]  ;;  %v6153_v56 = vld [vmem:[#allocation5 + $0x70] sm:$0xf0]  ;;  %v6196_v57 = vor.u32 %v9102_v49, %v6193_v50  ;;  %v6175_v58 = vld [vmem:[#allocation5 + $0x88] sm:$0xf]  ;;  %v6152_v61 = vor.u32 %v9095_v53, %v6151_v52 }
  0x2e   :  { %v9100_v59 = vld [vmem:[#allocation5 + $0x94] sm:$0xf0]  ;;  %vm383_vm0 = vcmask 261120   ;;  %v9098_v62 = vld [vmem:[#allocation5 + $0x8c] sm:$0xf]  ;;  %v6156_v1 = vor.u32 %v9093_v55, %v6153_v56  ;;  %v129_v41 = vld [vmem:[#allocation2] sm:$0xff] }
  0x2f   :  { %v130_v60 = vld [vmem:[#allocation2 + $0x8] sm:$0xff]  ;;  %390 = vmatpush.bf16.msra.mxu0 %v6168_v47  ;;  %v6135_v2 = vld [vmem:[#allocation5 + $0x40] sm:$0xf]  ;;  %v9091_v3 = vld [vmem:[#allocation5 + $0x4c] sm:$0xf0]  ;;  %v6176_v4 = vor.u32 %v9100_v59, %v6175_v58  ;;  %v131_v52 = vpack.c.bf16 %v129_v41, %v129_v41  ;;  %s10071_s4 = smov [#allocation14]  }
  0x30   :  { %440 = vmatpush.bf16.msrb.mxu1 %v6208_v39  ;;  %v6177_v63 = vld [vmem:[#allocation5 + $0x98] sm:$0xf0]  ;;  %v10133_v0 = vpack.c.bf16 %v130_v60, %v130_v60  ;;  %v9089_v5 = vld [vmem:[#allocation5 + $0x44] sm:$0xf]  ;;  %v6137_v6 = vld [vmem:[#allocation5 + $0x50] sm:$0xf0]  ;;  %v6136_v10 = vor.u32 %v9091_v3, %v6135_v2 }
  0x31   :  { %466 = vmatpush.bf16.msrb.mxu3 %v6212_v43  ;;  %416 = vmatpush.bf16.msra.mxu2 %v6172_v51  ;;  %v6180_v7 = vor.u32 %v9098_v62, %v6177_v63  ;;  %v6159_v8 = vld [vmem:[#allocation5 + $0x68] sm:$0xf]  ;;  %v9096_v9 = vld [vmem:[#allocation5 + $0x74] sm:$0xf0]  ;;  %v9094_v11 = vld [vmem:[#allocation5 + $0x6c] sm:$0xf]  ;;  %v6140_v13 = vor.u32 %v9089_v5, %v6137_v6 }
  0x32   :  { %6263 = vmatmul.msk.bf16.vlgmr.msra.gmra.mxu3 %vm383_vm0, %v10133_v0  ;;  %6261 = vmatmul.msk.bf16.vlgmr.msra.gmra.mxu1 %vm383_vm0, %v10133_v0  ;;  %v6161_v12 = vld [vmem:[#allocation5 + $0x78] sm:$0xf0]  ;;  %v6119_v14 = vld [vmem:[#allocation5 + $0x20] sm:$0xf]  ;;  %v9087_v15 = vld [vmem:[#allocation5 + $0x2c] sm:$0xf0]  ;;  %v6160_v16 = vor.u32 %v9096_v9, %v6159_v8 }
  0x33   :  { %391 = vmatpush.bf16.msra.mxu0 %v6152_v61  ;;  %v9085_v17 = vld [vmem:[#allocation5 + $0x24] sm:$0xf]  ;;  %v6121_v18 = vld [vmem:[#allocation5 + $0x30] sm:$0xf0]  ;;  %v6164_v19 = vor.u32 %v9094_v11, %v6161_v12  ;;  %v6143_v20 = vld [vmem:[#allocation5 + $0x48] sm:$0xf]  ;;  %v6120_v22 = vor.u32 %v9087_v15, %v6119_v14 }
  0x34   :  { %441 = vmatpush.bf16.msrb.mxu1 %v6192_v54  ;;  %v9092_v21 = vld [vmem:[#allocation5 + $0x54] sm:$0xf0]  ;;  %v9090_v23 = vld [vmem:[#allocation5 + $0x4c] sm:$0xf]  ;;  %v6145_v24 = vld [vmem:[#allocation5 + $0x58] sm:$0xf0]  ;;  %v6124_v26 = vor.u32 %v9085_v17, %v6121_v18 }
  0x35   :  { %467 = vmatpush.bf16.msrb.mxu3 %v6196_v57  ;;  %417 = vmatpush.bf16.msra.mxu2 %v6156_v1  ;;  %v6103_v25 = vld [vmem:[#allocation5] sm:$0xf]  ;;  %v9083_v27 = vld [vmem:[#allocation5 + $0xc] sm:$0xf0]  ;;  %v9081_v28 = vld [vmem:[#allocation5 + $0x4] sm:$0xf]  ;;  %v6144_v30 = vor.u32 %v9092_v21, %v6143_v20  ;;  %v6148_v34 = vor.u32 %v9090_v23, %v6145_v24 }
  0x36   :  { %v6105_v29 = vld [vmem:[#allocation5 + $0x10] sm:$0xf0]  ;;  %v6127_v31 = vld [vmem:[#allocation5 + $0x28] sm:$0xf]  ;;  %v9118_v32 = vld [vmem:[#allocation5 + $0x12c] sm:$0xf]  ;;  %v6104_v38 = vor.u32 %v9083_v27, %v6103_v25 }
  0x37   :  { %392 = vmatpush.bf16.msra.mxu0 %v6136_v10  ;;  %v6257_v33 = vld [vmem:[#allocation5 + $0x138] sm:$0xf0]  ;;  %v9088_v35 = vld [vmem:[#allocation5 + $0x34] sm:$0xf0]  ;;  %v9117_v36 = vld [vmem:[#allocation5 + $0x124] sm:$0xf]  ;;  %v6108_v42 = vor.u32 %v9081_v28, %v6105_v29 }
  0x38   :  { %442 = vmatpush.bf16.msrb.mxu1 %v6176_v4  ;;  %v6249_v37 = vld [vmem:[#allocation5 + $0x130] sm:$0xf0]  ;;  %v9086_v39 = vld [vmem:[#allocation5 + $0x2c] sm:$0xf]  ;;  %v6129_v40 = vld [vmem:[#allocation5 + $0x38] sm:$0xf0]  ;;  %v6260_v45 = vor.u32 %v9118_v32, %v6257_v33  ;;  %v6128_v46 = vor.u32 %v9088_v35, %v6127_v31 }
  0x39   :  { %468 = vmatpush.bf16.msrb.mxu3 %v6180_v7  ;;  %418 = vmatpush.bf16.msra.mxu2 %v6140_v13  ;;  %v6111_v43 = vld [vmem:[#allocation5 + $0x8] sm:$0xf]  ;;  %v9084_v44 = vld [vmem:[#allocation5 + $0x14] sm:$0xf0]  ;;  %v9082_v47 = vld [vmem:[#allocation5 + $0xc] sm:$0xf]  ;;  %v6252_v48 = vor.u32 %v9117_v36, %v6249_v37  ;;  %v6132_v51 = vor.u32 %v9086_v39, %v6129_v40 }
  0x3a   :  { %v9114_v49 = vld [vmem:[#allocation5 + $0x10c] sm:$0xf]  ;;  %v6241_v50 = vld [vmem:[#allocation5 + $0x118] sm:$0xf0]  ;;  %v9113_v54 = vld [vmem:[#allocation5 + $0x104] sm:$0xf]  ;;  %v6112_v63 = vor.u32 %v9084_v44, %v6111_v43 }
  0x3b   :  { %393 = vmatpush.bf16.msra.mxu0 %v6120_v22  ;;  %v6113_v53 = vld [vmem:[#allocation5 + $0x18] sm:$0xf0]  ;;  %v6233_v55 = vld [vmem:[#allocation5 + $0x110] sm:$0xf0]  ;;  %v6491_v56 = vld [vmem:[#allocation8 + $0x1c0] sm:$0xf]  ;;  %v6244_v59 = vor.u32 %v9114_v49, %v6241_v50 }
  0x3c   :  { %443 = vmatpush.bf16.msrb.mxu1 %v6160_v16  ;;  %v9181_v57 = vld [vmem:[#allocation8 + $0x1dc] sm:$0xf0]  ;;  %v6236_v1 = vor.u32 %v9113_v54, %v6233_v55  ;;  %v6116_v2 = vor.u32 %v9082_v47, %v6113_v53  ;;  %s6086_s6 = sshll.u32 %s10071_s4, 4  ;;  %s6088_s15 = sshll.u32 %s10434_s7, 4  ;;  %vm6079_vm1 = vcmask 130048   ;;  %s6087_s6 = int_to_ptr.vmem [resolvable:$true] %s6086_s6  ;;  %s6089_s15 = int_to_ptr.hbm [resolvable:$true] %s6088_s15 }
  0x3d   :  { %469 = vmatpush.bf16.msrb.mxu3 %v6164_v19  ;;  %419 = vmatpush.bf16.msra.mxu2 %v6124_v26  ;;  %v7003_v58 = vld [vmem:[#allocation8 + $0x5c0] sm:$0xf]  ;;  %v6492_v3 = vor.u32 %v9181_v57, %v6491_v56 }
  0x3e   :  { %v9309_v60 = vld [vmem:[#allocation8 + $0x5dc] sm:$0xf0] }
  0x3f   :  { %394 = vmatpush.bf16.msra.mxu0 %v6104_v38  ;;  %v7259_v61 = vld [vmem:[#allocation8 + $0x7c0] sm:$0xf]  ;;  %v7004_v6 = vor.u32 %v9309_v60, %v7003_v58 }
  0x40   :  { %444 = vmatpush.bf16.msrb.mxu1 %v6144_v30  ;;  %v9373_v62 = vld [vmem:[#allocation8 + $0x7dc] sm:$0xf0] }
  0x41   :  { %470 = vmatpush.bf16.msrb.mxu3 %v6148_v34  ;;  %420 = vmatpush.bf16.msra.mxu2 %v6108_v42  ;;  %v6459_v4 = vld [vmem:[#allocation8 + $0x180] sm:$0xf]  ;;  %v7260_v8 = vor.u32 %v9373_v62, %v7259_v61 }
  0x42   :  { %395 = vmatmul.bf16.vlgmr.msra.gmra.mxu0 %v131_v52  ;;  %v9173_v5 = vld [vmem:[#allocation8 + $0x19c] sm:$0xf0] }
  0x43   :  { %484 = vmatpush.bf16.msrb.mxu0 %v6260_v45  ;;  %v6971_v7 = vld [vmem:[#allocation8 + $0x580] sm:$0xf]  ;;  %v6460_v15 = vor.u32 %v9173_v5, %v6459_v4 }
  0x44   :  { %445 = vmatpush.bf16.msrb.mxu1 %v6128_v46  ;;  %421 = vmatmul.bf16.vlgmr.msra.gmra.mxu2 %v131_v52  ;;  %v6747_v9 = vld [vmem:[#allocation8 + $0x3c0] sm:$0xf] }
  0x45   :  { %432 = vmatpush.bf16.msrb.mxu2 %v6252_v48  ;;  %471 = vmatpush.bf16.msrb.mxu3 %v6132_v51  ;;  %v9245_v10 = vld [vmem:[#allocation8 + $0x3dc] sm:$0xf0] }
  0x46   :  { %v9301_v11 = vld [vmem:[#allocation8 + $0x59c] sm:$0xf0]  ;;  %v6748_v14 = vor.u32 %v9245_v10, %v6747_v9  ;;  %v9177_v10 = vld [vmem:[#allocation8 + $0x1c4] sm:$0xf] }
  0x47   :  { %485 = vmatpush.bf16.msrb.mxu0 %v6244_v59  ;;  %v7227_v12 = vld [vmem:[#allocation8 + $0x780] sm:$0xf]  ;;  %v6972_v20 = vor.u32 %v9301_v11, %v6971_v7  ;;  %v6493_v11 = vld [vmem:[#allocation8 + $0x1e0] sm:$0xf0] }
  0x48   :  { %v9365_v13 = vld [vmem:[#allocation8 + $0x79c] sm:$0xf0]  ;;  %446 = vmatpush.bf16.msrb.mxu1 %v6112_v63 }
  0x49   :  { %433 = vmatpush.bf16.msrb.mxu2 %v6236_v1  ;;  %472 = vmatpush.bf16.msrb.mxu3 %v6116_v2  ;;  %v6715_v16 = vld [vmem:[#allocation8 + $0x380] sm:$0xf]  ;;  %v7228_v22 = vor.u32 %v9365_v13, %v7227_v12 }
  0x4a   :  { %v9237_v17 = vld [vmem:[#allocation8 + $0x39c] sm:$0xf0] }
  0x4b   :  { %2079 = vmatpush.bf16.msra.mxu0 %v7004_v6  ;;  %v6427_v18 = vld [vmem:[#allocation8 + $0x140] sm:$0xf]  ;;  %447 = vmatmul.bf16.vlgmr.msrb.gmra.mxu1 %v131_v52  ;;  %v6716_v26 = vor.u32 %v9237_v17, %v6715_v16  ;;  %v6496_v17 = vor.u32 %v9177_v10, %v6493_v11  ;;  %v9129_v10 = vld [vmem:[#allocation8 + $0x44] sm:$0xf] }
  0x4c   :  { %v9165_v19 = vld [vmem:[#allocation8 + $0x15c] sm:$0xf0]  ;;  %473 = vmatmul.bf16.vlgmr.msrb.gmra.mxu3 %v131_v52  ;;  %2066 = vmatpush.bf16.msra.mxu1 %v6748_v14  ;;  %v9305_v14 = vld [vmem:[#allocation8 + $0x5c4] sm:$0xf] }
  0x4d   :  { %2053 = vmatpush.bf16.msra.mxu2 %v6492_v3  ;;  %v6939_v21 = vld [vmem:[#allocation8 + $0x540] sm:$0xf]  ;;  %2092 = vmatpush.bf16.msra.mxu3 %v7260_v8  ;;  %v6428_v27 = vor.u32 %v9165_v19, %v6427_v18  ;;  %v9169_v19 = vld [vmem:[#allocation8 + $0x184] sm:$0xf] }
  0x4e   :  { %v9293_v23 = vld [vmem:[#allocation8 + $0x55c] sm:$0xf0]  ;;  %v6301_v11 = vld [vmem:[#allocation8 + $0x60] sm:$0xf0] }
  0x4f   :  { %v7195_v24 = vld [vmem:[#allocation8 + $0x740] sm:$0xf]  ;;  %2080 = vmatpush.bf16.msra.mxu0 %v6972_v20  ;;  %v6940_v32 = vor.u32 %v9293_v23, %v6939_v21  ;;  %v6461_v20 = vld [vmem:[#allocation8 + $0x1a0] sm:$0xf0] }
  0x50   :  { %v9357_v25 = vld [vmem:[#allocation8 + $0x75c] sm:$0xf0]  ;;  %2067 = vmatpush.bf16.msra.mxu1 %v6716_v26  ;;  %v9161_v23 = vld [vmem:[#allocation8 + $0x144] sm:$0xf] }
  0x51   :  { %2054 = vmatpush.bf16.msra.mxu2 %v6460_v15  ;;  %v6683_v28 = vld [vmem:[#allocation8 + $0x340] sm:$0xf]  ;;  %2093 = vmatpush.bf16.msra.mxu3 %v7228_v22  ;;  %v7196_v33 = vor.u32 %v9357_v25, %v7195_v24  ;;  %v7005_v15 = vld [vmem:[#allocation8 + $0x5e0] sm:$0xf0]  ;;  %v6464_v22 = vor.u32 %v9169_v19, %v6461_v20 }
  0x52   :  { %v9229_v29 = vld [vmem:[#allocation8 + $0x35c] sm:$0xf0]  ;;  %6264 = vmatmul.msk.bf16.vlgmr.msrb.gmra.mxu0 %vm383_vm0, %v10133_v0  ;;  %v7008_v21 = vor.u32 %v9305_v14, %v7005_v15  ;;  %v6429_v24 = vld [vmem:[#allocation8 + $0x160] sm:$0xf0] }
  0x53   :  { %v6395_v30 = vld [vmem:[#allocation8 + $0x100] sm:$0xf]  ;;  %v6684_v38 = vor.u32 %v9229_v29, %v6683_v28  ;;  %2081 = vmatpush.bf16.msra.mxu0 %v6940_v32  ;;  %v6432_v25 = vor.u32 %v9161_v23, %v6429_v24  ;;  %v9297_v28 = vld [vmem:[#allocation8 + $0x584] sm:$0xf] }
  0x54   :  { %v9157_v31 = vld [vmem:[#allocation8 + $0x11c] sm:$0xf0]  ;;  %6262 = vmatmul.msk.bf16.vlgmr.msrb.gmra.mxu2 %vm383_vm0, %v10133_v0  ;;  %v6717_v14 = vld [vmem:[#allocation8 + $0x3a0] sm:$0xf0] }
  0x55   :  { %v6907_v34 = vld [vmem:[#allocation8 + $0x500] sm:$0xf]  ;;  %2055 = vmatpush.bf16.msra.mxu2 %v6428_v27  ;;  %v6396_v39 = vor.u32 %v9157_v31, %v6395_v30  ;;  %2094 = vmatpush.bf16.msra.mxu3 %v7196_v33  ;;  %v6973_v30 = vld [vmem:[#allocation8 + $0x5a0] sm:$0xf0] }
  0x56   :  { %v9285_v35 = vld [vmem:[#allocation8 + $0x51c] sm:$0xf0]  ;;  %2068 = vmatpush.bf16.msra.mxu1 %v6684_v38  ;;  %v6976_v33 = vor.u32 %v9297_v28, %v6973_v30  ;;  %v9265_v15 = vld [vmem:[#allocation8 + $0x484] sm:$0xf] }
  0x57   :  { %v7163_v36 = vld [vmem:[#allocation8 + $0x700] sm:$0xf]  ;;  %v6908_v44 = vor.u32 %v9285_v35, %v6907_v34  ;;  %v9153_v35 = vld [vmem:[#allocation8 + $0x104] sm:$0xf] }
  0x58   :  { %v9349_v37 = vld [vmem:[#allocation8 + $0x71c] sm:$0xf0]  ;;  %v9345_v19 = vld [vmem:[#allocation8 + $0x704] sm:$0xf] }
  0x59   :  { %v6651_v40 = vld [vmem:[#allocation8 + $0x300] sm:$0xf]  ;;  %v7164_v47 = vor.u32 %v9349_v37, %v7163_v36  ;;  %2056 = vmatpush.bf16.msra.mxu2 %v6396_v39  ;;  %2082 = vmatpush.bf16.msra.mxu0 %v6908_v44  ;;  %v6397_v36 = vld [vmem:[#allocation8 + $0x120] sm:$0xf0] }
  0x5a   :  { %v9221_v41 = vld [vmem:[#allocation8 + $0x31c] sm:$0xf0]  ;;  %v6400_v38 = vor.u32 %v9153_v35, %v6397_v36  ;;  %v9369_v44 = vld [vmem:[#allocation8 + $0x7c4] sm:$0xf] }
  0x5b   :  { %v6363_v42 = vld [vmem:[#allocation8 + $0xc0] sm:$0xf]  ;;  %v6652_v50 = vor.u32 %v9221_v41, %v6651_v40  ;;  %2095 = vmatpush.bf16.msra.mxu3 %v7164_v47  ;;  %v9289_v40 = vld [vmem:[#allocation8 + $0x544] sm:$0xf] }
  0x5c   :  { %v9149_v43 = vld [vmem:[#allocation8 + $0xdc] sm:$0xf0]  ;;  %v6941_v41 = vld [vmem:[#allocation8 + $0x560] sm:$0xf0] }
  0x5d   :  { %v6875_v45 = vld [vmem:[#allocation8 + $0x4c0] sm:$0xf]  ;;  %v6364_v51 = vor.u32 %v9149_v43, %v6363_v42  ;;  %2069 = vmatpush.bf16.msra.mxu1 %v6652_v50  ;;  %v6944_v43 = vor.u32 %v9289_v40, %v6941_v41  ;;  %v6365_v50 = vld [vmem:[#allocation8 + $0xe0] sm:$0xf0] }
  0x5e   :  { %v9277_v46 = vld [vmem:[#allocation8 + $0x4dc] sm:$0xf0]  ;;  %v7165_v20 = vld [vmem:[#allocation8 + $0x720] sm:$0xf0] }
  0x5f   :  { %v7131_v48 = vld [vmem:[#allocation8 + $0x6c0] sm:$0xf]  ;;  %v6876_v56 = vor.u32 %v9277_v46, %v6875_v45  ;;  %2057 = vmatpush.bf16.msra.mxu2 %v6364_v51  ;;  %v7261_v45 = vld [vmem:[#allocation8 + $0x7e0] sm:$0xf0] }
  0x60   :  { %v9341_v49 = vld [vmem:[#allocation8 + $0x6dc] sm:$0xf0]  ;;  %v7264_v47 = vor.u32 %v9369_v44, %v7261_v45  ;;  %v6269_v23 = vld [vmem:[#allocation8 + $0x20] sm:$0xf0] }
  0x61   :  { %v6619_v52 = vld [vmem:[#allocation8 + $0x2c0] sm:$0xf]  ;;  %v7132_v59 = vor.u32 %v9341_v49, %v7131_v48  ;;  %2083 = vmatpush.bf16.msra.mxu0 %v6876_v56  ;;  %v9145_v49 = vld [vmem:[#allocation8 + $0xc4] sm:$0xf] }
  0x62   :  { %v9213_v53 = vld [vmem:[#allocation8 + $0x2dc] sm:$0xf0]  ;;  %v6653_v35 = vld [vmem:[#allocation8 + $0x320] sm:$0xf0] }
  0x63   :  { %v6331_v54 = vld [vmem:[#allocation8 + $0x80] sm:$0xf]  ;;  %v6620_v62 = vor.u32 %v9213_v53, %v6619_v52  ;;  %2096 = vmatpush.bf16.msra.mxu3 %v7132_v59  ;;  %v6368_v52 = vor.u32 %v9145_v49, %v6365_v50  ;;  %v9281_v53 = vld [vmem:[#allocation8 + $0x504] sm:$0xf] }
  0x64   :  { %v9141_v55 = vld [vmem:[#allocation8 + $0x9c] sm:$0xf0]  ;;  %v9329_v40 = vld [vmem:[#allocation8 + $0x684] sm:$0xf] }
  0x65   :  { %v6843_v57 = vld [vmem:[#allocation8 + $0x480] sm:$0xf]  ;;  %v6332_v63 = vor.u32 %v9141_v55, %v6331_v54  ;;  %2070 = vmatpush.bf16.msra.mxu1 %v6620_v62  ;;  %v6909_v54 = vld [vmem:[#allocation8 + $0x520] sm:$0xf0] }
  0x66   :  { %v9269_v58 = vld [vmem:[#allocation8 + $0x49c] sm:$0xf0]  ;;  %v9361_v55 = vld [vmem:[#allocation8 + $0x784] sm:$0xf]  ;;  %v6912_v56 = vor.u32 %v9281_v53, %v6909_v54 }
  0x67   :  { %v7099_v60 = vld [vmem:[#allocation8 + $0x680] sm:$0xf]  ;;  %v6844_v3 = vor.u32 %v9269_v58, %v6843_v57  ;;  %2058 = vmatpush.bf16.msra.mxu2 %v6332_v63  ;;  %v7229_v57 = vld [vmem:[#allocation8 + $0x7a0] sm:$0xf0] }
  0x68   :  { %v9333_v61 = vld [vmem:[#allocation8 + $0x69c] sm:$0xf0]  ;;  %v9137_v62 = vld [vmem:[#allocation8 + $0x84] sm:$0xf] }
  0x69   :  { %v6299_v1 = vld [vmem:[#allocation8 + $0x40] sm:$0xf]  ;;  %v7100_v5 = vor.u32 %v9333_v61, %v7099_v60  ;;  %2084 = vmatpush.bf16.msra.mxu0 %v6844_v3  ;;  %v7232_v60 = vor.u32 %v9361_v55, %v7229_v57  ;;  %v6333_v63 = vld [vmem:[#allocation8 + $0xa0] sm:$0xf0] }
  0x6a   :  { %v9133_v2 = vld [vmem:[#allocation8 + $0x5c] sm:$0xf0]  ;;  %v6749_v3 = vld [vmem:[#allocation8 + $0x3e0] sm:$0xf0] }
  0x6b   :  { %v6811_v4 = vld [vmem:[#allocation8 + $0x440] sm:$0xf]  ;;  %v6300_v6 = vor.u32 %v9133_v2, %v6299_v1  ;;  %2097 = vmatpush.bf16.msra.mxu3 %v7100_v5  ;;  %v9241_v1 = vld [vmem:[#allocation8 + $0x3c4] sm:$0xf]  ;;  %v6336_v2 = vor.u32 %v9137_v62, %v6333_v63 }
  0x6c   :  { %v9261_v0 = vld [vmem:[#allocation8 + $0x45c] sm:$0xf0]  ;;  %v6752_v5 = vor.u32 %v9241_v1, %v6749_v3  ;;  %v7101_v41 = vld [vmem:[#allocation8 + $0x6a0] sm:$0xf0] }
  0x6d   :  { %v6267_v7 = vld [vmem:[#allocation8] sm:$0xf]  ;;  %v6812_v9 = vor.u32 %v9261_v0, %v6811_v4  ;;  %2059 = vmatpush.bf16.msra.mxu2 %v6300_v6  ;;  %v9273_v4 = vld [vmem:[#allocation8 + $0x4c4] sm:$0xf] }
  0x6e   :  { %v9125_v8 = vld [vmem:[#allocation8 + $0x1c] sm:$0xf0]  ;;  %v6877_v0 = vld [vmem:[#allocation8 + $0x4e0] sm:$0xf0] }
  0x6f   :  { %v6779_v12 = vld [vmem:[#allocation8 + $0x400] sm:$0xf]  ;;  %v6268_v16 = vor.u32 %v9125_v8, %v6267_v7  ;;  %2085 = vmatpush.bf16.msra.mxu0 %v6812_v9  ;;  %v6880_v6 = vor.u32 %v9273_v4, %v6877_v0  ;;  %v9353_v7 = vld [vmem:[#allocation8 + $0x744] sm:$0xf] }
  0x70   :  { %v9253_v13 = vld [vmem:[#allocation8 + $0x41c] sm:$0xf0]  ;;  %v7197_v8 = vld [vmem:[#allocation8 + $0x760] sm:$0xf0] }
  0x71   :  { %v6780_v18 = vor.u32 %v9253_v13, %v6779_v12  ;;  %2060 = vmatpush.bf16.msra.mxu2 %v6268_v16  ;;  %v7067_v26 = vld [vmem:[#allocation8 + $0x640] sm:$0xf]  ;;  %v7200_v9 = vor.u32 %v9353_v7, %v7197_v8  ;;  %v9233_v12 = vld [vmem:[#allocation8 + $0x384] sm:$0xf]  ;;  %v6304_v13 = vor.u32 %v9129_v10, %v6301_v11  ;;  %v6499_v7 = vld [vmem:[#allocation8 + $0x1c8] sm:$0xf] }
  0x72   :  { %v9325_v27 = vld [vmem:[#allocation8 + $0x65c] sm:$0xf0]  ;;  %v6845_v16 = vld [vmem:[#allocation8 + $0x4a0] sm:$0xf0]  ;;  %v9182_v8 = vld [vmem:[#allocation8 + $0x1e4] sm:$0xf0] }
  0x73   :  { %2086 = vmatpush.bf16.msra.mxu0 %v6780_v18  ;;  %v7068_v29 = vor.u32 %v9325_v27, %v7067_v26  ;;  %v6587_v31 = vld [vmem:[#allocation8 + $0x280] sm:$0xf]  ;;  %v6848_v18 = vor.u32 %v9265_v15, %v6845_v16  ;;  %v6685_v26 = vld [vmem:[#allocation8 + $0x360] sm:$0xf0]  ;;  %v6500_v11 = vor.u32 %v9182_v8, %v6499_v7  ;;  %v6467_v15 = vld [vmem:[#allocation8 + $0x188] sm:$0xf] }
  0x74   :  { %v9205_v32 = vld [vmem:[#allocation8 + $0x29c] sm:$0xf0]  ;;  %v9257_v27 = vld [vmem:[#allocation8 + $0x444] sm:$0xf]  ;;  %v9174_v16 = vld [vmem:[#allocation8 + $0x1a4] sm:$0xf0] }
  0x75   :  { %2105 = vmatpush.bf16.msrb.mxu2 %v6496_v17  ;;  %v6588_v34 = vor.u32 %v9205_v32, %v6587_v31  ;;  %v7035_v37 = vld [vmem:[#allocation8 + $0x600] sm:$0xf]  ;;  %2098 = vmatpush.bf16.msra.mxu3 %v7068_v29  ;;  %v6720_v17 = vor.u32 %v9233_v12, %v6717_v14  ;;  %v6813_v29 = vld [vmem:[#allocation8 + $0x460] sm:$0xf0]  ;;  %v9358_v7 = vld [vmem:[#allocation8 + $0x764] sm:$0xf0] }
  0x76   :  { %v9317_v39 = vld [vmem:[#allocation8 + $0x61c] sm:$0xf0]  ;;  %v6816_v30 = vor.u32 %v9257_v27, %v6813_v29  ;;  %v9337_v31 = vld [vmem:[#allocation8 + $0x6c4] sm:$0xf]  ;;  %v6979_v29 = vld [vmem:[#allocation8 + $0x588] sm:$0xf] }
  0x77   :  { %2131 = vmatpush.bf16.msrb.mxu0 %v7008_v21  ;;  %2071 = vmatpush.bf16.msra.mxu1 %v6588_v34  ;;  %v7036_v42 = vor.u32 %v9317_v39, %v7035_v37  ;;  %v6555_v46 = vld [vmem:[#allocation8 + $0x240] sm:$0xf]  ;;  %v7168_v21 = vor.u32 %v9345_v19, %v7165_v20  ;;  %v7133_v32 = vld [vmem:[#allocation8 + $0x6e0] sm:$0xf0]  ;;  %v7011_v19 = vld [vmem:[#allocation8 + $0x5c8] sm:$0xf] }
  0x78   :  { %v9197_v48 = vld [vmem:[#allocation8 + $0x25c] sm:$0xf0]  ;;  %v9217_v34 = vld [vmem:[#allocation8 + $0x304] sm:$0xf]  ;;  %v9310_v20 = vld [vmem:[#allocation8 + $0x5e4] sm:$0xf0] }
  0x79   :  { %2106 = vmatpush.bf16.msrb.mxu2 %v6464_v22  ;;  %2099 = vmatpush.bf16.msra.mxu3 %v7036_v42  ;;  %v6556_v51 = vor.u32 %v9197_v48, %v6555_v46  ;;  %v6523_v58 = vld [vmem:[#allocation8 + $0x200] sm:$0xf]  ;;  %v9121_v22 = vld [vmem:[#allocation8 + $0x4] sm:$0xf]  ;;  %v6656_v36 = vor.u32 %v9217_v34, %v6653_v35  ;;  %v7104_v42 = vor.u32 %v9329_v40, %v7101_v41  ;;  %v6403_v35 = vld [vmem:[#allocation8 + $0x108] sm:$0xf] }
  0x7a   :  { %v9189_v59 = vld [vmem:[#allocation8 + $0x21c] sm:$0xf0]  ;;  %v6272_v24 = vor.u32 %v9121_v22, %v6269_v23  ;;  %v9249_v37 = vld [vmem:[#allocation8 + $0x404] sm:$0xf]  ;;  %v6468_v22 = vor.u32 %v9174_v16, %v6467_v15  ;;  %v9294_v41 = vld [vmem:[#allocation8 + $0x564] sm:$0xf0] }
  0x7b   :  { %2132 = vmatpush.bf16.msrb.mxu0 %v6976_v33  ;;  %2072 = vmatpush.bf16.msra.mxu1 %v6556_v51  ;;  %v6524_v61 = vor.u32 %v9189_v59, %v6523_v58  ;;  %v7136_v33 = vor.u32 %v9337_v31, %v7133_v32  ;;  %v6621_v44 = vld [vmem:[#allocation8 + $0x2e0] sm:$0xf0] }
  0x7c   :  { %v7069_v48 = vld [vmem:[#allocation8 + $0x660] sm:$0xf0] }
  0x7d   :  { %2107 = vmatpush.bf16.msrb.mxu2 %v6432_v25  ;;  %2144 = vmatpush.bf16.msrb.mxu3 %v7264_v47  ;;  %v9225_v25 = vld [vmem:[#allocation8 + $0x344] sm:$0xf] }
  0x7e   :  { %v6688_v28 = vor.u32 %v9225_v25, %v6685_v26  ;;  %v9321_v47 = vld [vmem:[#allocation8 + $0x644] sm:$0xf]  ;;  %v9166_v25 = vld [vmem:[#allocation8 + $0x164] sm:$0xf0]  ;;  %v7012_v26 = vor.u32 %v9310_v20, %v7011_v19 }
  0x7f   :  { %2133 = vmatpush.bf16.msrb.mxu0 %v6944_v43  ;;  %2073 = vmatpush.bf16.msra.mxu1 %v6524_v61  ;;  %v9209_v43 = vld [vmem:[#allocation8 + $0x2c4] sm:$0xf]  ;;  %v7072_v49 = vor.u32 %v9321_v47, %v7069_v48  ;;  %v10143_v61 = vld [vmem:[#allocation7] sm:$0xf]  ;;  %v6371_v47 = vld [vmem:[#allocation8 + $0xc8] sm:$0xf] }
  0x80   :  { %v6624_v46 = vor.u32 %v9209_v43, %v6621_v44  ;;  %v9201_v50 = vld [vmem:[#allocation8 + $0x284] sm:$0xf]  ;;  %v9374_v43 = vld [vmem:[#allocation8 + $0x7e4] sm:$0xf0]  ;;  %v176_v44 = vperm.slane %v10143_v61, 1 }
  0x81   :  { %2108 = vmatpush.bf16.msrb.mxu2 %v6400_v38  ;;  %2145 = vmatpush.bf16.msrb.mxu3 %v7232_v60  ;;  %v6781_v38 = vld [vmem:[#allocation8 + $0x420] sm:$0xf0]  ;;  %v9150_v48 = vld [vmem:[#allocation8 + $0xe4] sm:$0xf0] }
  0x82   :  { %v6784_v39 = vor.u32 %v9249_v37, %v6781_v38  ;;  %v6589_v51 = vld [vmem:[#allocation8 + $0x2a0] sm:$0xf0]  ;;  %v6851_v19 = vld [vmem:[#allocation8 + $0x488] sm:$0xf] }
  0x83   :  { %2134 = vmatpush.bf16.msrb.mxu0 %v6912_v56  ;;  %2118 = vmatpush.bf16.msrb.mxu1 %v6752_v5  ;;  %v9313_v54 = vld [vmem:[#allocation8 + $0x604] sm:$0xf]  ;;  %v9270_v20 = vld [vmem:[#allocation8 + $0x4a4] sm:$0xf0] }
  0x84   :  { %v7037_v55 = vld [vmem:[#allocation8 + $0x620] sm:$0xf0] }
  0x85   :  { %2109 = vmatpush.bf16.msrb.mxu2 %v6368_v52  ;;  %2146 = vmatpush.bf16.msrb.mxu3 %v7200_v9  ;;  %v6592_v52 = vor.u32 %v9201_v50, %v6589_v51  ;;  %v7040_v56 = vor.u32 %v9313_v54, %v7037_v55  ;;  %v9193_v57 = vld [vmem:[#allocation8 + $0x244] sm:$0xf]  ;;  %v6915_v51 = vld [vmem:[#allocation8 + $0x508] sm:$0xf] }
  0x86   :  { %v6557_v58 = vld [vmem:[#allocation8 + $0x260] sm:$0xf0]  ;;  %v9286_v54 = vld [vmem:[#allocation8 + $0x524] sm:$0xf0] }
  0x87   :  { %2135 = vmatpush.bf16.msrb.mxu0 %v6880_v6  ;;  %2119 = vmatpush.bf16.msrb.mxu1 %v6720_v17  ;;  %v6560_v60 = vor.u32 %v9193_v57, %v6557_v58  ;;  %v9185_v62 = vld [vmem:[#allocation8 + $0x204] sm:$0xf]  ;;  %v177_v6 = vperm.slane %v10143_v61, 2  ;;  %v7235_v55 = vld [vmem:[#allocation8 + $0x788] sm:$0xf]  ;;  %v6372_v58 = vor.u32 %v9150_v48, %v6371_v47 }
  0x88   :  { %v6525_v63 = vld [vmem:[#allocation8 + $0x220] sm:$0xf0]  ;;  %v6787_v48 = vld [vmem:[#allocation8 + $0x408] sm:$0xf] }
  0x89   :  { %2110 = vmatpush.bf16.msrb.mxu2 %v6336_v2  ;;  %2147 = vmatpush.bf16.msrb.mxu3 %v7168_v21  ;;  %v6528_v1 = vor.u32 %v9185_v62, %v6525_v63  ;;  %v175_v2 = vperm.slane %v10143_v61, 0  ;;  %v178_v21 = vperm.slane %v10143_v61, 3  ;;  %v9142_v61 = vld [vmem:[#allocation8 + $0xa4] sm:$0xf0] }
  0x8b   :  { %2136 = vmatpush.bf16.msrb.mxu0 %v6848_v18  ;;  %2120 = vmatpush.bf16.msrb.mxu1 %v6688_v28 }
  0x8d   :  { %2111 = vmatpush.bf16.msrb.mxu2 %v6304_v13  ;;  %2148 = vmatpush.bf16.msrb.mxu3 %v7136_v33 }
  0x8f   :  { %2137 = vmatpush.bf16.msrb.mxu0 %v6816_v30  ;;  %2121 = vmatpush.bf16.msrb.mxu1 %v6656_v36  ;;  %v9302_v30 = vld [vmem:[#allocation8 + $0x5a4] sm:$0xf0] }
  0x90   :  { %v9158_v36 = vld [vmem:[#allocation8 + $0x124] sm:$0xf0]  ;;  %v6980_v38 = vor.u32 %v9302_v30, %v6979_v29  ;;  %v6852_v30 = vor.u32 %v9270_v20, %v6851_v19  ;;  %v9370_v19 = vld [vmem:[#allocation8 + $0x7cc] sm:$0xf] }
  0x91   :  { %2112 = vmatpush.bf16.msrb.mxu2 %v6272_v24  ;;  %2149 = vmatpush.bf16.msrb.mxu3 %v7104_v42  ;;  %v6435_v24 = vld [vmem:[#allocation8 + $0x148] sm:$0xf]  ;;  %v7269_v20 = vld [vmem:[#allocation8 + $0x7e8] sm:$0xf0] }
  0x92   :  { %v6436_v32 = vor.u32 %v9166_v25, %v6435_v24  ;;  %v7267_v42 = vld [vmem:[#allocation8 + $0x7c8] sm:$0xf] }
  0x93   :  { %2138 = vmatpush.bf16.msrb.mxu0 %v6784_v39  ;;  %2122 = vmatpush.bf16.msrb.mxu1 %v6624_v46  ;;  %v6947_v39 = vld [vmem:[#allocation8 + $0x548] sm:$0xf]  ;;  %v7268_v50 = vor.u32 %v9374_v43, %v7267_v42 }
  0x94   :  { %v6691_v29 = vld [vmem:[#allocation8 + $0x348] sm:$0xf] }
  0x95   :  { %2150 = vmatpush.bf16.msrb.mxu3 %v7072_v49  ;;  %v6948_v49 = vor.u32 %v9294_v41, %v6947_v39  ;;  %v9342_v39 = vld [vmem:[#allocation8 + $0x6e4] sm:$0xf0] }
  0x96   :  { %v6659_v42 = vld [vmem:[#allocation8 + $0x308] sm:$0xf] }
  0x97   :  { %2123 = vmatpush.bf16.msrb.mxu1 %v6592_v52 }
  0x99   :  { %2151 = vmatpush.bf16.msrb.mxu3 %v7040_v56  ;;  %v9366_v56 = vld [vmem:[#allocation8 + $0x7a4] sm:$0xf0] }
  0x9b   :  { %2124 = vmatpush.bf16.msrb.mxu1 %v6560_v60  ;;  %v6339_v60 = vld [vmem:[#allocation8 + $0x88] sm:$0xf] }
  0x9f   :  { %2125 = vmatpush.bf16.msrb.mxu1 %v6528_v1  ;;  %v6916_v1 = vor.u32 %v9286_v54, %v6915_v51  ;;  %v9334_v51 = vld [vmem:[#allocation8 + $0x6a4] sm:$0xf0]  ;;  %v7013_v54 = vld [vmem:[#allocation8 + $0x5e8] sm:$0xf0] }
  0xaf   :  { %v409_v45 = vpop.f32.mrf.mxu1 }
  0xb5   :  { %v461_v53 = vpop.f32.mrf.mxu3 }
  0xb7   :  { %v411_v59 = vpop.f32.mrf.mxu1 }
  0xbd   :  { %v463_v3 = vpop.f32.mrf.mxu3 }
  0xbe   :  { %v6755_v3 = vld [vmem:[#allocation8 + $0x3c8] sm:$0xf] }
  0xbf   :  { %v396_v4 = vpop.f32.mrf.mxu0 }
  0xc0   :  { %v397_v0 = vadd.f32 %v396_v4, %v175_v2  ;;  %v7236_v2 = vor.u32 %v9366_v56, %v7235_v55  ;;  %v9246_v4 = vld [vmem:[#allocation8 + $0x3e4] sm:$0xf0] }
  0xc2   :  { %v410_v5 = vadd.f32 %v409_v45, %v397_v0  ;;  %v6404_v45 = vor.u32 %v9158_v36, %v6403_v35  ;;  %v6883_v0 = vld [vmem:[#allocation8 + $0x4c8] sm:$0xf] }
  0xc3   :  { %v6819_v35 = vld [vmem:[#allocation8 + $0x448] sm:$0xf] }
  0xc4   :  { %v491_v9 = vmax.f32 %v410_v5, 0.0  ;;  %v9278_v5 = vld [vmem:[#allocation8 + $0x4e4] sm:$0xf0] }
  0xc5   :  { %v6884_v15 = vor.u32 %v9278_v5, %v6883_v0  ;;  %v9262_v36 = vld [vmem:[#allocation8 + $0x464] sm:$0xf0] }
  0xc6   :  { %v10147_v12 = vpack.c.bf16 %v491_v9, %v491_v9  ;;  %v6340_v9 = vor.u32 %v9142_v61, %v6339_v60  ;;  %v6820_v43 = vor.u32 %v9262_v36, %v6819_v35  ;;  %v6531_v36 = vld [vmem:[#allocation8 + $0x208] sm:$0xf] }
  0xc7   :  { %v422_v14 = vpop.f32.mrf.mxu2  ;;  %v398_v17 = vpop.f32.mrf.mxu0 }
  0xc8   :  { %v448_v10 = vpop.f32.mrf.mxu1  ;;  %2061 = vmatmul.bf16.vlgmr.msra.gmra.mxu2 %v10147_v12  ;;  %v423_v57 = vadd.f32 %v422_v14, %v176_v44  ;;  %v6723_v17 = vld [vmem:[#allocation8 + $0x388] sm:$0xf] }
  0xc9   :  { %v449_v13 = vadd.f32 %v448_v10, %v177_v6  ;;  %2157 = vmatpush.bf16.msra.mxu2 %v6500_v11  ;;  %v7203_v6 = vld [vmem:[#allocation8 + $0x748] sm:$0xf]  ;;  %v6756_v10 = vor.u32 %v9246_v4, %v6755_v3  ;;  %v9298_v3 = vld [vmem:[#allocation8 + $0x58c] sm:$0xf] }
  0xca   :  { %v6307_v11 = vld [vmem:[#allocation8 + $0x48] sm:$0xf]  ;;  %v7204_v16 = vor.u32 %v9358_v7, %v7203_v6  ;;  %v6981_v4 = vld [vmem:[#allocation8 + $0x5a8] sm:$0xf0] }
  0xcb   :  { %v462_v18 = vadd.f32 %v461_v53, %v449_v13  ;;  %v9134_v13 = vld [vmem:[#allocation8 + $0x64] sm:$0xf0] }
  0xcc   :  { %v9222_v44 = vld [vmem:[#allocation8 + $0x324] sm:$0xf0] }
  0xcd   :  { %v493_v23 = vmax.f32 %v462_v18, 0.0  ;;  %2158 = vmatpush.bf16.msra.mxu2 %v6468_v22  ;;  %v9238_v18 = vld [vmem:[#allocation8 + $0x3a4] sm:$0xf0]  ;;  %v6660_v55 = vor.u32 %v9222_v44, %v6659_v42  ;;  %v6757_v42 = vld [vmem:[#allocation8 + $0x3e8] sm:$0xf0] }
  0xce   :  { %v9350_v22 = vld [vmem:[#allocation8 + $0x724] sm:$0xf0]  ;;  %v6724_v25 = vor.u32 %v9238_v18, %v6723_v17  ;;  %v6949_v17 = vld [vmem:[#allocation8 + $0x568] sm:$0xf0] }
  0xcf   :  { %v10151_v27 = vpack.c.bf16 %v493_v23, %v493_v23  ;;  %v474_v28 = vpop.f32.mrf.mxu3  ;;  %v424_v34 = vpop.f32.mrf.mxu2  ;;  %v6308_v23 = vor.u32 %v9134_v13, %v6307_v11  ;;  %v6595_v6 = vld [vmem:[#allocation8 + $0x288] sm:$0xf]  ;;  %v6405_v11 = vld [vmem:[#allocation8 + $0x128] sm:$0xf0] }
  0xd0   :  { %v475_v31 = vadd.f32 %v474_v28, %v178_v21  ;;  %v450_v33 = vpop.f32.mrf.mxu1  ;;  %v487_v37 = vpop.f32.mrf.mxu0  ;;  %v7171_v21 = vld [vmem:[#allocation8 + $0x708] sm:$0xf]  ;;  %v6501_v34 = vld [vmem:[#allocation8 + $0x1e8] sm:$0xf0] }
  0xd1   :  { %2087 = vmatmul.bf16.vlgmr.msra.gmra.mxu0 %v10151_v27  ;;  %2159 = vmatpush.bf16.msra.mxu2 %v6436_v32  ;;  %v9126_v28 = vld [vmem:[#allocation8 + $0x24] sm:$0xf0]  ;;  %v9178_v33 = vld [vmem:[#allocation8 + $0x1cc] sm:$0xf] }
  0xd2   :  { %2183 = vmatpush.bf16.msra.mxu0 %v7012_v26  ;;  %v488_v40 = vadd.f32 %v487_v37, %v475_v31  ;;  %v6275_v26 = vld [vmem:[#allocation8 + $0x8] sm:$0xf]  ;;  %v7172_v31 = vor.u32 %v9350_v22, %v7171_v21  ;;  %v6504_v41 = vor.u32 %v9178_v33, %v6501_v34  ;;  %v9362_v33 = vld [vmem:[#allocation8 + $0x78c] sm:$0xf] }
  0xd3   :  { %v9230_v32 = vld [vmem:[#allocation8 + $0x364] sm:$0xf0]  ;;  %v6276_v37 = vor.u32 %v9126_v28, %v6275_v26  ;;  %v9146_v26 = vld [vmem:[#allocation8 + $0xcc] sm:$0xf] }
  0xd4   :  { %v494_v46 = vmax.f32 %v488_v40, 0.0  ;;  %v6692_v40 = vor.u32 %v9230_v32, %v6691_v29  ;;  %v9206_v7 = vld [vmem:[#allocation8 + $0x2a4] sm:$0xf0]  ;;  %v6373_v28 = vld [vmem:[#allocation8 + $0xe8] sm:$0xf0]  ;;  %v7272_v29 = vor.u32 %v9370_v19, %v7269_v20 }
  0xd5   :  { %2160 = vmatpush.bf16.msra.mxu2 %v6404_v45  ;;  %v9170_v45 = vld [vmem:[#allocation8 + $0x18c] sm:$0xf]  ;;  %v7043_v13 = vld [vmem:[#allocation8 + $0x608] sm:$0xf]  ;;  %v6596_v18 = vor.u32 %v9206_v7, %v6595_v6  ;;  %v6376_v35 = vor.u32 %v9146_v26, %v6373_v28  ;;  %v7019_v28 = vld [vmem:[#allocation8 + $0x5d0] sm:$0xf] }
  0xd6   :  { %2184 = vmatpush.bf16.msra.mxu0 %v6980_v38  ;;  %v10155_v52 = vpack.c.bf16 %v494_v46, %v494_v46  ;;  %v7139_v38 = vld [vmem:[#allocation8 + $0x6c8] sm:$0xf]  ;;  %v6469_v46 = vld [vmem:[#allocation8 + $0x1a8] sm:$0xf0] }
  0xd7   :  { %v476_v53 = vpop.f32.mrf.mxu3  ;;  %v435_v59 = vpop.f32.mrf.mxu2  ;;  %v7140_v47 = vor.u32 %v9342_v39, %v7139_v38  ;;  %v6472_v56 = vor.u32 %v9170_v45, %v6469_v46  ;;  %v6563_v22 = vld [vmem:[#allocation8 + $0x248] sm:$0xf]  ;;  %v7237_v34 = vld [vmem:[#allocation8 + $0x7a8] sm:$0xf0] }
  0xd8   :  { %2100 = vmatmul.bf16.vlgmr.msra.gmra.mxu3 %v10155_v52  ;;  %v436_v62 = vadd.f32 %v435_v59, %v423_v57  ;;  %v489_v63 = vpop.f32.mrf.mxu0  ;;  %2113 = vmatmul.bf16.vlgmr.msrb.gmra.mxu2 %v10147_v12  ;;  %v9306_v53 = vld [vmem:[#allocation8 + $0x5cc] sm:$0xf]  ;;  %v9214_v59 = vld [vmem:[#allocation8 + $0x2e4] sm:$0xf0] }
  0xd9   :  { %2196 = vmatpush.bf16.msra.mxu3 %v7268_v50  ;;  %2161 = vmatpush.bf16.msra.mxu2 %v6372_v58  ;;  %v7107_v50 = vld [vmem:[#allocation8 + $0x688] sm:$0xf]  ;;  %v7016_v61 = vor.u32 %v9306_v53, %v7013_v54  ;;  %v6437_v63 = vld [vmem:[#allocation8 + $0x168] sm:$0xf0] }
  0xda   :  { %2185 = vmatpush.bf16.msra.mxu0 %v6948_v49  ;;  %v492_v8 = vmax.f32 %v436_v62, 0.0  ;;  %v9254_v49 = vld [vmem:[#allocation8 + $0x424] sm:$0xf0]  ;;  %v7108_v60 = vor.u32 %v9334_v51, %v7107_v50  ;;  %v9162_v62 = vld [vmem:[#allocation8 + $0x14c] sm:$0xf] }
  0xdb   :  { %v6788_v57 = vor.u32 %v9254_v49, %v6787_v48  ;;  %v6627_v58 = vld [vmem:[#allocation8 + $0x2c8] sm:$0xf]  ;;  %v6440_v5 = vor.u32 %v9162_v62, %v6437_v63  ;;  %v9138_v38 = vld [vmem:[#allocation8 + $0x8c] sm:$0xf] }
  0xdc   :  { %v10159_v14 = vpack.c.bf16 %v492_v8, %v492_v8  ;;  %v6628_v0 = vor.u32 %v9214_v59, %v6627_v58  ;;  %v9274_v44 = vld [vmem:[#allocation8 + $0x4cc] sm:$0xf] }
  0xdd   :  { %2197 = vmatpush.bf16.msra.mxu3 %v7236_v2  ;;  %2162 = vmatpush.bf16.msra.mxu2 %v6340_v9  ;;  %v9326_v2 = vld [vmem:[#allocation8 + $0x664] sm:$0xf0]  ;;  %v6984_v9 = vor.u32 %v9298_v3, %v6981_v4  ;;  %v6885_v45 = vld [vmem:[#allocation8 + $0x4e8] sm:$0xf0] }
  0xde   :  { %2186 = vmatpush.bf16.msra.mxu0 %v6916_v1  ;;  %2074 = vmatmul.bf16.vlgmr.msra.gmra.mxu1 %v10159_v14  ;;  %v7075_v1 = vld [vmem:[#allocation8 + $0x648] sm:$0xf]  ;;  %v7205_v48 = vld [vmem:[#allocation8 + $0x768] sm:$0xf0]  ;;  %v6888_v53 = vor.u32 %v9274_v44, %v6885_v45 }
  0xdf   :  { %2170 = vmatpush.bf16.msra.mxu1 %v6756_v10  ;;  %v437_v24 = vpop.f32.mrf.mxu2  ;;  %v7076_v8 = vor.u32 %v9326_v2, %v7075_v1  ;;  %v9154_v10 = vld [vmem:[#allocation8 + $0x10c] sm:$0xf] }
  0xe0   :  { %v6408_v21 = vor.u32 %v9154_v10, %v6405_v11  ;;  %v9130_v51 = vld [vmem:[#allocation8 + $0x4c] sm:$0xf] }
  0xe1   :  { %2139 = vmatmul.bf16.vlgmr.msrb.gmra.mxu0 %v10151_v27  ;;  %2198 = vmatpush.bf16.msra.mxu3 %v7204_v16  ;;  %v9290_v16 = vld [vmem:[#allocation8 + $0x54c] sm:$0xf] }
  0xe2   :  { %2187 = vmatpush.bf16.msra.mxu0 %v6884_v15  ;;  %2163 = vmatpush.bf16.msra.mxu2 %v6308_v23  ;;  %v9318_v15 = vld [vmem:[#allocation8 + $0x624] sm:$0xf0]  ;;  %v6309_v54 = vld [vmem:[#allocation8 + $0x68] sm:$0xf0] }
  0xe3   :  { %2171 = vmatpush.bf16.msra.mxu1 %v6724_v25  ;;  %v9198_v23 = vld [vmem:[#allocation8 + $0x264] sm:$0xf0]  ;;  %v7044_v24 = vor.u32 %v9318_v15, %v7043_v13  ;;  %v6952_v25 = vor.u32 %v9290_v16, %v6949_v17  ;;  %v9266_v58 = vld [vmem:[#allocation8 + $0x48c] sm:$0xf]  ;;  %v6312_v62 = vor.u32 %v9130_v51, %v6309_v54  ;;  %v6955_v54 = vld [vmem:[#allocation8 + $0x550] sm:$0xf] }
  0xe4   :  { %v6564_v32 = vor.u32 %v9198_v23, %v6563_v22  ;;  %v6853_v59 = vld [vmem:[#allocation8 + $0x4a8] sm:$0xf0]  ;;  %v6475_v23 = vld [vmem:[#allocation8 + $0x190] sm:$0xf] }
  0xe5   :  { %2199 = vmatpush.bf16.msra.mxu3 %v7172_v31  ;;  %v6917_v31 = vld [vmem:[#allocation8 + $0x528] sm:$0xf0]  ;;  %v6856_v3 = vor.u32 %v9266_v58, %v6853_v59  ;;  %v9375_v58 = vld [vmem:[#allocation8 + $0x7ec] sm:$0xf0] }
  0xe6   :  { %2188 = vmatpush.bf16.msra.mxu0 %v6852_v30  ;;  %2164 = vmatpush.bf16.msra.mxu2 %v6276_v37  ;;  %v9282_v30 = vld [vmem:[#allocation8 + $0x50c] sm:$0xf]  ;;  %v9190_v37 = vld [vmem:[#allocation8 + $0x224] sm:$0xf0] }
  0xe7   :  { %2172 = vmatpush.bf16.msra.mxu1 %v6692_v40  ;;  %v6920_v39 = vor.u32 %v9282_v30, %v6917_v31  ;;  %v6341_v40 = vld [vmem:[#allocation8 + $0xa8] sm:$0xf0]  ;;  %v6532_v46 = vor.u32 %v9190_v37, %v6531_v36  ;;  %v6443_v37 = vld [vmem:[#allocation8 + $0x150] sm:$0xf] }
  0xe8   :  { %2152 = vmatmul.bf16.vlgmr.msrb.gmra.mxu3 %v10155_v52  ;;  %v6344_v49 = vor.u32 %v9138_v38, %v6341_v40  ;;  %v9122_v1 = vld [vmem:[#allocation8 + $0xc] sm:$0xf]  ;;  %v9167_v38 = vld [vmem:[#allocation8 + $0x16c] sm:$0xf0] }
  0xe9   :  { %2200 = vmatpush.bf16.msra.mxu3 %v7140_v47  ;;  %2165 = vmatmul.bf16.vlgmr.msra.gmra.mxu2 %v10147_v12  ;;  %v9354_v47 = vld [vmem:[#allocation8 + $0x74c] sm:$0xf]  ;;  %v6444_v44 = vor.u32 %v9167_v38, %v6443_v37 }
  0xea   :  { %2209 = vmatpush.bf16.msrb.mxu2 %v6504_v41  ;;  %2189 = vmatpush.bf16.msra.mxu0 %v6820_v43  ;;  %v9242_v41 = vld [vmem:[#allocation8 + $0x3cc] sm:$0xf]  ;;  %v7240_v43 = vor.u32 %v9362_v33, %v7237_v34 }
  0xeb   :  { %2173 = vmatpush.bf16.msra.mxu1 %v6660_v55  ;;  %v6760_v50 = vor.u32 %v9242_v41, %v6757_v42  ;;  %v9234_v55 = vld [vmem:[#allocation8 + $0x38c] sm:$0xf]  ;;  %v6987_v41 = vld [vmem:[#allocation8 + $0x590] sm:$0xf] }
  0xec   :  { %v6277_v2 = vld [vmem:[#allocation8 + $0x28] sm:$0xf0]  ;;  %v9303_v42 = vld [vmem:[#allocation8 + $0x5ac] sm:$0xf0] }
  0xed   :  { %2201 = vmatpush.bf16.msra.mxu3 %v7108_v60  ;;  %v9346_v60 = vld [vmem:[#allocation8 + $0x70c] sm:$0xf]  ;;  %v6280_v13 = vor.u32 %v9122_v1, %v6277_v2  ;;  %v6379_v1 = vld [vmem:[#allocation8 + $0xd0] sm:$0xf] }
  0xee   :  { %2210 = vmatpush.bf16.msrb.mxu2 %v6472_v56  ;;  %2190 = vmatpush.bf16.msra.mxu0 %v6788_v57  ;;  %v6725_v56 = vld [vmem:[#allocation8 + $0x3a8] sm:$0xf0]  ;;  %v7208_v57 = vor.u32 %v9354_v47, %v7205_v48  ;;  %v6988_v48 = vor.u32 %v9303_v42, %v6987_v41  ;;  %v9151_v2 = vld [vmem:[#allocation8 + $0xec] sm:$0xf0] }
  0xef   :  { %2126 = vmatmul.bf16.vlgmr.msrb.gmra.mxu1 %v10159_v14  ;;  %v6728_v63 = vor.u32 %v9234_v55, %v6725_v56  ;;  %v9226_v4 = vld [vmem:[#allocation8 + $0x34c] sm:$0xf]  ;;  %v9295_v55 = vld [vmem:[#allocation8 + $0x56c] sm:$0xf0] }
  0xf0   :  { %2174 = vmatpush.bf16.msra.mxu1 %v6628_v0  ;;  %v6693_v0 = vld [vmem:[#allocation8 + $0x368] sm:$0xf0]  ;;  %v6699_v42 = vld [vmem:[#allocation8 + $0x350] sm:$0xf] }
  0xf1   :  { %2191 = vmatmul.bf16.vlgmr.msra.gmra.mxu0 %v10151_v27  ;;  %2202 = vmatpush.bf16.msra.mxu3 %v7076_v8  ;;  %v6821_v7 = vld [vmem:[#allocation8 + $0x468] sm:$0xf0]  ;;  %v6507_v8 = vld [vmem:[#allocation8 + $0x1d0] sm:$0xf]  ;;  %v6696_v15 = vor.u32 %v9226_v4, %v6693_v0 }
  0xf2   :  { %2235 = vmatpush.bf16.msrb.mxu0 %v7016_v61  ;;  %2211 = vmatpush.bf16.msrb.mxu2 %v6440_v5  ;;  %v7173_v61 = vld [vmem:[#allocation8 + $0x728] sm:$0xf0]  ;;  %v6923_v4 = vld [vmem:[#allocation8 + $0x510] sm:$0xf] }
  0xf3   :  { %v9258_v5 = vld [vmem:[#allocation8 + $0x44c] sm:$0xf]  ;;  %v7176_v6 = vor.u32 %v9346_v60, %v7173_v61  ;;  %v9287_v0 = vld [vmem:[#allocation8 + $0x52c] sm:$0xf0] }
  0xf4   :  { %2175 = vmatpush.bf16.msra.mxu1 %v6596_v18  ;;  %v9338_v10 = vld [vmem:[#allocation8 + $0x6cc] sm:$0xf]  ;;  %v6824_v17 = vor.u32 %v9258_v5, %v6821_v7  ;;  %v9367_v7 = vld [vmem:[#allocation8 + $0x7ac] sm:$0xf0] }
  0xf5   :  { %2203 = vmatpush.bf16.msra.mxu3 %v7044_v24  ;;  %v7141_v11 = vld [vmem:[#allocation8 + $0x6e8] sm:$0xf0]  ;;  %v9175_v24 = vld [vmem:[#allocation8 + $0x1ac] sm:$0xf0] }
  0xf6   :  { %2236 = vmatpush.bf16.msrb.mxu0 %v6984_v9  ;;  %2212 = vmatpush.bf16.msrb.mxu2 %v6408_v21  ;;  %v9183_v9 = vld [vmem:[#allocation8 + $0x1ec] sm:$0xf0]  ;;  %v9218_v16 = vld [vmem:[#allocation8 + $0x30c] sm:$0xf]  ;;  %v7144_v22 = vor.u32 %v9338_v10, %v7141_v11 }
  0xf7   :  { %v6508_v18 = vor.u32 %v9183_v9, %v6507_v8  ;;  %v6661_v19 = vld [vmem:[#allocation8 + $0x328] sm:$0xf0]  ;;  %v6380_v8 = vor.u32 %v9151_v2, %v6379_v1  ;;  %v6347_v11 = vld [vmem:[#allocation8 + $0x90] sm:$0xf]  ;;  %v9307_v2 = vld [vmem:[#allocation8 + $0x5d4] sm:$0xf] }
  0xf8   :  { %2176 = vmatpush.bf16.msra.mxu1 %v6564_v32  ;;  %2204 = vmatmul.bf16.vlgmr.msra.gmra.mxu3 %v10155_v52  ;;  %v9250_v20 = vld [vmem:[#allocation8 + $0x40c] sm:$0xf]  ;;  %v6664_v30 = vor.u32 %v9218_v16, %v6661_v19  ;;  %v6476_v32 = vor.u32 %v9175_v24, %v6475_v23  ;;  %v6763_v16 = vld [vmem:[#allocation8 + $0x3d0] sm:$0xf] }
  0xf9   :  { %2248 = vmatpush.bf16.msrb.mxu3 %v7272_v29  ;;  %v6789_v21 = vld [vmem:[#allocation8 + $0x428] sm:$0xf0]  ;;  %v9311_v29 = vld [vmem:[#allocation8 + $0x5ec] sm:$0xf0] }
  0xfa   :  { %2237 = vmatpush.bf16.msrb.mxu0 %v6952_v25  ;;  %2213 = vmatpush.bf16.msrb.mxu2 %v6376_v35  ;;  %v9330_v25 = vld [vmem:[#allocation8 + $0x68c] sm:$0xf]  ;;  %v6792_v31 = vor.u32 %v9250_v20, %v6789_v21  ;;  %v7020_v36 = vor.u32 %v9311_v29, %v7019_v28  ;;  %v6891_v19 = vld [vmem:[#allocation8 + $0x4d0] sm:$0xf] }
  0xfb   :  { %v7109_v26 = vld [vmem:[#allocation8 + $0x6a8] sm:$0xf0]  ;;  %v9279_v20 = vld [vmem:[#allocation8 + $0x4ec] sm:$0xf0] }
  0xfc   :  { %2177 = vmatpush.bf16.msra.mxu1 %v6532_v46  ;;  %v9210_v33 = vld [vmem:[#allocation8 + $0x2cc] sm:$0xf]  ;;  %v7112_v35 = vor.u32 %v9330_v25, %v7109_v26  ;;  %v9359_v23 = vld [vmem:[#allocation8 + $0x76c] sm:$0xf0]  ;;  %v6892_v28 = vor.u32 %v9279_v20, %v6891_v19 }
  0xfd   :  { %2249 = vmatpush.bf16.msrb.mxu3 %v7240_v43  ;;  %v6629_v34 = vld [vmem:[#allocation8 + $0x2e8] sm:$0xf0]  ;;  %v6315_v26 = vld [vmem:[#allocation8 + $0x50] sm:$0xf] }
  0xfe   :  { %2238 = vmatpush.bf16.msrb.mxu0 %v6920_v39  ;;  %2214 = vmatpush.bf16.msrb.mxu2 %v6344_v49  ;;  %v9322_v39 = vld [vmem:[#allocation8 + $0x64c] sm:$0xf]  ;;  %v6632_v43 = vor.u32 %v9210_v33, %v6629_v34  ;;  %v6411_v49 = vld [vmem:[#allocation8 + $0x110] sm:$0xf] }
  0xff   :  { %2178 = vmatmul.bf16.vlgmr.msra.gmra.mxu1 %v10159_v14  ;;  %v7077_v40 = vld [vmem:[#allocation8 + $0x668] sm:$0xf0]  ;;  %v9135_v29 = vld [vmem:[#allocation8 + $0x6c] sm:$0xf0] }
 0x100   :  { %2222 = vmatpush.bf16.msrb.mxu1 %v6760_v50  ;;  %v9202_v45 = vld [vmem:[#allocation8 + $0x28c] sm:$0xf]  ;;  %v7080_v47 = vor.u32 %v9322_v39, %v7077_v40  ;;  %v9159_v50 = vld [vmem:[#allocation8 + $0x12c] sm:$0xf0]  ;;  %v6316_v37 = vor.u32 %v9135_v29, %v6315_v26  ;;  %v9291_v29 = vld [vmem:[#allocation8 + $0x554] sm:$0xf] }
 0x101   :  { %2250 = vmatpush.bf16.msrb.mxu3 %v7208_v57  ;;  %v6597_v46 = vld [vmem:[#allocation8 + $0x2a8] sm:$0xf0]  ;;  %v7275_v57 = vld [vmem:[#allocation8 + $0x7d0] sm:$0xf]  ;;  %v6412_v59 = vor.u32 %v9159_v50, %v6411_v49 }
 0x102   :  { %2239 = vmatpush.bf16.msrb.mxu0 %v6888_v53  ;;  %2215 = vmatpush.bf16.msrb.mxu2 %v6312_v62  ;;  %v9314_v51 = vld [vmem:[#allocation8 + $0x60c] sm:$0xf]  ;;  %v6600_v56 = vor.u32 %v9202_v45, %v6597_v46  ;;  %v6859_v33 = vld [vmem:[#allocation8 + $0x490] sm:$0xf] }
 0x103   :  { %v7045_v53 = vld [vmem:[#allocation8 + $0x628] sm:$0xf0]  ;;  %v9271_v34 = vld [vmem:[#allocation8 + $0x4ac] sm:$0xf0] }
 0x104   :  { %2223 = vmatpush.bf16.msrb.mxu1 %v6728_v63  ;;  %v9194_v60 = vld [vmem:[#allocation8 + $0x24c] sm:$0xf]  ;;  %v7048_v62 = vor.u32 %v9314_v51, %v7045_v53  ;;  %v6956_v63 = vor.u32 %v9295_v55, %v6955_v54  ;;  %v6283_v39 = vld [vmem:[#allocation8 + $0x10] sm:$0xf]  ;;  %v6860_v41 = vor.u32 %v9271_v34, %v6859_v33  ;;  %v7277_v33 = vld [vmem:[#allocation8 + $0x7f0] sm:$0xf0] }
 0x105   :  { %2251 = vmatpush.bf16.msrb.mxu3 %v7176_v6  ;;  %v6565_v61 = vld [vmem:[#allocation8 + $0x268] sm:$0xf0]  ;;  %v7243_v6 = vld [vmem:[#allocation8 + $0x790] sm:$0xf] }
 0x106   :  { %2240 = vmatpush.bf16.msrb.mxu0 %v6856_v3  ;;  %2216 = vmatpush.bf16.msrb.mxu2 %v6280_v13  ;;  %v7276_v3 = vor.u32 %v9375_v58, %v7275_v57  ;;  %v6568_v5 = vor.u32 %v9194_v60, %v6565_v61  ;;  %v9186_v9 = vld [vmem:[#allocation8 + $0x20c] sm:$0xf]  ;;  %v6924_v13 = vor.u32 %v9287_v0, %v6923_v4  ;;  %v9127_v40 = vld [vmem:[#allocation8 + $0x2c] sm:$0xf0]  ;;  %v9171_v61 = vld [vmem:[#allocation8 + $0x194] sm:$0xf] }
 0x107   :  { %v6533_v10 = vld [vmem:[#allocation8 + $0x228] sm:$0xf0]  ;;  %v9263_v46 = vld [vmem:[#allocation8 + $0x46c] sm:$0xf0]  ;;  %v6284_v51 = vor.u32 %v9127_v40, %v6283_v39  ;;  %v9147_v39 = vld [vmem:[#allocation8 + $0xd4] sm:$0xf] }
 0x108   :  { %2224 = vmatpush.bf16.msrb.mxu1 %v6696_v15  ;;  %v9143_v15 = vld [vmem:[#allocation8 + $0xac] sm:$0xf0]  ;;  %v6536_v21 = vor.u32 %v9186_v9, %v6533_v10  ;;  %v9163_v10 = vld [vmem:[#allocation8 + $0x154] sm:$0xf] }
 0x109   :  { %2252 = vmatpush.bf16.msrb.mxu3 %v7144_v22  ;;  %2217 = vmatmul.bf16.vlgmr.msrb.gmra.mxu2 %v10147_v12  ;;  %v7211_v22 = vld [vmem:[#allocation8 + $0x750] sm:$0xf]  ;;  %v6348_v24 = vor.u32 %v9143_v15, %v6347_v11  ;;  %v6445_v11 = vld [vmem:[#allocation8 + $0x170] sm:$0xf0] }
 0x10a   :  { %2241 = vmatpush.bf16.msrb.mxu0 %v6824_v17  ;;  %2261 = vmatpush.bf16.msra.mxu2 %v6508_v18  ;;  %v9247_v17 = vld [vmem:[#allocation8 + $0x3ec] sm:$0xf0]  ;;  %v7244_v18 = vor.u32 %v9367_v7, %v7243_v6  ;;  %v6448_v19 = vor.u32 %v9163_v10, %v6445_v11  ;;  %v6381_v40 = vld [vmem:[#allocation8 + $0xf0] sm:$0xf0] }
 0x10b   :  { %v6764_v25 = vor.u32 %v9247_v17, %v6763_v16  ;;  %v7147_v49 = vld [vmem:[#allocation8 + $0x6d0] sm:$0xf]  ;;  %v9299_v16 = vld [vmem:[#allocation8 + $0x594] sm:$0xf] }
 0x10c   :  { %2225 = vmatpush.bf16.msrb.mxu1 %v6664_v30  ;;  %v6731_v30 = vld [vmem:[#allocation8 + $0x390] sm:$0xf]  ;;  %v6989_v17 = vld [vmem:[#allocation8 + $0x5b0] sm:$0xf0] }
 0x10d   :  { %2253 = vmatpush.bf16.msrb.mxu3 %v7112_v35  ;;  %v7179_v35 = vld [vmem:[#allocation8 + $0x710] sm:$0xf] }
 0x10e   :  { %2242 = vmatpush.bf16.msrb.mxu0 %v6792_v31  ;;  %2262 = vmatpush.bf16.msra.mxu2 %v6476_v32  ;;  %v9239_v31 = vld [vmem:[#allocation8 + $0x3ac] sm:$0xf0]  ;;  %v7212_v32 = vor.u32 %v9359_v23, %v7211_v22  ;;  %v6992_v23 = vor.u32 %v9299_v16, %v6989_v17  ;;  %v9227_v17 = vld [vmem:[#allocation8 + $0x354] sm:$0xf] }
 0x10f   :  { %v6732_v38 = vor.u32 %v9239_v31, %v6731_v30  ;;  %v9343_v50 = vld [vmem:[#allocation8 + $0x6ec] sm:$0xf0]  ;;  %v6957_v30 = vld [vmem:[#allocation8 + $0x570] sm:$0xf0] }
 0x110   :  { %2226 = vmatpush.bf16.msrb.mxu1 %v6632_v43  ;;  %v9231_v43 = vld [vmem:[#allocation8 + $0x36c] sm:$0xf0]  ;;  %v7148_v60 = vor.u32 %v9343_v50, %v7147_v49  ;;  %v9139_v50 = vld [vmem:[#allocation8 + $0x94] sm:$0xf] }
 0x111   :  { %2243 = vmatmul.bf16.vlgmr.msrb.gmra.mxu0 %v10151_v27  ;;  %2254 = vmatpush.bf16.msrb.mxu3 %v7080_v47  ;;  %v9179_v47 = vld [vmem:[#allocation8 + $0x1d4] sm:$0xf]  ;;  %v6700_v53 = vor.u32 %v9231_v43, %v6699_v42  ;;  %v6667_v54 = vld [vmem:[#allocation8 + $0x310] sm:$0xf] }
 0x112   :  { %2287 = vmatpush.bf16.msra.mxu0 %v7020_v36  ;;  %2263 = vmatpush.bf16.msra.mxu2 %v6444_v44  ;;  %v9351_v36 = vld [vmem:[#allocation8 + $0x72c] sm:$0xf0]  ;;  %v9283_v42 = vld [vmem:[#allocation8 + $0x514] sm:$0xf] }
 0x113   :  { %v6827_v44 = vld [vmem:[#allocation8 + $0x450] sm:$0xf]  ;;  %v7180_v45 = vor.u32 %v9351_v36, %v7179_v35  ;;  %v6925_v43 = vld [vmem:[#allocation8 + $0x530] sm:$0xf0] }
 0x114   :  { %2227 = vmatpush.bf16.msrb.mxu1 %v6600_v56  ;;  %v6828_v55 = vor.u32 %v9263_v46, %v6827_v44  ;;  %v9223_v57 = vld [vmem:[#allocation8 + $0x32c] sm:$0xf0]  ;;  %v7245_v46 = vld [vmem:[#allocation8 + $0x7b0] sm:$0xf0] }
 0x115   :  { %2255 = vmatpush.bf16.msrb.mxu3 %v7048_v62  ;;  %v6795_v58 = vld [vmem:[#allocation8 + $0x410] sm:$0xf]  ;;  %v6477_v62 = vld [vmem:[#allocation8 + $0x1b0] sm:$0xf0]  ;;  %v6668_v4 = vor.u32 %v9223_v57, %v6667_v54 }
 0x116   :  { %2288 = vmatpush.bf16.msra.mxu0 %v6988_v48  ;;  %2264 = vmatpush.bf16.msra.mxu2 %v6412_v59  ;;  %v6509_v48 = vld [vmem:[#allocation8 + $0x1f0] sm:$0xf0]  ;;  %v9255_v59 = vld [vmem:[#allocation8 + $0x42c] sm:$0xf0] }
 0x117   :  { %v6512_v56 = vor.u32 %v9179_v47, %v6509_v48  ;;  %v9335_v1 = vld [vmem:[#allocation8 + $0x6ac] sm:$0xf0]  ;;  %v6796_v0 = vor.u32 %v9255_v59, %v6795_v58  ;;  %v6384_v47 = vor.u32 %v9147_v39, %v6381_v40  ;;  %v9243_v54 = vld [vmem:[#allocation8 + $0x3d4] sm:$0xf]  ;;  %v7027_v40 = vld [vmem:[#allocation8 + $0x5d8] sm:$0xf] }
 0x118   :  { %2228 = vmatpush.bf16.msrb.mxu1 %v6568_v5  ;;  %2256 = vmatmul.bf16.vlgmr.msrb.gmra.mxu3 %v10155_v52  ;;  %v6480_v5 = vor.u32 %v9171_v61, %v6477_v62  ;;  %v6635_v6 = vld [vmem:[#allocation8 + $0x2d0] sm:$0xf]  ;;  %v9275_v57 = vld [vmem:[#allocation8 + $0x4d4] sm:$0xf] }
 0x119   :  { %2300 = vmatpush.bf16.msra.mxu3 %v7276_v3  ;;  %v7021_v3 = vld [vmem:[#allocation8 + $0x5f0] sm:$0xf0]  ;;  %v9215_v7 = vld [vmem:[#allocation8 + $0x2ec] sm:$0xf0] }
 0x11a   :  { %2289 = vmatpush.bf16.msra.mxu0 %v6956_v63  ;;  %2265 = vmatpush.bf16.msra.mxu2 %v6380_v8  ;;  %v7115_v63 = vld [vmem:[#allocation8 + $0x690] sm:$0xf]  ;;  %v7024_v9 = vor.u32 %v9307_v2, %v7021_v3  ;;  %v6893_v58 = vld [vmem:[#allocation8 + $0x4f0] sm:$0xf0] }
 0x11b   :  { %v7116_v8 = vor.u32 %v9335_v1, %v7115_v63  ;;  %v9327_v15 = vld [vmem:[#allocation8 + $0x66c] sm:$0xf0]  ;;  %v7213_v61 = vld [vmem:[#allocation8 + $0x770] sm:$0xf0]  ;;  %v6896_v2 = vor.u32 %v9275_v57, %v6893_v58 }
 0x11c   :  { %2229 = vmatpush.bf16.msrb.mxu1 %v6536_v21  ;;  %v6603_v20 = vld [vmem:[#allocation8 + $0x290] sm:$0xf]  ;;  %v9131_v1 = vld [vmem:[#allocation8 + $0x54] sm:$0xf] }
 0x11d   :  { %2301 = vmatpush.bf16.msra.mxu3 %v7244_v18  ;;  %v6636_v18 = vor.u32 %v9215_v7, %v6635_v6  ;;  %v9207_v21 = vld [vmem:[#allocation8 + $0x2ac] sm:$0xf0]  ;;  %v6317_v3 = vld [vmem:[#allocation8 + $0x70] sm:$0xf0] }
 0x11e   :  { %2290 = vmatpush.bf16.msra.mxu0 %v6924_v13  ;;  %2266 = vmatpush.bf16.msra.mxu2 %v6348_v24  ;;  %v7083_v13 = vld [vmem:[#allocation8 + $0x650] sm:$0xf]  ;;  %v9155_v24 = vld [vmem:[#allocation8 + $0x114] sm:$0xf]  ;;  %v6604_v31 = vor.u32 %v9207_v21, %v6603_v20  ;;  %v6320_v10 = vor.u32 %v9131_v1, %v6317_v3  ;;  %v6963_v3 = vld [vmem:[#allocation8 + $0x558] sm:$0xf] }
 0x11f   :  { %2230 = vmatmul.bf16.vlgmr.msrb.gmra.mxu1 %v10159_v14  ;;  %v7084_v22 = vor.u32 %v9327_v15, %v7083_v13  ;;  %v7051_v26 = vld [vmem:[#allocation8 + $0x610] sm:$0xf]  ;;  %v9267_v6 = vld [vmem:[#allocation8 + $0x494] sm:$0xf] }
 0x120   :  { %2274 = vmatpush.bf16.msra.mxu1 %v6764_v25  ;;  %v6413_v25 = vld [vmem:[#allocation8 + $0x130] sm:$0xf0]  ;;  %v6571_v35 = vld [vmem:[#allocation8 + $0x250] sm:$0xf] }
 0x121   :  { %2302 = vmatpush.bf16.msra.mxu3 %v7212_v32  ;;  %v9371_v32 = vld [vmem:[#allocation8 + $0x7d4] sm:$0xf]  ;;  %v6416_v34 = vor.u32 %v9155_v24, %v6413_v25  ;;  %v9199_v36 = vld [vmem:[#allocation8 + $0x26c] sm:$0xf0] }
 0x122   :  { %2291 = vmatpush.bf16.msra.mxu0 %v6892_v28  ;;  %2267 = vmatpush.bf16.msra.mxu2 %v6316_v37  ;;  %v9319_v28 = vld [vmem:[#allocation8 + $0x62c] sm:$0xf0]  ;;  %v6572_v44 = vor.u32 %v9199_v36, %v6571_v35  ;;  %v6861_v7 = vld [vmem:[#allocation8 + $0x4b0] sm:$0xf0]  ;;  %v6483_v36 = vld [vmem:[#allocation8 + $0x198] sm:$0xf] }
 0x123   :  { %v7052_v37 = vor.u32 %v9319_v28, %v7051_v26  ;;  %v6539_v48 = vld [vmem:[#allocation8 + $0x210] sm:$0xf]  ;;  %v9123_v13 = vld [vmem:[#allocation8 + $0x14] sm:$0xf]  ;;  %v6864_v16 = vor.u32 %v9267_v6, %v6861_v7  ;;  %v9376_v6 = vld [vmem:[#allocation8 + $0x7f4] sm:$0xf0] }
 0x124   :  { %2275 = vmatpush.bf16.msra.mxu1 %v6732_v38  ;;  %v6960_v38 = vor.u32 %v9291_v29, %v6957_v30  ;;  %v9191_v49 = vld [vmem:[#allocation8 + $0x22c] sm:$0xf0]  ;;  %v6285_v15 = vld [vmem:[#allocation8 + $0x30] sm:$0xf0] }
 0x125   :  { %2303 = vmatpush.bf16.msra.mxu3 %v7180_v45  ;;  %v9363_v45 = vld [vmem:[#allocation8 + $0x794] sm:$0xf]  ;;  %v6540_v59 = vor.u32 %v9191_v49, %v6539_v48  ;;  %v6288_v26 = vor.u32 %v9123_v13, %v6285_v15  ;;  %v6451_v49 = vld [vmem:[#allocation8 + $0x158] sm:$0xf] }
 0x126   :  { %2292 = vmatpush.bf16.msra.mxu0 %v6860_v41  ;;  %2268 = vmatpush.bf16.msra.mxu2 %v6284_v51  ;;  %v7280_v41 = vor.u32 %v9371_v32, %v7277_v33  ;;  %v6928_v51 = vor.u32 %v9283_v42, %v6925_v43  ;;  %v6829_v21 = vld [vmem:[#allocation8 + $0x470] sm:$0xf0]  ;;  %v6387_v13 = vld [vmem:[#allocation8 + $0xd8] sm:$0xf] }
 0x127   :  { %v9339_v24 = vld [vmem:[#allocation8 + $0x6d4] sm:$0xf]  ;;  %v9152_v15 = vld [vmem:[#allocation8 + $0xf4] sm:$0xf0] }
 0x128   :  { %2276 = vmatpush.bf16.msra.mxu1 %v6700_v53  ;;  %v6349_v53 = vld [vmem:[#allocation8 + $0xb0] sm:$0xf0] }
 0x129   :  { %2304 = vmatpush.bf16.msra.mxu3 %v7148_v60  ;;  %2269 = vmatmul.bf16.vlgmr.msra.gmra.mxu2 %v10147_v12  ;;  %v9355_v60 = vld [vmem:[#allocation8 + $0x754] sm:$0xf]  ;;  %v6352_v62 = vor.u32 %v9139_v50, %v6349_v53  ;;  %v9168_v50 = vld [vmem:[#allocation8 + $0x174] sm:$0xf0] }
 0x12a   :  { %2293 = vmatpush.bf16.msra.mxu0 %v6828_v55  ;;  %2313 = vmatpush.bf16.msrb.mxu2 %v6512_v56  ;;  %v6765_v55 = vld [vmem:[#allocation8 + $0x3f0] sm:$0xf0]  ;;  %v7248_v56 = vor.u32 %v9363_v45, %v7245_v46  ;;  %v6452_v57 = vor.u32 %v9168_v50, %v6451_v49  ;;  %v7187_v49 = vld [vmem:[#allocation8 + $0x718] sm:$0xf] }
 0x12b   :  { %v6768_v63 = vor.u32 %v9243_v54, %v6765_v55  ;;  %v7149_v25 = vld [vmem:[#allocation8 + $0x6f0] sm:$0xf0]  ;;  %v6995_v54 = vld [vmem:[#allocation8 + $0x598] sm:$0xf] }
 0x12c   :  { %2277 = vmatpush.bf16.msra.mxu1 %v6668_v4  ;;  %v9235_v4 = vld [vmem:[#allocation8 + $0x394] sm:$0xf]  ;;  %v7152_v35 = vor.u32 %v9339_v24, %v7149_v25  ;;  %v9304_v55 = vld [vmem:[#allocation8 + $0x5b4] sm:$0xf0] }
 0x12d   :  { %2305 = vmatpush.bf16.msra.mxu3 %v7116_v8  ;;  %v9347_v8 = vld [vmem:[#allocation8 + $0x714] sm:$0xf]  ;;  %v6355_v25 = vld [vmem:[#allocation8 + $0x98] sm:$0xf] }
 0x12e   :  { %2294 = vmatpush.bf16.msra.mxu0 %v6796_v0  ;;  %2314 = vmatpush.bf16.msrb.mxu2 %v6480_v5  ;;  %v6733_v0 = vld [vmem:[#allocation8 + $0x3b0] sm:$0xf0]  ;;  %v7216_v5 = vor.u32 %v9355_v60, %v7213_v61  ;;  %v6996_v61 = vor.u32 %v9304_v55, %v6995_v54  ;;  %v9352_v50 = vld [vmem:[#allocation8 + $0x734] sm:$0xf0] }
 0x12f   :  { %v6736_v11 = vor.u32 %v9235_v4, %v6733_v0  ;;  %v9219_v29 = vld [vmem:[#allocation8 + $0x314] sm:$0xf]  ;;  %v9296_v4 = vld [vmem:[#allocation8 + $0x574] sm:$0xf0] }
 0x130   :  { %2278 = vmatpush.bf16.msra.mxu1 %v6636_v18  ;;  %v6701_v18 = vld [vmem:[#allocation8 + $0x370] sm:$0xf0]  ;;  %v6291_v54 = vld [vmem:[#allocation8 + $0x18] sm:$0xf] }
 0x131   :  { %2295 = vmatmul.bf16.vlgmr.msra.gmra.mxu0 %v10151_v27  ;;  %2306 = vmatpush.bf16.msra.mxu3 %v7084_v22  ;;  %v6515_v22 = vld [vmem:[#allocation8 + $0x1d8] sm:$0xf]  ;;  %v6704_v28 = vor.u32 %v9227_v17, %v6701_v18  ;;  %v6669_v32 = vld [vmem:[#allocation8 + $0x330] sm:$0xf0] }
 0x132   :  { %2339 = vmatpush.bf16.msrb.mxu0 %v7024_v9  ;;  %2315 = vmatpush.bf16.msrb.mxu2 %v6448_v19  ;;  %v7181_v9 = vld [vmem:[#allocation8 + $0x730] sm:$0xf0]  ;;  %v6672_v42 = vor.u32 %v9219_v29, %v6669_v32  ;;  %v6931_v17 = vld [vmem:[#allocation8 + $0x518] sm:$0xf] }
 0x133   :  { %v9259_v19 = vld [vmem:[#allocation8 + $0x454] sm:$0xf]  ;;  %v7184_v20 = vor.u32 %v9347_v8, %v7181_v9  ;;  %v9288_v18 = vld [vmem:[#allocation8 + $0x534] sm:$0xf0] }
 0x134   :  { %2279 = vmatpush.bf16.msra.mxu1 %v6604_v31  ;;  %v6832_v30 = vor.u32 %v9259_v19, %v6829_v21  ;;  %v9251_v33 = vld [vmem:[#allocation8 + $0x414] sm:$0xf]  ;;  %v9368_v21 = vld [vmem:[#allocation8 + $0x7b4] sm:$0xf0]  ;;  %v6932_v29 = vor.u32 %v9288_v18, %v6931_v17 }
 0x135   :  { %2307 = vmatpush.bf16.msra.mxu3 %v7052_v37  ;;  %v9176_v37 = vld [vmem:[#allocation8 + $0x1b4] sm:$0xf0]  ;;  %v7117_v39 = vld [vmem:[#allocation8 + $0x6b0] sm:$0xf0] }
 0x136   :  { %2340 = vmatpush.bf16.msrb.mxu0 %v6992_v23  ;;  %2316 = vmatpush.bf16.msrb.mxu2 %v6416_v34  ;;  %v9184_v23 = vld [vmem:[#allocation8 + $0x1f4] sm:$0xf0]  ;;  %v6797_v34 = vld [vmem:[#allocation8 + $0x430] sm:$0xf0] }
 0x137   :  { %v6516_v31 = vor.u32 %v9184_v23, %v6515_v22  ;;  %v6800_v43 = vor.u32 %v9251_v33, %v6797_v34  ;;  %v9211_v45 = vld [vmem:[#allocation8 + $0x2d4] sm:$0xf]  ;;  %v6388_v22 = vor.u32 %v9152_v15, %v6387_v13  ;;  %v9248_v32 = vld [vmem:[#allocation8 + $0x3f4] sm:$0xf0]  ;;  %v9172_v15 = vld [vmem:[#allocation8 + $0x19c] sm:$0xf] }
 0x138   :  { %2280 = vmatpush.bf16.msra.mxu1 %v6572_v44  ;;  %2308 = vmatmul.bf16.vlgmr.msra.gmra.mxu3 %v10155_v52  ;;  %v6484_v44 = vor.u32 %v9176_v37, %v6483_v36  ;;  %v6637_v46 = vld [vmem:[#allocation8 + $0x2f0] sm:$0xf0]  ;;  %v6899_v34 = vld [vmem:[#allocation8 + $0x4d8] sm:$0xf] }
 0x139   :  { %2352 = vmatpush.bf16.msrb.mxu3 %v7280_v41  ;;  %v9312_v41 = vld [vmem:[#allocation8 + $0x5f4] sm:$0xf0]  ;;  %v7085_v53 = vld [vmem:[#allocation8 + $0x670] sm:$0xf0] }
 0x13a   :  { %2341 = vmatpush.bf16.msrb.mxu0 %v6960_v38  ;;  %2317 = vmatpush.bf16.msrb.mxu2 %v6384_v47  ;;  %v9331_v38 = vld [vmem:[#allocation8 + $0x694] sm:$0xf]  ;;  %v7028_v48 = vor.u32 %v9312_v41, %v7027_v40  ;;  %v7219_v37 = vld [vmem:[#allocation8 + $0x758] sm:$0xf] }
 0x13b   :  { %v7120_v47 = vor.u32 %v9331_v38, %v7117_v39  ;;  %v9203_v58 = vld [vmem:[#allocation8 + $0x294] sm:$0xf]  ;;  %v9360_v38 = vld [vmem:[#allocation8 + $0x774] sm:$0xf0] }
 0x13c   :  { %2281 = vmatpush.bf16.msra.mxu1 %v6540_v59  ;;  %v6605_v59 = vld [vmem:[#allocation8 + $0x2b0] sm:$0xf0]  ;;  %v6323_v41 = vld [vmem:[#allocation8 + $0x58] sm:$0xf] }
 0x13d   :  { %2353 = vmatpush.bf16.msrb.mxu3 %v7248_v56  ;;  %v6640_v56 = vor.u32 %v9211_v45, %v6637_v46  ;;  %v9315_v1 = vld [vmem:[#allocation8 + $0x614] sm:$0xf]  ;;  %v6608_v0 = vor.u32 %v9203_v58, %v6605_v59  ;;  %v9240_v45 = vld [vmem:[#allocation8 + $0x3b4] sm:$0xf0]  ;;  %v7220_v46 = vor.u32 %v9360_v38, %v7219_v37 }
 0x13e   :  { %2342 = vmatpush.bf16.msrb.mxu0 %v6928_v51  ;;  %2318 = vmatpush.bf16.msrb.mxu2 %v6352_v62  ;;  %v9323_v51 = vld [vmem:[#allocation8 + $0x654] sm:$0xf]  ;;  %v6419_v62 = vld [vmem:[#allocation8 + $0x118] sm:$0xf] }
 0x13f   :  { %2282 = vmatmul.bf16.vlgmr.msra.gmra.mxu1 %v10159_v14  ;;  %v7088_v60 = vor.u32 %v9323_v51, %v7085_v53  ;;  %v9195_v8 = vld [vmem:[#allocation8 + $0x254] sm:$0xf]  ;;  %v9128_v55 = vld [vmem:[#allocation8 + $0x34] sm:$0xf0] }
 0x140   :  { %2326 = vmatpush.bf16.msrb.mxu1 %v6768_v63  ;;  %v9160_v63 = vld [vmem:[#allocation8 + $0x134] sm:$0xf0]  ;;  %v6573_v9 = vld [vmem:[#allocation8 + $0x270] sm:$0xf0] }
 0x141   :  { %2354 = vmatpush.bf16.msrb.mxu3 %v7216_v5  ;;  %v7283_v5 = vld [vmem:[#allocation8 + $0x7d8] sm:$0xf]  ;;  %v6420_v7 = vor.u32 %v9160_v63, %v6419_v62  ;;  %v6576_v19 = vor.u32 %v9195_v8, %v6573_v9  ;;  %v9187_v23 = vld [vmem:[#allocation8 + $0x214] sm:$0xf]  ;;  %v7188_v62 = vor.u32 %v9352_v50, %v7187_v49 }
 0x142   :  { %2343 = vmatpush.bf16.msrb.mxu0 %v6896_v2  ;;  %2319 = vmatpush.bf16.msrb.mxu2 %v6320_v10  ;;  %v7053_v2 = vld [vmem:[#allocation8 + $0x630] sm:$0xf0]  ;;  %v6707_v59 = vld [vmem:[#allocation8 + $0x358] sm:$0xf] }
 0x143   :  { %v7056_v10 = vor.u32 %v9315_v1, %v7053_v2  ;;  %v6541_v24 = vld [vmem:[#allocation8 + $0x230] sm:$0xf0]  ;;  %v9264_v63 = vld [vmem:[#allocation8 + $0x474] sm:$0xf0]  ;;  %v9180_v1 = vld [vmem:[#allocation8 + $0x1dc] sm:$0xf] }
 0x144   :  { %2327 = vmatpush.bf16.msrb.mxu1 %v6736_v11  ;;  %v6964_v11 = vor.u32 %v9296_v4, %v6963_v3  ;;  %v6544_v36 = vor.u32 %v9187_v23, %v6541_v24  ;;  %v6517_v2 = vld [vmem:[#allocation8 + $0x1f8] sm:$0xf0]  ;;  %v7155_v3 = vld [vmem:[#allocation8 + $0x6d8] sm:$0xf] }
 0x145   :  { %2355 = vmatpush.bf16.msrb.mxu3 %v7184_v20  ;;  %v7251_v20 = vld [vmem:[#allocation8 + $0x798] sm:$0xf]  ;;  %v6520_v8 = vor.u32 %v9180_v1, %v6517_v2  ;;  %v10195_v1 = vld [vmem:[#allocation10] sm:$0xff] }
 0x146   :  { %2344 = vmatpush.bf16.msrb.mxu0 %v6864_v16  ;;  %2320 = vmatpush.bf16.msrb.mxu2 %v6288_v26  ;;  %v7284_v16 = vor.u32 %v9376_v6, %v7283_v5  ;;  %v7252_v33 = vor.u32 %v9368_v21, %v7251_v20  ;;  %v9344_v4 = vld [vmem:[#allocation8 + $0x6f4] sm:$0xf0]  ;;  %v9308_v20 = vld [vmem:[#allocation8 + $0x5dc] sm:$0xf] }
 0x147   :  { %v6675_v6 = vld [vmem:[#allocation8 + $0x318] sm:$0xf]  ;;  %v7156_v13 = vor.u32 %v9344_v4, %v7155_v3  ;;  %v7029_v21 = vld [vmem:[#allocation8 + $0x5f8] sm:$0xf0] }
 0x148   :  { %2328 = vmatpush.bf16.msrb.mxu1 %v6704_v28  ;;  %v9224_v9 = vld [vmem:[#allocation8 + $0x334] sm:$0xf0]  ;;  %v9148_v4 = vld [vmem:[#allocation8 + $0xdc] sm:$0xf] }
 0x149   :  { %2356 = vmatpush.bf16.msrb.mxu3 %v7152_v35  ;;  %2321 = vmatmul.bf16.vlgmr.msrb.gmra.mxu2 %v10147_v12  ;;  %v9280_v35 = vld [vmem:[#allocation8 + $0x4f4] sm:$0xf0]  ;;  %v6676_v23 = vor.u32 %v9224_v9, %v6675_v6 }
 0x14a   :  { %2345 = vmatpush.bf16.msrb.mxu0 %v6832_v30  ;;  %2365 = vmatpush.bf16.msra.mxu2 %v6516_v31  ;;  %v9144_v30 = vld [vmem:[#allocation8 + $0xb4] sm:$0xf0] }
 0x14b   :  { %v10181_v28 = vpop.f32.mrf.mxu2  ;;  %v6771_v31 = vld [vmem:[#allocation8 + $0x3d8] sm:$0xf]  ;;  %v6356_v39 = vor.u32 %v9144_v30, %v6355_v25 }
 0x14c   :  { %2329 = vmatpush.bf16.msrb.mxu1 %v6672_v42  ;;  %v6772_v40 = vor.u32 %v9248_v32, %v6771_v31  ;;  %v6900_v42 = vor.u32 %v9280_v35, %v6899_v34  ;;  %v7123_v17 = vld [vmem:[#allocation8 + $0x698] sm:$0xf]  ;;  %v7032_v34 = vor.u32 %v9308_v20, %v7029_v21  ;;  %v9164_v35 = vld [vmem:[#allocation8 + $0x15c] sm:$0xf] }
 0x14d   :  { %2357 = vmatpush.bf16.msrb.mxu3 %v7120_v47  ;;  %v6867_v47 = vld [vmem:[#allocation8 + $0x498] sm:$0xf]  ;;  %v6357_v20 = vld [vmem:[#allocation8 + $0xb8] sm:$0xf0] }
 0x14e   :  { %2346 = vmatpush.bf16.msrb.mxu0 %v6800_v43  ;;  %2366 = vmatpush.bf16.msra.mxu2 %v6484_v44  ;;  %v10179_v26 = vpop.f32.mrf.mxu0  ;;  %v9136_v43 = vld [vmem:[#allocation8 + $0x74] sm:$0xf0]  ;;  %v9244_v21 = vld [vmem:[#allocation8 + $0x3dc] sm:$0xf] }
 0x14f   :  { %v6739_v44 = vld [vmem:[#allocation8 + $0x398] sm:$0xf]  ;;  %v6324_v51 = vor.u32 %v9136_v43, %v6323_v41 }
 0x150   :  { %2330 = vmatpush.bf16.msrb.mxu1 %v6640_v56  ;;  %v6740_v53 = vor.u32 %v9240_v45, %v6739_v44  ;;  %v6643_v31 = vld [vmem:[#allocation8 + $0x2d8] sm:$0xf] }
 0x151   :  { %2347 = vmatmul.bf16.vlgmr.msrb.gmra.mxu0 %v10151_v27  ;;  %2358 = vmatpush.bf16.msrb.mxu3 %v7088_v60  ;;  %v9232_v60 = vld [vmem:[#allocation8 + $0x374] sm:$0xf0] }
 0x152   :  { %2391 = vmatpush.bf16.msra.mxu0 %v7028_v48  ;;  %2367 = vmatpush.bf16.msra.mxu2 %v6452_v57  ;;  %v9272_v48 = vld [vmem:[#allocation8 + $0x4b4] sm:$0xf0]  ;;  %v6708_v5 = vor.u32 %v9232_v60, %v6707_v59 }
 0x153   :  { %v2064_v57 = vpop.f32.mrf.mxu2  ;;  %v6868_v58 = vor.u32 %v9272_v48, %v6867_v47  ;;  %v9216_v32 = vld [vmem:[#allocation8 + $0x2f4] sm:$0xf0]  ;;  %v9156_v47 = vld [vmem:[#allocation8 + $0x11c] sm:$0xf] }
 0x154   :  { %2331 = vmatpush.bf16.msrb.mxu1 %v6608_v0  ;;  %v6292_v0 = vor.u32 %v9128_v55, %v6291_v54  ;;  %v7091_v37 = vld [vmem:[#allocation8 + $0x658] sm:$0xf]  ;;  %v6644_v41 = vor.u32 %v9216_v32, %v6643_v31  ;;  %v6421_v48 = vld [vmem:[#allocation8 + $0x138] sm:$0xf0] }
 0x155   :  { %2359 = vmatpush.bf16.msrb.mxu3 %v7056_v10  ;;  %v6803_v10 = vld [vmem:[#allocation8 + $0x418] sm:$0xf]  ;;  %v6965_v54 = vld [vmem:[#allocation8 + $0x578] sm:$0xf0] }
 0x156   :  { %2392 = vmatpush.bf16.msra.mxu0 %v6996_v61  ;;  %2368 = vmatpush.bf16.msra.mxu2 %v6420_v7  ;;  %v2090_v56 = vpop.f32.mrf.mxu0  ;;  %v6835_v61 = vld [vmem:[#allocation8 + $0x458] sm:$0xf]  ;;  %v9372_v57 = vld [vmem:[#allocation8 + $0x7dc] sm:$0xf] }
 0x157   :  { %v6836_v7 = vor.u32 %v9264_v63, %v6835_v61  ;;  %v9328_v38 = vld [vmem:[#allocation8 + $0x674] sm:$0xf0]  ;;  %v6424_v61 = vor.u32 %v9156_v47, %v6421_v48  ;;  %v9276_v31 = vld [vmem:[#allocation8 + $0x4dc] sm:$0xf] }
 0x158   :  { %2332 = vmatpush.bf16.msrb.mxu1 %v6576_v19  ;;  %2360 = vmatmul.bf16.vlgmr.msrb.gmra.mxu3 %v10155_v52  ;;  %v9336_v19 = vld [vmem:[#allocation8 + $0x6b4] sm:$0xf0]  ;;  %v7092_v45 = vor.u32 %v9328_v38, %v7091_v37  ;;  %v6901_v32 = vld [vmem:[#allocation8 + $0x4f8] sm:$0xf0] }
 0x159   :  { %2404 = vmatpush.bf16.msra.mxu3 %v7284_v16  ;;  %v6485_v16 = vld [vmem:[#allocation8 + $0x1b8] sm:$0xf0]  ;;  %v6611_v43 = vld [vmem:[#allocation8 + $0x298] sm:$0xf] }
 0x15a   :  { %2393 = vmatpush.bf16.msra.mxu0 %v6964_v11  ;;  %2369 = vmatpush.bf16.msra.mxu2 %v6388_v22  ;;  %v9256_v11 = vld [vmem:[#allocation8 + $0x434] sm:$0xf0]  ;;  %v6488_v30 = vor.u32 %v9172_v15, %v6485_v16  ;;  %v7221_v37 = vld [vmem:[#allocation8 + $0x778] sm:$0xf0] }
 0x15b   :  { %v10185_v18 = vpop.f32.mrf.mxu3  ;;  %v10187_v22 = vpop.f32.mrf.mxu1  ;;  %v9208_v44 = vld [vmem:[#allocation8 + $0x2b4] sm:$0xf0] }
 0x15c   :  { %2333 = vmatpush.bf16.msrb.mxu1 %v6544_v36  ;;  %v10191_v25 = vpop.f32.mrf.mxu2  ;;  %v6453_v36 = vld [vmem:[#allocation8 + $0x178] sm:$0xf0]  ;;  %v7059_v49 = vld [vmem:[#allocation8 + $0x618] sm:$0xf]  ;;  %v6612_v56 = vor.u32 %v9208_v44, %v6611_v43  ;;  %v6904_v43 = vor.u32 %v9276_v31, %v6901_v32  ;;  %v9541_v31 = vld [vmem:[#allocation11 + $0x520] sm:$0xf0] }
 0x15d   :  { %2405 = vmatpush.bf16.msra.mxu3 %v7252_v33  ;;  %v7124_v33 = vor.u32 %v9336_v19, %v7123_v17  ;;  %v9200_v63 = vld [vmem:[#allocation8 + $0x274] sm:$0xf0]  ;;  %v9140_v17 = vld [vmem:[#allocation8 + $0x9c] sm:$0xf] }
 0x15e   :  { %2394 = vmatpush.bf16.msra.mxu0 %v6932_v29  ;;  %2370 = vmatpush.bf16.msra.mxu2 %v6356_v39  ;;  %v10189_v24 = vpop.f32.mrf.mxu0  ;;  %v6804_v29 = vor.u32 %v9256_v11, %v6803_v10  ;;  %v9300_v39 = vld [vmem:[#allocation8 + $0x59c] sm:$0xf]  ;;  %v6547_v15 = vld [vmem:[#allocation8 + $0x218] sm:$0xf] }
 0x15f   :  { %2334 = vmatmul.bf16.vlgmr.msrb.gmra.mxu1 %v10159_v14  ;;  %v9364_v10 = vld [vmem:[#allocation8 + $0x79c] sm:$0xf]  ;;  %v9192_v16 = vld [vmem:[#allocation8 + $0x234] sm:$0xf0] }
 0x160   :  { %2378 = vmatpush.bf16.msra.mxu1 %v6772_v40  ;;  %v6997_v40 = vld [vmem:[#allocation8 + $0x5b8] sm:$0xf0] }
 0x161   :  { %2406 = vmatpush.bf16.msra.mxu3 %v7220_v46  ;;  %v7000_v46 = vor.u32 %v9300_v39, %v6997_v40  ;;  %v7253_v11 = vld [vmem:[#allocation8 + $0x7b8] sm:$0xf0] }
 0x162   :  { %2395 = vmatpush.bf16.msra.mxu0 %v6900_v42  ;;  %2371 = vmatpush.bf16.msra.mxu2 %v6324_v51  ;;  %v6456_v42 = vor.u32 %v9164_v35, %v6453_v36  ;;  %v9320_v51 = vld [vmem:[#allocation8 + $0x634] sm:$0xf0]  ;;  %v6548_v35 = vor.u32 %v9192_v16, %v6547_v15  ;;  %v9356_v36 = vld [vmem:[#allocation8 + $0x75c] sm:$0xf] }
 0x163   :  { %v2103_v50 = vpop.f32.mrf.mxu3  ;;  %v2077_v55 = vpop.f32.mrf.mxu1  ;;  %v7060_v2 = vor.u32 %v9320_v51, %v7059_v49  ;;  %v6325_v44 = vld [vmem:[#allocation8 + $0x78] sm:$0xf0]  ;;  %v7224_v48 = vor.u32 %v9356_v36, %v7221_v37 }
 0x164   :  { %2379 = vmatpush.bf16.msra.mxu1 %v6740_v53  ;;  %v9292_v53 = vld [vmem:[#allocation8 + $0x55c] sm:$0xf]  ;;  %v2116_v60 = vpop.f32.mrf.mxu2 }
 0x165   :  { %2407 = vmatpush.bf16.msra.mxu3 %v7188_v62  ;;  %v6579_v62 = vld [vmem:[#allocation8 + $0x258] sm:$0xf]  ;;  %v6968_v3 = vor.u32 %v9292_v53, %v6965_v54  ;;  %v9268_v49 = vld [vmem:[#allocation8 + $0x49c] sm:$0xf] }
 0x166   :  { %2396 = vmatpush.bf16.msra.mxu0 %v6868_v58  ;;  %2372 = vmatpush.bf16.msra.mxu2 %v6292_v0  ;;  %v7285_v58 = vld [vmem:[#allocation8 + $0x7f8] sm:$0xf0]  ;;  %v2142_v59 = vpop.f32.mrf.mxu0  ;;  %v6580_v9 = vor.u32 %v9200_v63, %v6579_v62  ;;  %v7487_v63 = vld [vmem:[#allocation11 + $0x188] sm:$0xf] }
 0x167   :  { %v6389_v0 = vld [vmem:[#allocation8 + $0xf8] sm:$0xf0]  ;;  %v7288_v6 = vor.u32 %v9372_v57, %v7285_v58 }
 0x168   :  { %2380 = vmatpush.bf16.msra.mxu1 %v6708_v5  ;;  %v758_v5 = vperm.slane %v10195_v1, 1  ;;  %v6869_v50 = vld [vmem:[#allocation8 + $0x4b8] sm:$0xf0] }
 0x169   :  { %2408 = vmatpush.bf16.msra.mxu3 %v7156_v13  ;;  %2373 = vmatmul.bf16.vlgmr.msra.gmra.mxu2 %v10147_v12  ;;  %v6392_v13 = vor.u32 %v9148_v4, %v6389_v0  ;;  %v9348_v51 = vld [vmem:[#allocation8 + $0x71c] sm:$0xf]  ;;  %v6872_v58 = vor.u32 %v9268_v49, %v6869_v50  ;;  %v9534_v49 = vld [vmem:[#allocation11 + $0x4e8] sm:$0xf0] }
 0x16a   :  { %2397 = vmatpush.bf16.msra.mxu0 %v6836_v7  ;;  %2417 = vmatpush.bf16.msrb.mxu2 %v6520_v8  ;;  %v9284_v7 = vld [vmem:[#allocation8 + $0x51c] sm:$0xf] }
 0x16b   :  { %v6933_v8 = vld [vmem:[#allocation8 + $0x538] sm:$0xf0] }
 0x16c   :  { %2381 = vmatpush.bf16.msra.mxu1 %v6676_v23  ;;  %v6936_v19 = vor.u32 %v9284_v7, %v6933_v8  ;;  %v6773_v23 = vld [vmem:[#allocation8 + $0x3f8] sm:$0xf0]  ;;  %v10204_v40 = vpop.f32.mrf.mxu2 }
 0x16d   :  { %2409 = vmatpush.bf16.msra.mxu3 %v7124_v33  ;;  %v2127_v33 = vpop.f32.mrf.mxu1  ;;  %v7189_v53 = vld [vmem:[#allocation8 + $0x738] sm:$0xf0] }
 0x16e   :  { %2398 = vmatpush.bf16.msra.mxu0 %v6804_v29  ;;  %2418 = vmatpush.bf16.msrb.mxu2 %v6488_v30  ;;  %v2115_v29 = vadd.f32 %v10191_v25, %v758_v5  ;;  %v7256_v30 = vor.u32 %v9364_v10, %v7253_v11  ;;  %v10202_v39 = vpop.f32.mrf.mxu0  ;;  %v6360_v25 = vor.u32 %v9140_v17, %v6357_v20  ;;  %v6293_v57 = vld [vmem:[#allocation8 + $0x38] sm:$0xf0]  ;;  %v7459_v20 = vld [vmem:[#allocation11 + $0x150] sm:$0xf] }
 0x16f   :  { %v9228_v59 = vld [vmem:[#allocation8 + $0x35c] sm:$0xf] }
 0x170   :  { %2382 = vmatpush.bf16.msra.mxu1 %v6644_v41  ;;  %v2128_v38 = vadd.f32 %v2127_v33, %v2115_v29  ;;  %v6776_v41 = vor.u32 %v9244_v21, %v6773_v23  ;;  %v6709_v60 = vld [vmem:[#allocation8 + $0x378] sm:$0xf0]  ;;  %v9422_v21 = vld [vmem:[#allocation11 + $0x168] sm:$0xf0] }
 0x171   :  { %2399 = vmatmul.bf16.vlgmr.msra.gmra.mxu0 %v10151_v27  ;;  %2410 = vmatpush.bf16.msra.mxu3 %v7092_v45  ;;  %v9236_v45 = vld [vmem:[#allocation8 + $0x39c] sm:$0xf] }
 0x172   :  { %2443 = vmatpush.bf16.msrb.mxu0 %v7032_v34  ;;  %2419 = vmatpush.bf16.msrb.mxu2 %v6456_v42  ;;  %v10199_v34 = vpop.f32.mrf.mxu3  ;;  %v9132_v42 = vld [vmem:[#allocation8 + $0x5c] sm:$0xf]  ;;  %v10207_v47 = vadd.f32 %v10189_v24, %v2128_v38  ;;  %v7192_v24 = vor.u32 %v9348_v51, %v7189_v53  ;;  %v757_v51 = vperm.slane %v10195_v1, 0 }
 0x173   :  { %v6328_v54 = vor.u32 %v9132_v42, %v6325_v44  ;;  %v6837_v62 = vld [vmem:[#allocation8 + $0x478] sm:$0xf0] }
 0x174   :  { %2383 = vmatpush.bf16.msra.mxu1 %v6612_v56  ;;  %v9124_v56 = vld [vmem:[#allocation8 + $0x1c] sm:$0xf]  ;;  %v2168_v7 = vpop.f32.mrf.mxu2 }
 0x175   :  { %2411 = vmatpush.bf16.msra.mxu3 %v7060_v2  ;;  %v9429_v2 = vld [vmem:[#allocation11 + $0x1a0] sm:$0xf0]  ;;  %v9340_v0 = vld [vmem:[#allocation8 + $0x6dc] sm:$0xf]  ;;  %v6296_v8 = vor.u32 %v9124_v56, %v6293_v57  ;;  %v7403_v57 = vld [vmem:[#allocation11 + $0xe0] sm:$0xf] }
 0x176   :  { %2444 = vmatpush.bf16.msrb.mxu0 %v7000_v46  ;;  %2420 = vmatpush.bf16.msrb.mxu2 %v6424_v61  ;;  %v6741_v46 = vld [vmem:[#allocation8 + $0x3b8] sm:$0xf0] }
 0x177   :  { %v6744_v55 = vor.u32 %v9236_v45, %v6741_v46  ;;  %v9260_v61 = vld [vmem:[#allocation8 + $0x45c] sm:$0xf] }
 0x178   :  { %2384 = vmatpush.bf16.msra.mxu1 %v6580_v9  ;;  %2412 = vmatmul.bf16.vlgmr.msra.gmra.mxu3 %v10155_v52  ;;  %v7157_v5 = vld [vmem:[#allocation8 + $0x6f8] sm:$0xf0]  ;;  %v6712_v9 = vor.u32 %v9228_v59, %v6709_v60  ;;  %v6840_v11 = vor.u32 %v9260_v61, %v6837_v62  ;;  %v7879_v61 = vld [vmem:[#allocation11 + $0x498] sm:$0xf] }
 0x179   :  { %2456 = vmatpush.bf16.msrb.mxu3 %v7288_v6  ;;  %v2194_v6 = vpop.f32.mrf.mxu0  ;;  %v9220_v10 = vld [vmem:[#allocation8 + $0x31c] sm:$0xf] }
 0x17a   :  { %2445 = vmatpush.bf16.msrb.mxu0 %v6968_v3  ;;  %2421 = vmatpush.bf16.msrb.mxu2 %v6392_v13  ;;  %v2129_v3 = vpop.f32.mrf.mxu1  ;;  %v2155_v4 = vpop.f32.mrf.mxu3  ;;  %v7488_v13 = vor.u32 %v9429_v2, %v7487_v63  ;;  %v6677_v15 = vld [vmem:[#allocation8 + $0x338] sm:$0xf0]  ;;  %v8159_v63 = vld [vmem:[#allocation11 + $0x6c8] sm:$0xf]  ;;  %v9597_v2 = vld [vmem:[#allocation11 + $0x6e0] sm:$0xf0] }
 0x17b   :  { %v9252_v16 = vld [vmem:[#allocation8 + $0x41c] sm:$0xf]  ;;  %v6680_v32 = vor.u32 %v9220_v10, %v6677_v15  ;;  %v7851_v15 = vld [vmem:[#allocation11 + $0x460] sm:$0xf] }
 0x17c   :  { %2385 = vmatpush.bf16.msra.mxu1 %v6548_v35  ;;  %v6805_v17 = vld [vmem:[#allocation8 + $0x438] sm:$0xf0]  ;;  %v7460_v35 = vor.u32 %v9422_v21, %v7459_v20  ;;  %v8131_v20 = vld [vmem:[#allocation11 + $0x690] sm:$0xf]  ;;  %v9590_v21 = vld [vmem:[#allocation11 + $0x6a8] sm:$0xf0] }
 0x17d   :  { %2457 = vmatpush.bf16.msrb.mxu3 %v7256_v30  ;;  %v9332_v23 = vld [vmem:[#allocation8 + $0x69c] sm:$0xf]  ;;  %v7935_v30 = vld [vmem:[#allocation11 + $0x508] sm:$0xf]  ;;  %v6808_v33 = vor.u32 %v9252_v16, %v6805_v17  ;;  %v759_v17 = vperm.slane %v10195_v1, 2 }
 0x17e   :  { %2446 = vmatpush.bf16.msrb.mxu0 %v6936_v19  ;;  %2422 = vmatpush.bf16.msrb.mxu2 %v6360_v25  ;;  %v7160_v19 = vor.u32 %v9340_v0, %v7157_v5  ;;  %v7125_v29 = vld [vmem:[#allocation8 + $0x6b8] sm:$0xf0]  ;;  %v7936_v25 = vor.u32 %v9541_v31, %v7935_v30  ;;  %v2063_v5 = vadd.f32 %v10181_v28, %v757_v51  ;;  %v7347_v30 = vld [vmem:[#allocation11 + $0x70] sm:$0xf] }
 0x17f   :  { %2386 = vmatmul.bf16.vlgmr.msra.gmra.mxu1 %v10159_v14  ;;  %v9212_v36 = vld [vmem:[#allocation8 + $0x2dc] sm:$0xf]  ;;  %v7128_v38 = vor.u32 %v9332_v23, %v7125_v29 }
 0x180   :  { %2430 = vmatpush.bf16.msrb.mxu1 %v6776_v41  ;;  %v6645_v37 = vld [vmem:[#allocation8 + $0x2f8] sm:$0xf0]  ;;  %v7431_v41 = vld [vmem:[#allocation11 + $0x118] sm:$0xf]  ;;  %v2076_v16 = vadd.f32 %v10187_v22, %v2063_v5  ;;  %v7823_v22 = vld [vmem:[#allocation11 + $0x428] sm:$0xf] }
 0x181   :  { %2458 = vmatpush.bf16.msrb.mxu3 %v7224_v48  ;;  %v9415_v42 = vld [vmem:[#allocation11 + $0x130] sm:$0xf0]  ;;  %v7907_v48 = vld [vmem:[#allocation11 + $0x4d0] sm:$0xf]  ;;  %v6648_v50 = vor.u32 %v9212_v36, %v6645_v37  ;;  %v8132_v36 = vor.u32 %v9590_v21, %v8131_v20  ;;  %v9513_v37 = vld [vmem:[#allocation11 + $0x440] sm:$0xf0] }
 0x182   :  { %2447 = vmatpush.bf16.msrb.mxu0 %v6904_v43  ;;  %2423 = vmatpush.bf16.msrb.mxu2 %v6328_v54  ;;  %v9324_v43 = vld [vmem:[#allocation8 + $0x65c] sm:$0xf]  ;;  %v10211_v44 = vpop.f32.mrf.mxu1  ;;  %v10213_v45 = vpop.f32.mrf.mxu3  ;;  %v7432_v53 = vor.u32 %v9415_v42, %v7431_v41  ;;  %v8103_v41 = vld [vmem:[#allocation11 + $0x658] sm:$0xf] }
 0x183   :  { %v7093_v46 = vld [vmem:[#allocation8 + $0x678] sm:$0xf0] }
 0x184   :  { %2431 = vmatpush.bf16.msrb.mxu1 %v6744_v55  ;;  %v9204_v54 = vld [vmem:[#allocation8 + $0x29c] sm:$0xf]  ;;  %v7096_v56 = vor.u32 %v9324_v43, %v7093_v46  ;;  %v2167_v43 = vadd.f32 %v10204_v40, %v759_v17  ;;  %v7795_v40 = vld [vmem:[#allocation11 + $0x3f0] sm:$0xf]  ;;  %v9464_v17 = vld [vmem:[#allocation11 + $0x2b8] sm:$0xf0] }
 0x185   :  { %2459 = vmatpush.bf16.msrb.mxu3 %v7192_v24  ;;  %v6613_v55 = vld [vmem:[#allocation8 + $0x2b8] sm:$0xf0] }
 0x186   :  { %2448 = vmatpush.bf16.msrb.mxu0 %v6872_v58  ;;  %2424 = vmatpush.bf16.msrb.mxu2 %v6296_v8  ;;  %v9408_v58 = vld [vmem:[#allocation11 + $0xf8] sm:$0xf0]  ;;  %v9316_v59 = vld [vmem:[#allocation8 + $0x61c] sm:$0xf]  ;;  %v6616_v62 = vor.u32 %v9204_v54, %v6613_v55  ;;  %v7375_v8 = vld [vmem:[#allocation11 + $0xa8] sm:$0xf] }
 0x187   :  { %v7061_v60 = vld [vmem:[#allocation8 + $0x638] sm:$0xf0]  ;;  %v7404_v3 = vor.u32 %v9408_v58, %v7403_v57  ;;  %v9478_v55 = vld [vmem:[#allocation11 + $0x328] sm:$0xf0]  ;;  %v8075_v58 = vld [vmem:[#allocation11 + $0x620] sm:$0xf] }
 0x188   :  { %2432 = vmatpush.bf16.msrb.mxu1 %v6712_v9  ;;  %v9527_v24 = vld [vmem:[#allocation11 + $0x4b0] sm:$0xf0]  ;;  %v7064_v6 = vor.u32 %v9316_v59, %v7061_v60  ;;  %v9401_v9 = vld [vmem:[#allocation11 + $0xc0] sm:$0xf0]  ;;  %v9506_v57 = vld [vmem:[#allocation11 + $0x408] sm:$0xf0] }
 0x189   :  { %2460 = vmatpush.bf16.msrb.mxu3 %v7160_v19  ;;  %2425 = vmatmul.bf16.vlgmr.msrb.gmra.mxu2 %v10147_v12  ;;  %v7908_v12 = vor.u32 %v9534_v49, %v7907_v48  ;;  %v9196_v4 = vld [vmem:[#allocation8 + $0x25c] sm:$0xf]  ;;  %v7880_v7 = vor.u32 %v9527_v24, %v7879_v61  ;;  %v7376_v28 = vor.u32 %v9401_v9, %v7375_v8  ;;  %v7291_v24 = vld [vmem:[#allocation11] sm:$0xf]  ;;  %v9569_v8 = vld [vmem:[#allocation11 + $0x600] sm:$0xf0] }
 0x18a   :  { %2449 = vmatpush.bf16.msrb.mxu0 %v6840_v11  ;;  %5317 = vmatpush.bf16.msra.mxu2 %v7488_v13  ;;  %v6581_v0 = vld [vmem:[#allocation8 + $0x278] sm:$0xf0]  ;;  %v2181_v10 = vpop.f32.mrf.mxu1  ;;  %v2207_v11 = vpop.f32.mrf.mxu3  ;;  %v8160_v13 = vor.u32 %v9597_v2, %v8159_v63  ;;  %v7796_v63 = vor.u32 %v9506_v57, %v7795_v40  ;;  %v7655_v2 = vld [vmem:[#allocation11 + $0x2d8] sm:$0xf]  ;;  %v8299_v57 = vld [vmem:[#allocation11 + $0x7e0] sm:$0xf] }
 0x18b   :  { %v6584_v19 = vor.u32 %v9196_v4, %v6581_v0  ;;  %v9188_v23 = vld [vmem:[#allocation8 + $0x21c] sm:$0xf]  ;;  %v760_v10 = vperm.slane %v10195_v1, 3 }
 0x18c   :  { %2433 = vmatpush.bf16.msrb.mxu1 %v6680_v32  ;;  %v6549_v29 = vld [vmem:[#allocation8 + $0x238] sm:$0xf0]  ;;  %v9394_v32 = vld [vmem:[#allocation11 + $0x88] sm:$0xf0]  ;;  %v10225_v51 = vpop.f32.mrf.mxu2 }
 0x18d   :  { %2461 = vmatpush.bf16.msrb.mxu3 %v7128_v38  ;;  %v2089_v38 = vadd.f32 %v10179_v26, %v2076_v16  ;;  %v9583_v42 = vld [vmem:[#allocation11 + $0x670] sm:$0xf0]  ;;  %v7348_v48 = vor.u32 %v9394_v32, %v7347_v30  ;;  %v7683_v26 = vld [vmem:[#allocation11 + $0x310] sm:$0xf] }
 0x18e   :  { %2450 = vmatpush.bf16.msrb.mxu0 %v6808_v33  ;;  %5318 = vmatpush.bf16.msra.mxu2 %v7460_v35  ;;  %v7711_v33 = vld [vmem:[#allocation11 + $0x348] sm:$0xf]  ;;  %v9485_v35 = vld [vmem:[#allocation11 + $0x360] sm:$0xf0]  ;;  %v10222_v46 = vpop.f32.mrf.mxu0  ;;  %v9387_v54 = vld [vmem:[#allocation11 + $0x50] sm:$0xf0]  ;;  %v7684_v61 = vor.u32 %v9478_v55, %v7683_v26 }
 0x18f   :  { %v7712_v49 = vor.u32 %v9485_v35, %v7711_v33  ;;  %v2102_v59 = vadd.f32 %v10185_v18, %v2089_v38  ;;  %v9499_v5 = vld [vmem:[#allocation11 + $0x3d0] sm:$0xf0]  ;;  %v9653_v18 = vld [vmem:[#allocation11 + $0x8a0] sm:$0xf0]  ;;  %v8019_v30 = vld [vmem:[#allocation11 + $0x5b0] sm:$0xf] }
 0x190   :  { %2434 = vmatpush.bf16.msrb.mxu1 %v6648_v50  ;;  %v7319_v50 = vld [vmem:[#allocation11 + $0x38] sm:$0xf]  ;;  %v7571_v55 = vld [vmem:[#allocation11 + $0x230] sm:$0xf] }
 0x191   :  { %2451 = vmatmul.bf16.vlgmr.msrb.gmra.mxu0 %v10151_v27  ;;  %2462 = vmatpush.bf16.msrb.mxu3 %v7096_v56  ;;  %v9520_v27 = vld [vmem:[#allocation11 + $0x478] sm:$0xf0]  ;;  %v2180_v56 = vadd.f32 %v10211_v44, %v2167_v43  ;;  %v7320_v60 = vor.u32 %v9387_v54, %v7319_v50  ;;  %v7767_v44 = vld [vmem:[#allocation11 + $0x3b8] sm:$0xf]  ;;  %v2469_v9 = vmax.f32 %v2102_v59, 0.0 }
 0x192   :  { %5343 = vmatpush.bf16.msra.mxu0 %v7936_v25  ;;  %5319 = vmatpush.bf16.msra.mxu2 %v7432_v53  ;;  %v7852_v31 = vor.u32 %v9520_v27, %v7851_v15  ;;  %v6552_v25 = vor.u32 %v9188_v23, %v6549_v29  ;;  %v7824_v53 = vor.u32 %v9513_v37, %v7823_v22  ;;  %v8355_v23 = vld [vmem:[#allocation11 + $0x850] sm:$0xf]  ;;  %v9646_v29 = vld [vmem:[#allocation11 + $0x868] sm:$0xf0]  ;;  %v7599_v22 = vld [vmem:[#allocation11 + $0x268] sm:$0xf] }
 0x193   :  { %v2193_v4 = vadd.f32 %v10202_v39, %v2180_v56  ;;  %v7768_v39 = vor.u32 %v9499_v5, %v7767_v44  ;;  %v10233_v33 = vpack.c.bf16 %v2469_v9, %v2469_v9  ;;  %v9457_v37 = vld [vmem:[#allocation11 + $0x280] sm:$0xf0]  ;;  %v9555_v50 = vld [vmem:[#allocation11 + $0x590] sm:$0xf0]  ;;  %v9450_v56 = vld [vmem:[#allocation11 + $0x248] sm:$0xf0] }
 0x194   :  { %2435 = vmatpush.bf16.msrb.mxu1 %v6616_v62  ;;  %v9380_v62 = vld [vmem:[#allocation11 + $0x18] sm:$0xf0]  ;;  %v2220_v27 = vpop.f32.mrf.mxu2  ;;  %v7600_v54 = vor.u32 %v9457_v37, %v7599_v22  ;;  %v8803_v9 = vld [vmem:[#allocation11 + $0xbd0] sm:$0xf]  ;;  %v9702_v22 = vld [vmem:[#allocation11 + $0xa28] sm:$0xf0] }
 0x195   :  { %2463 = vmatpush.bf16.msrb.mxu3 %v7064_v6  ;;  %v8383_v6 = vld [vmem:[#allocation11 + $0x888] sm:$0xf]  ;;  %v2206_v20 = vadd.f32 %v10213_v45, %v2193_v4  ;;  %v2219_v45 = vadd.f32 %v10225_v51, %v760_v10  ;;  %v9548_v59 = vld [vmem:[#allocation11 + $0x558] sm:$0xf0]  ;;  %v9758_v10 = vld [vmem:[#allocation11 + $0xbe8] sm:$0xf0] }
 0x196   :  { %5344 = vmatpush.bf16.msra.mxu0 %v7908_v12  ;;  %5320 = vmatpush.bf16.msra.mxu2 %v7404_v3  ;;  %v8104_v12 = vor.u32 %v9583_v42, %v8103_v41  ;;  %v9471_v3 = vld [vmem:[#allocation11 + $0x2f0] sm:$0xf0]  ;;  %v2246_v11 = vpop.f32.mrf.mxu0  ;;  %v8384_v16 = vor.u32 %v9653_v18, %v8383_v6  ;;  %v8327_v41 = vld [vmem:[#allocation11 + $0x818] sm:$0xf]  ;;  %v8271_v4 = vld [vmem:[#allocation11 + $0x7a8] sm:$0xf] }
 0x197   :  { %v7656_v15 = vor.u32 %v9471_v3, %v7655_v2  ;;  %v2471_v38 = vmax.f32 %v2206_v20, 0.0  ;;  %v9639_v42 = vld [vmem:[#allocation11 + $0x830] sm:$0xf0]  ;;  %v7543_v2 = vld [vmem:[#allocation11 + $0x1f8] sm:$0xf] }
 0x198   :  { %2436 = vmatpush.bf16.msrb.mxu1 %v6584_v19  ;;  %2464 = vmatmul.bf16.vlgmr.msrb.gmra.mxu3 %v10155_v52  ;;  %v9576_v52 = vld [vmem:[#allocation11 + $0x638] sm:$0xf0]  ;;  %v7739_v19 = vld [vmem:[#allocation11 + $0x380] sm:$0xf]  ;;  %v8328_v26 = vor.u32 %v9639_v42, %v8327_v41  ;;  %v9443_v3 = vld [vmem:[#allocation11 + $0x210] sm:$0xf0] }
 0x199   :  { %5356 = vmatpush.bf16.msra.mxu3 %v8160_v13  ;;  %v8076_v0 = vor.u32 %v9576_v52, %v8075_v58  ;;  %v7292_v13 = vor.u32 %v9380_v62, %v7291_v24  ;;  %v9632_v58 = vld [vmem:[#allocation11 + $0x7f8] sm:$0xf0]  ;;  %v7963_v52 = vld [vmem:[#allocation11 + $0x540] sm:$0xf]  ;;  %v8831_v24 = vld [vmem:[#allocation11 + $0xc08] sm:$0xf] }
 0x19a   :  { %5345 = vmatpush.bf16.msra.mxu0 %v7880_v7  ;;  %5321 = vmatpush.bf16.msra.mxu2 %v7376_v28  ;;  %v8047_v7 = vld [vmem:[#allocation11 + $0x5e8] sm:$0xf]  ;;  %v9492_v28 = vld [vmem:[#allocation11 + $0x398] sm:$0xf0]  ;;  %v9765_v62 = vld [vmem:[#allocation11 + $0xc20] sm:$0xf0] }
 0x19b   :  { %v8048_v21 = vor.u32 %v9569_v8, %v8047_v7  ;;  %v7740_v35 = vor.u32 %v9492_v28, %v7739_v19  ;;  %v8832_v44 = vor.u32 %v9765_v62, %v8831_v24  ;;  %v2154_v7 = vadd.f32 %v10199_v34, %v10207_v47  ;;  %v8243_v27 = vld [vmem:[#allocation11 + $0x770] sm:$0xf]  ;;  %v8775_v47 = vld [vmem:[#allocation11 + $0xb98] sm:$0xf]  ;;  %v8187_v42 = vld [vmem:[#allocation11 + $0x700] sm:$0xf] }
 0x19c   :  { %2437 = vmatpush.bf16.msrb.mxu1 %v6552_v25  ;;  %v2231_v43 = vpop.f32.mrf.mxu1  ;;  %v7544_v8 = vor.u32 %v9443_v3, %v7543_v2  ;;  %v9419_v24 = vld [vmem:[#allocation11 + $0x154] sm:$0xf]  ;;  %v7461_v62 = vld [vmem:[#allocation11 + $0x16c] sm:$0xf0]  ;;  %v9730_v2 = vld [vmem:[#allocation11 + $0xb08] sm:$0xf0] }
 0x19d   :  { %5357 = vmatpush.bf16.msra.mxu3 %v8132_v36  ;;  %v8356_v36 = vor.u32 %v9646_v29, %v8355_v23  ;;  %v2470_v20 = vmax.f32 %v2154_v7, 0.0 }
 0x19e   :  { %5346 = vmatpush.bf16.msra.mxu0 %v7852_v31  ;;  %5322 = vmatpush.bf16.msra.mxu2 %v7348_v48  ;;  %v9562_v31 = vld [vmem:[#allocation11 + $0x5c8] sm:$0xf0]  ;;  %v2257_v48 = vpop.f32.mrf.mxu3 }
 0x19f   :  { %2438 = vmatmul.bf16.vlgmr.msrb.gmra.mxu1 %v10159_v14  ;;  %v7627_v14 = vld [vmem:[#allocation11 + $0x2a0] sm:$0xf]  ;;  %v8020_v25 = vor.u32 %v9562_v31, %v8019_v30  ;;  %v8215_v30 = vld [vmem:[#allocation11 + $0x738] sm:$0xf]  ;;  %v10248_v37 = vpack.c.bf16 %v2470_v20, %v2470_v20 }
 0x1a0   :  { %5330 = vmatpush.bf16.msra.mxu1 %v7712_v49  ;;  %v7628_v32 = vor.u32 %v9464_v17, %v7627_v14  ;;  %v7991_v49 = vld [vmem:[#allocation11 + $0x578] sm:$0xf]  ;;  %v8607_v14 = vld [vmem:[#allocation11 + $0xa48] sm:$0xf]  ;;  %v9709_v17 = vld [vmem:[#allocation11 + $0xa60] sm:$0xf0] }
 0x1a1   :  { %5358 = vmatpush.bf16.msra.mxu3 %v8104_v12  ;;  %v10237_v12 = vpack.c.bf16 %v2471_v38, %v2471_v38  ;;  %v7992_v40 = vor.u32 %v9555_v50, %v7991_v49  ;;  %v8608_v29 = vor.u32 %v9709_v17, %v8607_v14  ;;  %v8747_v38 = vld [vmem:[#allocation11 + $0xb60] sm:$0xf]  ;;  %v8551_v49 = vld [vmem:[#allocation11 + $0x9d8] sm:$0xf]  ;;  %v9695_v50 = vld [vmem:[#allocation11 + $0x9f0] sm:$0xf0] }
 0x1a2   :  { %5347 = vmatpush.bf16.msra.mxu0 %v7824_v53  ;;  %5323 = vmatpush.bf16.msra.mxu2 %v7320_v60  ;;  %v2232_v53 = vadd.f32 %v2231_v43, %v2219_v45  ;;  %v9744_v45 = vld [vmem:[#allocation11 + $0xb78] sm:$0xf0]  ;;  %v9405_v17 = vld [vmem:[#allocation11 + $0xe4] sm:$0xf]  ;;  %v7405_v20 = vld [vmem:[#allocation11 + $0xfc] sm:$0xf0] }
 0x1a3   :  { %v8748_v43 = vor.u32 %v9744_v45, %v8747_v38  ;;  %v9538_v38 = vld [vmem:[#allocation11 + $0x50c] sm:$0xf]  ;;  %v7937_v45 = vld [vmem:[#allocation11 + $0x524] sm:$0xf0] }
 0x1a4   :  { %5331 = vmatpush.bf16.msra.mxu1 %v7684_v61  ;;  %v2245_v51 = vadd.f32 %v10222_v46, %v2232_v53  ;;  %v7572_v61 = vor.u32 %v9450_v56, %v7571_v55  ;;  %v7964_v46 = vor.u32 %v9548_v59, %v7963_v52  ;;  %v2233_v6 = vpop.f32.mrf.mxu1  ;;  %v9426_v53 = vld [vmem:[#allocation11 + $0x18c] sm:$0xf]  ;;  %v9737_v55 = vld [vmem:[#allocation11 + $0xb40] sm:$0xf0]  ;;  %v8523_v59 = vld [vmem:[#allocation11 + $0x9a0] sm:$0xf] }
 0x1a5   :  { %5359 = vmatpush.bf16.msra.mxu3 %v8076_v0  ;;  %v9625_v0 = vld [vmem:[#allocation11 + $0x7c0] sm:$0xf0]  ;;  %v9412_v6 = vld [vmem:[#allocation11 + $0x11c] sm:$0xf] }
 0x1a6   :  { %5348 = vmatpush.bf16.msra.mxu0 %v7796_v63  ;;  %5324 = vmatpush.bf16.msra.mxu2 %v7292_v13  ;;  %v2258_v60 = vadd.f32 %v2257_v48, %v2245_v51  ;;  %v8300_v63 = vor.u32 %v9632_v58, %v8299_v57  ;;  %v2259_v18 = vpop.f32.mrf.mxu3  ;;  %v8272_v11 = vor.u32 %v9625_v0, %v8271_v4  ;;  %v7515_v13 = vld [vmem:[#allocation11 + $0x1c0] sm:$0xf]  ;;  %v9604_v48 = vld [vmem:[#allocation11 + $0x718] sm:$0xf0]  ;;  %v8495_v4 = vld [vmem:[#allocation11 + $0x968] sm:$0xf] }
 0x1a7   :  { %v8188_v51 = vor.u32 %v9604_v48, %v8187_v42  ;;  %v9681_v0 = vld [vmem:[#allocation11 + $0x980] sm:$0xf0]  ;;  %v7433_v18 = vld [vmem:[#allocation11 + $0x134] sm:$0xf0]  ;;  %v7940_v42 = vor.u32 %v9538_v38, %v7937_v45  ;;  %v7825_v38 = vld [vmem:[#allocation11 + $0x444] sm:$0xf0] }
 0x1a8   :  { %5332 = vmatpush.bf16.msra.mxu1 %v7656_v15  ;;  %v2472_v5 = vmax.f32 %v2258_v60, 0.0  ;;  %v9436_v15 = vld [vmem:[#allocation11 + $0x1d8] sm:$0xf0] }
 0x1a9   :  { %5360 = vmatpush.bf16.msra.mxu3 %v8048_v21  ;;  %5325 = vmatmul.bf16.vlgmr.msra.gmra.mxu2 %v10233_v33  ;;  %v7516_v34 = vor.u32 %v9436_v15, %v7515_v13  ;;  %v9751_v21 = vld [vmem:[#allocation11 + $0xbb0] sm:$0xf0]  ;;  %v9688_v60 = vld [vmem:[#allocation11 + $0x9b8] sm:$0xf0]  ;;  %v8496_v13 = vor.u32 %v9681_v0, %v8495_v4 }
 0x1aa   :  { %5349 = vmatpush.bf16.msra.mxu0 %v7768_v39  ;;  %5369 = vmatpush.bf16.msrb.mxu2 %v8384_v16  ;;  %v8804_v39 = vor.u32 %v9758_v10, %v8803_v9  ;;  %v9618_v16 = vld [vmem:[#allocation11 + $0x788] sm:$0xf0]  ;;  %v10243_v19 = vpack.c.bf16 %v2472_v5, %v2472_v5  ;;  %v8776_v31 = vor.u32 %v9751_v21, %v8775_v47  ;;  %v8663_v9 = vld [vmem:[#allocation11 + $0xab8] sm:$0xf]  ;;  %v9723_v10 = vld [vmem:[#allocation11 + $0xad0] sm:$0xf0] }
 0x1ab   :  { %v8244_v23 = vor.u32 %v9618_v16, %v8243_v27  ;;  %v8524_v3 = vor.u32 %v9688_v60, %v8523_v59  ;;  %v8664_v15 = vor.u32 %v9723_v10, %v8663_v9  ;;  %v7436_v27 = vor.u32 %v9412_v6, %v7433_v18  ;;  %v9674_v16 = vld [vmem:[#allocation11 + $0x948] sm:$0xf0]  ;;  %v9716_v47 = vld [vmem:[#allocation11 + $0xa98] sm:$0xf0]  ;;  %v7713_v60 = vld [vmem:[#allocation11 + $0x364] sm:$0xf0] }
 0x1ac   :  { %5333 = vmatpush.bf16.msra.mxu1 %v7628_v32  ;;  %v2270_v32 = vpop.f32.mrf.mxu2  ;;  %v9482_v59 = vld [vmem:[#allocation11 + $0x34c] sm:$0xf]  ;;  %v9524_v0 = vld [vmem:[#allocation11 + $0x49c] sm:$0xf]  ;;  %v7321_v18 = vld [vmem:[#allocation11 + $0x54] sm:$0xf0] }
 0x1ad   :  { %5361 = vmatpush.bf16.msra.mxu3 %v8020_v25  ;;  %v8971_v10 = vld [vmem:[#allocation11 + $0xd20] sm:$0xf] }
 0x1ae   :  { %5350 = vmatpush.bf16.msra.mxu0 %v7740_v35  ;;  %5370 = vmatpush.bf16.msrb.mxu2 %v8356_v36  ;;  %v10245_v28 = vpop.f32.mrf.mxu0  ;;  %v9611_v35 = vld [vmem:[#allocation11 + $0x750] sm:$0xf0]  ;;  %v8579_v36 = vld [vmem:[#allocation11 + $0xa10] sm:$0xf] }
 0x1af   :  { %v8216_v25 = vor.u32 %v9611_v35, %v8215_v30  ;;  %v8580_v41 = vor.u32 %v9702_v22, %v8579_v36  ;;  %v7408_v35 = vor.u32 %v9405_v17, %v7405_v20  ;;  %v9667_v36 = vld [vmem:[#allocation11 + $0x910] sm:$0xf0]  ;;  %v7293_v17 = vld [vmem:[#allocation11 + $0x1c] sm:$0xf0]  ;;  %v9468_v20 = vld [vmem:[#allocation11 + $0x2dc] sm:$0xf] }
 0x1b0   :  { %5334 = vmatpush.bf16.msra.mxu1 %v7600_v54  ;;  %v7489_v54 = vld [vmem:[#allocation11 + $0x1a4] sm:$0xf0] }
 0x1b1   :  { %5351 = vmatmul.bf16.vlgmr.msra.gmra.mxu0 %v10237_v12  ;;  %5362 = vmatpush.bf16.msra.mxu3 %v7992_v40  ;;  %v8552_v40 = vor.u32 %v9695_v50, %v8551_v49  ;;  %v7492_v52 = vor.u32 %v9426_v53, %v7489_v54  ;;  %v8411_v49 = vld [vmem:[#allocation11 + $0x8c0] sm:$0xf]  ;;  %v9027_v54 = vld [vmem:[#allocation11 + $0xd90] sm:$0xf] }
 0x1b2   :  { %5371 = vmatpush.bf16.msrb.mxu2 %v8328_v26  ;;  %5395 = vmatpush.bf16.msrb.mxu0 %v8832_v44  ;;  %v8719_v26 = vld [vmem:[#allocation11 + $0xb28] sm:$0xf] }
 0x1b3   :  { %v8720_v57 = vor.u32 %v9737_v55, %v8719_v26  ;;  %v9814_v26 = vld [vmem:[#allocation11 + $0xda8] sm:$0xf0]  ;;  %v9531_v55 = vld [vmem:[#allocation11 + $0x4d4] sm:$0xf] }
 0x1b4   :  { %5335 = vmatpush.bf16.msra.mxu1 %v7572_v61  ;;  %v2272_v58 = vpop.f32.mrf.mxu2  ;;  %v761_v61 = vperm.slane %v10195_v1, 4 }
 0x1b5   :  { %5363 = vmatpush.bf16.msra.mxu3 %v7964_v46  ;;  %v7464_v46 = vor.u32 %v9419_v24, %v7461_v62  ;;  %v7909_v58 = vld [vmem:[#allocation11 + $0x4ec] sm:$0xf0]  ;;  %v8999_v62 = vld [vmem:[#allocation11 + $0xd58] sm:$0xf] }
 0x1b6   :  { %5372 = vmatpush.bf16.msrb.mxu2 %v8300_v63  ;;  %5396 = vmatpush.bf16.msrb.mxu0 %v8804_v39  ;;  %v2298_v56 = vpop.f32.mrf.mxu0  ;;  %v8691_v63 = vld [vmem:[#allocation11 + $0xaf0] sm:$0xf]  ;;  %v2271_v5 = vadd.f32 %v2270_v32, %v761_v61  ;;  %v9821_v32 = vld [vmem:[#allocation11 + $0xde0] sm:$0xf0]  ;;  %v7912_v61 = vor.u32 %v9531_v55, %v7909_v58  ;;  %v7601_v58 = vld [vmem:[#allocation11 + $0x284] sm:$0xf0] }
 0x1b7   :  { %v8692_v44 = vor.u32 %v9730_v2, %v8691_v63  ;;  %v8467_v39 = vld [vmem:[#allocation11 + $0x930] sm:$0xf]  ;;  %v9807_v63 = vld [vmem:[#allocation11 + $0xd70] sm:$0xf0] }
 0x1b8   :  { %5336 = vmatpush.bf16.msra.mxu1 %v7544_v8  ;;  %5364 = vmatmul.bf16.vlgmr.msra.gmra.mxu3 %v10243_v19  ;;  %v9000_v4 = vor.u32 %v9807_v63, %v8999_v62  ;;  %v8887_v62 = vld [vmem:[#allocation11 + $0xc78] sm:$0xf]  ;;  %v9779_v63 = vld [vmem:[#allocation11 + $0xc90] sm:$0xf0] }
 0x1ba   :  { %5373 = vmatpush.bf16.msrb.mxu2 %v8272_v11  ;;  %5397 = vmatpush.bf16.msrb.mxu0 %v8776_v31  ;;  %v9055_v31 = vld [vmem:[#allocation11 + $0xdc8] sm:$0xf] }
 0x1bb   :  { %v2309_v8 = vpop.f32.mrf.mxu3  ;;  %v9056_v22 = vor.u32 %v9821_v32, %v9055_v31 }
 0x1bc   :  { %5337 = vmatpush.bf16.msra.mxu1 %v7516_v34  ;;  %v2283_v7 = vpop.f32.mrf.mxu1  ;;  %v8635_v34 = vld [vmem:[#allocation11 + $0xa80] sm:$0xf] }
 0x1bd   :  { %v2284_v11 = vadd.f32 %v2283_v7, %v2271_v5  ;;  %v8636_v30 = vor.u32 %v9716_v47, %v8635_v34  ;;  %5408 = vmatpush.bf16.msrb.mxu3 %v9056_v22  ;;  %v7881_v5 = vld [vmem:[#allocation11 + $0x4b4] sm:$0xf0]  ;;  %v9475_v7 = vld [vmem:[#allocation11 + $0x314] sm:$0xf]  ;;  %v9510_v22 = vld [vmem:[#allocation11 + $0x42c] sm:$0xf] }
 0x1be   :  { %5374 = vmatpush.bf16.msrb.mxu2 %v8244_v23  ;;  %5398 = vmatpush.bf16.msrb.mxu0 %v8748_v43  ;;  %v8468_v23 = vor.u32 %v9674_v16, %v8467_v39  ;;  %v7884_v9 = vor.u32 %v9524_v0, %v7881_v5  ;;  %v9517_v16 = vld [vmem:[#allocation11 + $0x464] sm:$0xf]  ;;  %v7657_v34 = vld [vmem:[#allocation11 + $0x2f4] sm:$0xf0] }
 0x1bf   :  { %5338 = vmatmul.bf16.vlgmr.msra.gmra.mxu1 %v10248_v37  ;;  %v2297_v14 = vadd.f32 %v10245_v28, %v2284_v11  ;;  %v9398_v28 = vld [vmem:[#allocation11 + $0xac] sm:$0xf]  ;;  %v9800_v11 = vld [vmem:[#allocation11 + $0xd38] sm:$0xf0]  ;;  %v7769_v0 = vld [vmem:[#allocation11 + $0x3d4] sm:$0xf0] }
 0x1c0   :  { %5382 = vmatpush.bf16.msrb.mxu1 %v8608_v29  ;;  %v8439_v29 = vld [vmem:[#allocation11 + $0x8f8] sm:$0xf]  ;;  %v8972_v39 = vor.u32 %v9800_v11, %v8971_v10  ;;  %v8301_v10 = vld [vmem:[#allocation11 + $0x7fc] sm:$0xf0] }
 0x1c1   :  { %v2310_v21 = vadd.f32 %v2309_v8, %v2297_v14  ;;  %v8440_v53 = vor.u32 %v9667_v36, %v8439_v29  ;;  %v7685_v8 = vld [vmem:[#allocation11 + $0x32c] sm:$0xf0]  ;;  %v7853_v14 = vld [vmem:[#allocation11 + $0x47c] sm:$0xf0]  ;;  %v8943_v29 = vld [vmem:[#allocation11 + $0xce8] sm:$0xf] }
 0x1c2   :  { %5375 = vmatpush.bf16.msrb.mxu2 %v8216_v25  ;;  %5399 = vmatpush.bf16.msrb.mxu0 %v8720_v57  ;;  %v9028_v57 = vor.u32 %v9814_v26, %v9027_v54  ;;  %v7856_v47 = vor.u32 %v9517_v16, %v7853_v14  ;;  %v9786_v54 = vld [vmem:[#allocation11 + $0xcc8] sm:$0xf0]  ;;  %v9503_v26 = vld [vmem:[#allocation11 + $0x3f4] sm:$0xf]  ;;  %v8859_v11 = vld [vmem:[#allocation11 + $0xc40] sm:$0xf] }
 0x1c3   :  { %v2473_v25 = vmax.f32 %v2310_v21, 0.0  ;;  %v2311_v48 = vpop.f32.mrf.mxu3  ;;  %v9650_v21 = vld [vmem:[#allocation11 + $0x88c] sm:$0xf]  ;;  %v9440_v16 = vld [vmem:[#allocation11 + $0x1fc] sm:$0xf] }
 0x1c4   :  { %5383 = vmatpush.bf16.msrb.mxu1 %v8580_v41  ;;  %v7377_v41 = vld [vmem:[#allocation11 + $0xc4] sm:$0xf0]  ;;  %v2285_v43 = vpop.f32.mrf.mxu1  ;;  %5409 = vmatpush.bf16.msrb.mxu3 %v9028_v57  ;;  %v9643_v48 = vld [vmem:[#allocation11 + $0x854] sm:$0xf]  ;;  %v9454_v57 = vld [vmem:[#allocation11 + $0x26c] sm:$0xf] }
 0x1c5   :  { %v10253_v50 = vpack.c.bf16 %v2473_v25, %v2473_v25  ;;  %v7380_v56 = vor.u32 %v9398_v28, %v7377_v41  ;;  %v9461_v28 = vld [vmem:[#allocation11 + $0x2a4] sm:$0xf]  ;;  %v7629_v41 = vld [vmem:[#allocation11 + $0x2bc] sm:$0xf0]  ;;  %v762_v43 = vperm.slane %v10195_v1, 5 }
 0x1c6   :  { %5376 = vmatpush.bf16.msrb.mxu2 %v8188_v51  ;;  %5400 = vmatpush.bf16.msrb.mxu0 %v8692_v44  ;;  %v9660_v51 = vld [vmem:[#allocation11 + $0x8d8] sm:$0xf0]  ;;  %v7716_v44 = vor.u32 %v9482_v59, %v7713_v60  ;;  %v7632_v55 = vor.u32 %v9461_v28, %v7629_v41  ;;  %v8329_v1 = vld [vmem:[#allocation11 + $0x834] sm:$0xf0]  ;;  %v9615_v28 = vld [vmem:[#allocation11 + $0x774] sm:$0xf] }
 0x1c7   :  { %v8412_v24 = vor.u32 %v9660_v51, %v8411_v49  ;;  %v8357_v49 = vld [vmem:[#allocation11 + $0x86c] sm:$0xf0]  ;;  %v9636_v60 = vld [vmem:[#allocation11 + $0x81c] sm:$0xf]  ;;  %v9587_v41 = vld [vmem:[#allocation11 + $0x694] sm:$0xf] }
 0x1c8   :  { %5384 = vmatpush.bf16.msrb.mxu1 %v8552_v40  ;;  %v9391_v40 = vld [vmem:[#allocation11 + $0x74] sm:$0xf]  ;;  %5410 = vmatpush.bf16.msrb.mxu3 %v9000_v4  ;;  %v7797_v51 = vld [vmem:[#allocation11 + $0x40c] sm:$0xf0]  ;;  %v8888_v4 = vor.u32 %v9779_v63, %v8887_v62  ;;  %v8332_v5 = vor.u32 %v9636_v60, %v8329_v1  ;;  %v9601_v62 = vld [vmem:[#allocation11 + $0x704] sm:$0xf] }
 0x1c9   :  { %5377 = vmatmul.bf16.vlgmr.msrb.gmra.mxu2 %v10253_v50  ;;  %v8581_v60 = vld [vmem:[#allocation11 + $0xa2c] sm:$0xf0]  ;;  %v9573_v63 = vld [vmem:[#allocation11 + $0x624] sm:$0xf] }
 0x1ca   :  { %5421 = vmatpush.bf16.msra.mxu2 %v7492_v52  ;;  %5401 = vmatpush.bf16.msrb.mxu0 %v8664_v15  ;;  %v7349_v52 = vld [vmem:[#allocation11 + $0x8c] sm:$0xf0]  ;;  %v7688_v15 = vor.u32 %v9475_v7, %v7685_v8 }
 0x1cc   :  { %5385 = vmatpush.bf16.msrb.mxu1 %v8524_v3  ;;  %v7352_v3 = vor.u32 %v9391_v40, %v7349_v52  ;;  %v2322_v6 = vpop.f32.mrf.mxu2  ;;  %5411 = vmatpush.bf16.msrb.mxu3 %v8972_v39  ;;  %v8360_v40 = vor.u32 %v9643_v48, %v8357_v49  ;;  %v7800_v52 = vor.u32 %v9503_v26, %v7797_v51  ;;  %v9706_v48 = vld [vmem:[#allocation11 + $0xa4c] sm:$0xf]  ;;  %v8609_v49 = vld [vmem:[#allocation11 + $0xa64] sm:$0xf0]  ;;  %v9608_v51 = vld [vmem:[#allocation11 + $0x73c] sm:$0xf] }
 0x1cd   :  { %v2323_v59 = vadd.f32 %v2322_v6, %v762_v43  ;;  %v7573_v6 = vld [vmem:[#allocation11 + $0x24c] sm:$0xf0] }
 0x1ce   :  { %5422 = vmatpush.bf16.msra.mxu2 %v7464_v46  ;;  %5402 = vmatpush.bf16.msrb.mxu0 %v8636_v30  ;;  %v10256_v2 = vpop.f32.mrf.mxu0  ;;  %v9384_v46 = vld [vmem:[#allocation11 + $0x3c] sm:$0xf]  ;;  %v9793_v30 = vld [vmem:[#allocation11 + $0xd00] sm:$0xf0]  ;;  %v8245_v43 = vld [vmem:[#allocation11 + $0x78c] sm:$0xf0] }
 0x1cf   :  { %v8944_v36 = vor.u32 %v9793_v30, %v8943_v29  ;;  %v9622_v29 = vld [vmem:[#allocation11 + $0x7ac] sm:$0xf]  ;;  %v8273_v30 = vld [vmem:[#allocation11 + $0x7c4] sm:$0xf0] }
 0x1d0   :  { %5386 = vmatpush.bf16.msrb.mxu1 %v8496_v13  ;;  %v7324_v13 = vor.u32 %v9384_v46, %v7321_v18  ;;  %v7604_v46 = vor.u32 %v9454_v57, %v7601_v58  ;;  %v9447_v18 = vld [vmem:[#allocation11 + $0x234] sm:$0xf]  ;;  %v8105_v57 = vld [vmem:[#allocation11 + $0x674] sm:$0xf0] }
 0x1d1   :  { %5412 = vmatpush.bf16.msrb.mxu3 %v8944_v36  ;;  %v7576_v39 = vor.u32 %v9447_v18, %v7573_v6  ;;  %v9430_v18 = vld [vmem:[#allocation11 + $0x1a8] sm:$0xf0] }
 0x1d2   :  { %5423 = vmatpush.bf16.msra.mxu2 %v7436_v27  ;;  %5447 = vmatpush.bf16.msra.mxu0 %v7940_v42  ;;  %v9377_v27 = vld [vmem:[#allocation11 + $0x4] sm:$0xf]  ;;  %v7828_v42 = vor.u32 %v9510_v22, %v7825_v38 }
 0x1d3   :  { %v7296_v32 = vor.u32 %v9377_v27, %v7293_v17  ;;  %v7741_v17 = vld [vmem:[#allocation11 + $0x39c] sm:$0xf0]  ;;  %v9433_v38 = vld [vmem:[#allocation11 + $0x1c4] sm:$0xf] }
 0x1d4   :  { %5387 = vmatpush.bf16.msrb.mxu1 %v8468_v23  ;;  %v8385_v23 = vld [vmem:[#allocation11 + $0x8a4] sm:$0xf0]  ;;  %v2324_v45 = vpop.f32.mrf.mxu2 }
 0x1d5   :  { %v8388_v25 = vor.u32 %v9650_v21, %v8385_v23  ;;  %v9594_v21 = vld [vmem:[#allocation11 + $0x6cc] sm:$0xf]  ;;  %v8161_v23 = vld [vmem:[#allocation11 + $0x6e4] sm:$0xf0]  ;;  %v7517_v45 = vld [vmem:[#allocation11 + $0x1dc] sm:$0xf0] }
 0x1d6   :  { %5424 = vmatpush.bf16.msra.mxu2 %v7408_v35  ;;  %5448 = vmatpush.bf16.msra.mxu0 %v7912_v61  ;;  %v2350_v31 = vpop.f32.mrf.mxu0  ;;  %v7660_v35 = vor.u32 %v9468_v20, %v7657_v34  ;;  %v7545_v34 = vld [vmem:[#allocation11 + $0x214] sm:$0xf0] }
 0x1d7   :  { %v8164_v31 = vor.u32 %v9594_v21, %v8161_v23  ;;  %v7548_v22 = vor.u32 %v9440_v16, %v7545_v34  ;;  %v10266_v16 = vld [vmem:[#allocation10] sm:$0xff]  ;;  %v8021_v21 = vld [vmem:[#allocation11 + $0x5cc] sm:$0xf0] }
 0x1d8   :  { %5388 = vmatpush.bf16.msrb.mxu1 %v8440_v53  ;;  %v8915_v53 = vld [vmem:[#allocation11 + $0xcb0] sm:$0xf] }
 0x1da   :  { %5425 = vmatpush.bf16.msra.mxu2 %v7380_v56  ;;  %5449 = vmatpush.bf16.msra.mxu0 %v7884_v9  ;;  %v8916_v56 = vor.u32 %v9786_v54, %v8915_v53  ;;  %v9629_v9 = vld [vmem:[#allocation11 + $0x7e4] sm:$0xf]  ;;  %v7520_v54 = vor.u32 %v9433_v38, %v7517_v45 }
 0x1db   :  { %v8304_v20 = vor.u32 %v9629_v9, %v8301_v10  ;;  %v9566_v9 = vld [vmem:[#allocation11 + $0x5ec] sm:$0xf]  ;;  %v8049_v10 = vld [vmem:[#allocation11 + $0x604] sm:$0xf0] }
 0x1dc   :  { %5389 = vmatpush.bf16.msrb.mxu1 %v8412_v24  ;;  %5413 = vmatpush.bf16.msrb.mxu3 %v8916_v56  ;;  %v2335_v61 = vpop.f32.mrf.mxu1  ;;  %v2361_v24 = vpop.f32.mrf.mxu3  ;;  %v8612_v56 = vor.u32 %v9706_v48, %v8609_v49  ;;  %v8469_v48 = vld [vmem:[#allocation11 + $0x94c] sm:$0xf0] }
 0x1de   :  { %5426 = vmatpush.bf16.msra.mxu2 %v7352_v3  ;;  %5450 = vmatpush.bf16.msra.mxu0 %v7856_v47  ;;  %v9496_v3 = vld [vmem:[#allocation11 + $0x3bc] sm:$0xf] }
 0x1df   :  { %v7772_v7 = vor.u32 %v9496_v3, %v7769_v0  ;;  %v8077_v3 = vld [vmem:[#allocation11 + $0x63c] sm:$0xf0] }
 0x1e0   :  { %5434 = vmatpush.bf16.msra.mxu1 %v7716_v44  ;;  %v2336_v44 = vadd.f32 %v2335_v61, %v2323_v59  ;;  %5414 = vmatpush.bf16.msrb.mxu3 %v8888_v4  ;;  %v9699_v59 = vld [vmem:[#allocation11 + $0xa14] sm:$0xf]  ;;  %v8553_v4 = vld [vmem:[#allocation11 + $0x9f4] sm:$0xf0]  ;;  %v8080_v0 = vor.u32 %v9573_v63, %v8077_v3  ;;  %v9402_v63 = vld [vmem:[#allocation11 + $0xc8] sm:$0xf0] }
 0x1e2   :  { %5427 = vmatpush.bf16.msra.mxu2 %v7324_v13  ;;  %5451 = vmatpush.bf16.msra.mxu0 %v7828_v42  ;;  %v2349_v8 = vadd.f32 %v10256_v2, %v2336_v44  ;;  %v9772_v13 = vld [vmem:[#allocation11 + $0xc58] sm:$0xf0]  ;;  %v8133_v42 = vld [vmem:[#allocation11 + $0x6ac] sm:$0xf0]  ;;  %v8189_v44 = vld [vmem:[#allocation11 + $0x71c] sm:$0xf0] }
 0x1e3   :  { %v8860_v14 = vor.u32 %v9772_v13, %v8859_v11  ;;  %v8136_v53 = vor.u32 %v9587_v41, %v8133_v42  ;;  %v7993_v41 = vld [vmem:[#allocation11 + $0x594] sm:$0xf0] }
 0x1e4   :  { %5435 = vmatpush.bf16.msra.mxu1 %v7688_v15  ;;  %v9489_v15 = vld [vmem:[#allocation11 + $0x384] sm:$0xf]  ;;  %v2362_v27 = vadd.f32 %v2361_v24, %v2349_v8  ;;  %v8584_v24 = vor.u32 %v9699_v59, %v8581_v60  ;;  %v9664_v60 = vld [vmem:[#allocation11 + $0x8fc] sm:$0xf] }
 0x1e5   :  { %v7744_v47 = vor.u32 %v9489_v15, %v7741_v17  ;;  %5415 = vmatpush.bf16.msrb.mxu3 %v8860_v14  ;;  %v9685_v15 = vld [vmem:[#allocation11 + $0x9a4] sm:$0xf]  ;;  %v763_v14 = vperm.slane %v10266_v16, 6  ;;  %v7467_v17 = vld [vmem:[#allocation11 + $0x158] sm:$0xf] }
 0x1e6   :  { %5428 = vmatpush.bf16.msra.mxu2 %v7296_v32  ;;  %5452 = vmatpush.bf16.msra.mxu0 %v7800_v52  ;;  %v2474_v2 = vmax.f32 %v2362_v27, 0.0  ;;  %v2337_v32 = vpop.f32.mrf.mxu1  ;;  %v8217_v52 = vld [vmem:[#allocation11 + $0x754] sm:$0xf0]  ;;  %v8525_v27 = vld [vmem:[#allocation11 + $0x9bc] sm:$0xf0] }
 0x1e7   :  { %v8220_v61 = vor.u32 %v9608_v51, %v8217_v52  ;;  %v8528_v34 = vor.u32 %v9685_v15, %v8525_v27  ;;  %v7439_v32 = vld [vmem:[#allocation11 + $0x120] sm:$0xf]  ;;  %v9748_v27 = vld [vmem:[#allocation11 + $0xb9c] sm:$0xf] }
 0x1e8   :  { %5436 = vmatpush.bf16.msra.mxu1 %v7660_v35  ;;  %v2363_v35 = vpop.f32.mrf.mxu3  ;;  %v10261_v36 = vpack.c.bf16 %v2474_v2, %v2474_v2  ;;  %v9678_v2 = vld [vmem:[#allocation11 + $0x96c] sm:$0xf]  ;;  %v7965_v52 = vld [vmem:[#allocation11 + $0x55c] sm:$0xf0] }
 0x1e9   :  { %5429 = vmatmul.bf16.vlgmr.msra.gmra.mxu2 %v10233_v33  ;;  %5460 = vmatpush.bf16.msra.mxu3 %v8164_v31  ;;  %v9416_v35 = vld [vmem:[#allocation11 + $0x138] sm:$0xf0] }
 0x1ea   :  { %5473 = vmatpush.bf16.msrb.mxu2 %v8388_v25  ;;  %5453 = vmatpush.bf16.msra.mxu0 %v7772_v7  ;;  %v8276_v25 = vor.u32 %v9622_v29, %v8273_v30  ;;  %v8192_v7 = vor.u32 %v9601_v62, %v8189_v44  ;;  %v8497_v29 = vld [vmem:[#allocation11 + $0x984] sm:$0xf0]  ;;  %v7440_v42 = vor.u32 %v9416_v35, %v7439_v32  ;;  %v7383_v62 = vld [vmem:[#allocation11 + $0xb0] sm:$0xf] }
 0x1eb   :  { %5390 = vmatmul.bf16.vlgmr.msrb.gmra.mxu1 %v10261_v36 }
 0x1ec   :  { %5437 = vmatpush.bf16.msra.mxu1 %v7632_v55  ;;  %v8248_v55 = vor.u32 %v9615_v28, %v8245_v43  ;;  %v2374_v58 = vpop.f32.mrf.mxu2  ;;  %v9552_v28 = vld [vmem:[#allocation11 + $0x57c] sm:$0xf]  ;;  %v9671_v43 = vld [vmem:[#allocation11 + $0x934] sm:$0xf] }
 0x1ed   :  { %5461 = vmatpush.bf16.msra.mxu3 %v8136_v53  ;;  %v2375_v31 = vadd.f32 %v2374_v58, %v763_v14  ;;  %v7996_v49 = vor.u32 %v9552_v28, %v7993_v41  ;;  %v9545_v58 = vld [vmem:[#allocation11 + $0x544] sm:$0xf]  ;;  %v8391_v41 = vld [vmem:[#allocation11 + $0x890] sm:$0xf] }
 0x1ee   :  { %5474 = vmatpush.bf16.msrb.mxu2 %v8360_v40  ;;  %5454 = vmatpush.bf16.msra.mxu0 %v7744_v47  ;;  %v10264_v26 = vpop.f32.mrf.mxu0  ;;  %v9580_v40 = vld [vmem:[#allocation11 + $0x65c] sm:$0xf]  ;;  %v9559_v47 = vld [vmem:[#allocation11 + $0x5b4] sm:$0xf] }
 0x1ef   :  { %v8108_v1 = vor.u32 %v9580_v40, %v8105_v57  ;;  %v8024_v30 = vor.u32 %v9559_v47, %v8021_v21  ;;  %v8472_v40 = vor.u32 %v9671_v43, %v8469_v48  ;;  %v8833_v57 = vld [vmem:[#allocation11 + $0xc24] sm:$0xf0]  ;;  %v9388_v21 = vld [vmem:[#allocation11 + $0x58] sm:$0xf0]  ;;  %v9734_v43 = vld [vmem:[#allocation11 + $0xb2c] sm:$0xf] }
 0x1f0   :  { %5438 = vmatpush.bf16.msra.mxu1 %v7604_v46  ;;  %v9692_v46 = vld [vmem:[#allocation11 + $0x9dc] sm:$0xf]  ;;  %v8721_v48 = vld [vmem:[#allocation11 + $0xb44] sm:$0xf0] }
 0x1f1   :  { %5462 = vmatpush.bf16.msra.mxu3 %v8108_v1  ;;  %v8556_v8 = vor.u32 %v9692_v46, %v8553_v4  ;;  %v8441_v1 = vld [vmem:[#allocation11 + $0x914] sm:$0xf0] }
 0x1f2   :  { %5475 = vmatpush.bf16.msrb.mxu2 %v8332_v5  ;;  %v7495_v5 = vld [vmem:[#allocation11 + $0x190] sm:$0xf]  ;;  %v8444_v4 = vor.u32 %v9664_v60, %v8441_v1  ;;  %v9727_v60 = vld [vmem:[#allocation11 + $0xaf4] sm:$0xf] }
 0x1f3   :  { %v7496_v13 = vor.u32 %v9430_v18, %v7495_v5  ;;  %v8805_v5 = vld [vmem:[#allocation11 + $0xbec] sm:$0xf0]  ;;  %v7384_v18 = vor.u32 %v9402_v63, %v7383_v62  ;;  %v9458_v63 = vld [vmem:[#allocation11 + $0x288] sm:$0xf0] }
 0x1f4   :  { %5439 = vmatpush.bf16.msra.mxu1 %v7576_v39  ;;  %v2376_v11 = vpop.f32.mrf.mxu2  ;;  %v8052_v39 = vor.u32 %v9566_v9, %v8049_v10  ;;  %v9395_v9 = vld [vmem:[#allocation11 + $0x90] sm:$0xf0]  ;;  %v7719_v10 = vld [vmem:[#allocation11 + $0x350] sm:$0xf] }
 0x1f5   :  { %5463 = vmatpush.bf16.msra.mxu3 %v8080_v0  ;;  %v9755_v0 = vld [vmem:[#allocation11 + $0xbd4] sm:$0xf]  ;;  %v9486_v11 = vld [vmem:[#allocation11 + $0x368] sm:$0xf0]  ;;  %v8693_v1 = vld [vmem:[#allocation11 + $0xb0c] sm:$0xf0] }
 0x1f6   :  { %5476 = vmatpush.bf16.msrb.mxu2 %v8304_v20  ;;  %v2402_v6 = vpop.f32.mrf.mxu0  ;;  %v9423_v20 = vld [vmem:[#allocation11 + $0x170] sm:$0xf0]  ;;  %v7607_v62 = vld [vmem:[#allocation11 + $0x270] sm:$0xf] }
 0x1f7   :  { %v7468_v23 = vor.u32 %v9423_v20, %v7467_v17  ;;  %v9657_v6 = vld [vmem:[#allocation11 + $0x8c4] sm:$0xf]  ;;  %v7720_v20 = vor.u32 %v9486_v11, %v7719_v10  ;;  %v9451_v10 = vld [vmem:[#allocation11 + $0x250] sm:$0xf0] }
 0x1f8   :  { %5440 = vmatpush.bf16.msra.mxu1 %v7548_v22 }
 0x1f9   :  { %5464 = vmatpush.bf16.msra.mxu3 %v8052_v39  ;;  %v8777_v39 = vld [vmem:[#allocation11 + $0xbb4] sm:$0xf0] }
 0x1fa   :  { %5477 = vmatpush.bf16.msrb.mxu2 %v8276_v25  ;;  %v8500_v25 = vor.u32 %v9678_v2, %v8497_v29  ;;  %v9479_v2 = vld [vmem:[#allocation11 + $0x330] sm:$0xf0]  ;;  %v8780_v29 = vor.u32 %v9748_v27, %v8777_v39  ;;  %v9633_v27 = vld [vmem:[#allocation11 + $0x800] sm:$0xf0] }
 0x1fb   :  { %v2413_v38 = vpop.f32.mrf.mxu3  ;;  %v9713_v39 = vld [vmem:[#allocation11 + $0xa84] sm:$0xf] }
 0x1fc   :  { %5441 = vmatpush.bf16.msra.mxu1 %v7520_v54  ;;  %v2387_v22 = vpop.f32.mrf.mxu1  ;;  %v7411_v54 = vld [vmem:[#allocation11 + $0xe8] sm:$0xf] }
 0x1fd   :  { %5465 = vmatpush.bf16.msra.mxu3 %v8024_v30  ;;  %v2388_v45 = vadd.f32 %v2387_v22, %v2375_v31  ;;  %v9741_v30 = vld [vmem:[#allocation11 + $0xb64] sm:$0xf]  ;;  %v8749_v31 = vld [vmem:[#allocation11 + $0xb7c] sm:$0xf0]  ;;  %v7299_v22 = vld [vmem:[#allocation11 + $0x8] sm:$0xf] }
 0x1fe   :  { %5478 = vmatpush.bf16.msrb.mxu2 %v8248_v55  ;;  %v9409_v55 = vld [vmem:[#allocation11 + $0x100] sm:$0xf0]  ;;  %v8752_v28 = vor.u32 %v9741_v30, %v8749_v31  ;;  %v7551_v30 = vld [vmem:[#allocation11 + $0x200] sm:$0xf]  ;;  %v9444_v31 = vld [vmem:[#allocation11 + $0x218] sm:$0xf0] }
 0x1ff   :  { %5442 = vmatmul.bf16.vlgmr.msra.gmra.mxu1 %v10248_v37  ;;  %v2401_v53 = vadd.f32 %v10264_v26, %v2388_v45  ;;  %v7412_v59 = vor.u32 %v9409_v55, %v7411_v54  ;;  %v7663_v45 = vld [vmem:[#allocation11 + $0x2e0] sm:$0xf] }
 0x200   :  { %5486 = vmatpush.bf16.msrb.mxu1 %v8612_v56  ;;  %v9762_v56 = vld [vmem:[#allocation11 + $0xc0c] sm:$0xf] }
 0x201   :  { %5466 = vmatpush.bf16.msra.mxu3 %v7996_v49  ;;  %v2414_v51 = vadd.f32 %v2413_v38, %v2401_v53  ;;  %v8836_v44 = vor.u32 %v9762_v56, %v8833_v57  ;;  %v9381_v38 = vld [vmem:[#allocation11 + $0x20] sm:$0xf0]  ;;  %v764_v57 = vperm.slane %v10266_v16, 7  ;;  %v9640_v16 = vld [vmem:[#allocation11 + $0x838] sm:$0xf0] }
 0x202   :  { %5479 = vmatpush.bf16.msrb.mxu2 %v8220_v61  ;;  %v7968_v61 = vor.u32 %v9545_v58, %v7965_v52  ;;  %v7300_v53 = vor.u32 %v9381_v38, %v7299_v22  ;;  %v8724_v58 = vor.u32 %v9734_v43, %v8721_v48  ;;  %v8363_v52 = vld [vmem:[#allocation11 + $0x858] sm:$0xf]  ;;  %v9626_v22 = vld [vmem:[#allocation11 + $0x7c8] sm:$0xf0]  ;;  %v7552_v43 = vor.u32 %v9444_v31, %v7551_v30  ;;  %v9029_v48 = vld [vmem:[#allocation11 + $0xdac] sm:$0xf0] }
 0x203   :  { %v2415_v26 = vpop.f32.mrf.mxu3  ;;  %v7831_v30 = vld [vmem:[#allocation11 + $0x430] sm:$0xf]  ;;  %v9514_v31 = vld [vmem:[#allocation11 + $0x448] sm:$0xf0] }
 0x204   :  { %5487 = vmatpush.bf16.msrb.mxu1 %v8584_v24  ;;  %v2475_v24 = vmax.f32 %v2414_v51, 0.0  ;;  %v2389_v3 = vpop.f32.mrf.mxu1  ;;  %v7635_v51 = vld [vmem:[#allocation11 + $0x2a8] sm:$0xf]  ;;  %v8696_v26 = vor.u32 %v9727_v60, %v8693_v1  ;;  %v9804_v60 = vld [vmem:[#allocation11 + $0xd5c] sm:$0xf] }
 0x205   :  { %5467 = vmatpush.bf16.msra.mxu3 %v7968_v61 }
 0x206   :  { %5480 = vmatpush.bf16.msrb.mxu2 %v8192_v7  ;;  %v10272_v46 = vpack.c.bf16 %v2475_v24, %v2475_v24  ;;  %v8413_v7 = vld [vmem:[#allocation11 + $0x8dc] sm:$0xf0] }
 0x207   :  { %v8416_v15 = vor.u32 %v9657_v6, %v8413_v7  ;;  %v7608_v7 = vor.u32 %v9458_v63, %v7607_v62  ;;  %v9528_v62 = vld [vmem:[#allocation11 + $0x4b8] sm:$0xf0] }
 0x208   :  { %5488 = vmatpush.bf16.msrb.mxu1 %v8556_v8  ;;  %v7355_v8 = vld [vmem:[#allocation11 + $0x78] sm:$0xf]  ;;  %5403 = vmatmul.bf16.vlgmr.msrb.gmra.mxu0 %v10272_v46 }
 0x209   :  { %5481 = vmatmul.bf16.vlgmr.msrb.gmra.mxu2 %v10253_v50  ;;  %5499 = vmatpush.bf16.msrb.mxu0 %v8836_v44  ;;  %v7356_v17 = vor.u32 %v9395_v9, %v7355_v8  ;;  %v8335_v44 = vld [vmem:[#allocation11 + $0x820] sm:$0xf]  ;;  %v7579_v9 = vld [vmem:[#allocation11 + $0x238] sm:$0xf] }
 0x20a   :  { %5525 = vmatpush.bf16.msra.mxu2 %v7496_v13  ;;  %v8808_v13 = vor.u32 %v9755_v0, %v8805_v5  ;;  %v9720_v5 = vld [vmem:[#allocation11 + $0xabc] sm:$0xf]  ;;  %v8336_v8 = vor.u32 %v9640_v16, %v8335_v44  ;;  %v8223_v44 = vld [vmem:[#allocation11 + $0x740] sm:$0xf] }
 0x20c   :  { %5489 = vmatpush.bf16.msrb.mxu1 %v8528_v34  ;;  %v7327_v34 = vld [vmem:[#allocation11 + $0x40] sm:$0xf]  ;;  %v2426_v47 = vpop.f32.mrf.mxu2 }
 0x20d   :  { %5500 = vmatpush.bf16.msrb.mxu0 %v8808_v13  ;;  %v7328_v32 = vor.u32 %v9388_v21, %v7327_v34  ;;  %v2427_v3 = vadd.f32 %v2426_v47, %v764_v57  ;;  %v7580_v47 = vor.u32 %v9451_v10, %v7579_v9  ;;  %v9057_v21 = vld [vmem:[#allocation11 + $0xde4] sm:$0xf0]  ;;  %v8615_v57 = vld [vmem:[#allocation11 + $0xa50] sm:$0xf]  ;;  %v9521_v10 = vld [vmem:[#allocation11 + $0x480] sm:$0xf0] }
 0x20e   :  { %5526 = vmatpush.bf16.msra.mxu2 %v7468_v23  ;;  %v10275_v14 = vpop.f32.mrf.mxu0  ;;  %v7691_v23 = vld [vmem:[#allocation11 + $0x318] sm:$0xf]  ;;  %v7859_v9 = vld [vmem:[#allocation11 + $0x468] sm:$0xf] }
 0x20f   :  { %v7692_v35 = vor.u32 %v9479_v2, %v7691_v23  ;;  %v7943_v23 = vld [vmem:[#allocation11 + $0x510] sm:$0xf]  ;;  %v9542_v2 = vld [vmem:[#allocation11 + $0x528] sm:$0xf0] }
 0x210   :  { %5490 = vmatpush.bf16.msrb.mxu1 %v8500_v25  ;;  %v9472_v25 = vld [vmem:[#allocation11 + $0x2f8] sm:$0xf0] }
 0x211   :  { %5501 = vmatpush.bf16.msrb.mxu0 %v8780_v29  ;;  %v7664_v54 = vor.u32 %v9472_v25, %v7663_v45 }
 0x212   :  { %5527 = vmatpush.bf16.msra.mxu2 %v7440_v42  ;;  %v9654_v42 = vld [vmem:[#allocation11 + $0x8a8] sm:$0xf0] }
 0x213   :  { %v8392_v56 = vor.u32 %v9654_v42, %v8391_v41  ;;  %v9811_v41 = vld [vmem:[#allocation11 + $0xd94] sm:$0xf] }
 0x214   :  { %5491 = vmatpush.bf16.msrb.mxu1 %v8472_v40  ;;  %v2428_v55 = vpop.f32.mrf.mxu2  ;;  %v9465_v40 = vld [vmem:[#allocation11 + $0x2c0] sm:$0xf0] }
 0x215   :  { %5502 = vmatpush.bf16.msrb.mxu0 %v8752_v28  ;;  %v7636_v61 = vor.u32 %v9465_v40, %v7635_v51  ;;  %v7944_v28 = vor.u32 %v9542_v2, %v7943_v23  ;;  %v7523_v55 = vld [vmem:[#allocation11 + $0x1c8] sm:$0xf]  ;;  %v8251_v51 = vld [vmem:[#allocation11 + $0x778] sm:$0xf]  ;;  %v9619_v40 = vld [vmem:[#allocation11 + $0x790] sm:$0xf0] }
 0x216   :  { %5528 = vmatpush.bf16.msra.mxu2 %v7412_v59  ;;  %v2454_v49 = vpop.f32.mrf.mxu0  ;;  %v9647_v59 = vld [vmem:[#allocation11 + $0x870] sm:$0xf0]  ;;  %v7497_v2 = vld [vmem:[#allocation11 + $0x1ac] sm:$0xf0] }
 0x217   :  { %v8364_v24 = vor.u32 %v9647_v59, %v8363_v52  ;;  %v7915_v49 = vld [vmem:[#allocation11 + $0x4d8] sm:$0xf]  ;;  %v9032_v52 = vor.u32 %v9811_v41, %v9029_v48  ;;  %v9427_v23 = vld [vmem:[#allocation11 + $0x194] sm:$0xf] }
 0x218   :  { %5492 = vmatpush.bf16.msrb.mxu1 %v8444_v4  ;;  %5455 = vmatmul.bf16.vlgmr.msra.gmra.mxu0 %v10237_v12  ;;  %v9783_v48 = vld [vmem:[#allocation11 + $0xcb4] sm:$0xf] }
 0x219   :  { %5503 = vmatpush.bf16.msrb.mxu0 %v8724_v58  ;;  %v9710_v58 = vld [vmem:[#allocation11 + $0xa68] sm:$0xf0] }
 0x21a   :  { %5529 = vmatpush.bf16.msra.mxu2 %v7384_v18  ;;  %v8665_v18 = vld [vmem:[#allocation11 + $0xad4] sm:$0xf0] }
 0x21b   :  { %v2465_v0 = vpop.f32.mrf.mxu3  ;;  %v8668_v13 = vor.u32 %v9720_v5, %v8665_v18  ;;  %v9703_v5 = vld [vmem:[#allocation11 + $0xa30] sm:$0xf0] }
 0x21c   :  { %5493 = vmatpush.bf16.msrb.mxu1 %v8416_v15  ;;  %v2439_v4 = vpop.f32.mrf.mxu1  ;;  %v8307_v15 = vld [vmem:[#allocation11 + $0x7e8] sm:$0xf] }
 0x21d   :  { %v2440_v6 = vadd.f32 %v2439_v4, %v2427_v3  ;;  %5504 = vmatpush.bf16.msrb.mxu0 %v8696_v26  ;;  %v8308_v29 = vor.u32 %v9633_v27, %v8307_v15  ;;  %v8252_v3 = vor.u32 %v9619_v40, %v8251_v51  ;;  %v8616_v26 = vor.u32 %v9710_v58, %v8615_v57  ;;  %v9612_v4 = vld [vmem:[#allocation11 + $0x758] sm:$0xf0]  ;;  %v8195_v27 = vld [vmem:[#allocation11 + $0x708] sm:$0xf]  ;;  %v8503_v57 = vld [vmem:[#allocation11 + $0x970] sm:$0xf] }
 0x21e   :  { %5530 = vmatpush.bf16.msra.mxu2 %v7356_v17  ;;  %v8637_v17 = vld [vmem:[#allocation11 + $0xa9c] sm:$0xf0]  ;;  %v9682_v58 = vld [vmem:[#allocation11 + $0x988] sm:$0xf0] }
 0x21f   :  { %5494 = vmatmul.bf16.vlgmr.msrb.gmra.mxu1 %v10261_v36  ;;  %v2453_v11 = vadd.f32 %v10275_v14, %v2440_v6  ;;  %v8640_v14 = vor.u32 %v9713_v39, %v8637_v17  ;;  %v9605_v39 = vld [vmem:[#allocation11 + $0x720] sm:$0xf0]  ;;  %v8559_v17 = vld [vmem:[#allocation11 + $0x9e0] sm:$0xf] }
 0x220   :  { %5538 = vmatpush.bf16.msra.mxu1 %v7720_v20  ;;  %v9818_v20 = vld [vmem:[#allocation11 + $0xdcc] sm:$0xf] }
 0x221   :  { %v2466_v34 = vadd.f32 %v2465_v0, %v2453_v11  ;;  %5505 = vmatpush.bf16.msrb.mxu0 %v8668_v13  ;;  %v9060_v25 = vor.u32 %v9818_v20, %v9057_v21  ;;  %v8587_v0 = vld [vmem:[#allocation11 + $0xa18] sm:$0xf]  ;;  %v10288_v11 = vld [vmem:[#allocation13] sm:$0xff]  ;;  %v8224_v13 = vor.u32 %v9612_v4, %v8223_v44  ;;  %v9696_v20 = vld [vmem:[#allocation11 + $0x9f8] sm:$0xf0] }
 0x222   :  { %5531 = vmatpush.bf16.msra.mxu2 %v7328_v32  ;;  %v8588_v15 = vor.u32 %v9703_v5, %v8587_v0  ;;  %v9790_v21 = vld [vmem:[#allocation11 + $0xcec] sm:$0xf]  ;;  %v7775_v44 = vld [vmem:[#allocation11 + $0x3c0] sm:$0xf]  ;;  %v9500_v4 = vld [vmem:[#allocation11 + $0x3d8] sm:$0xf0]  ;;  %v8504_v5 = vor.u32 %v9682_v58, %v8503_v57 }
 0x223   :  { %v2476_v32 = vmax.f32 %v2466_v34, 0.0  ;;  %v2467_v45 = vpop.f32.mrf.mxu3  ;;  %v9392_v58 = vld [vmem:[#allocation11 + $0x7c] sm:$0xf] }
 0x224   :  { %5539 = vmatpush.bf16.msra.mxu1 %v7692_v35  ;;  %v8279_v35 = vld [vmem:[#allocation11 + $0x7b0] sm:$0xf]  ;;  %v2441_v38 = vpop.f32.mrf.mxu1  ;;  %v7500_v45 = vor.u32 %v9427_v23, %v7497_v2  ;;  %v9766_v2 = vld [vmem:[#allocation11 + $0xc28] sm:$0xf0] }
 0x225   :  { %v10282_v42 = vpack.c.bf16 %v2476_v32, %v2476_v32  ;;  %5506 = vmatpush.bf16.msrb.mxu0 %v8640_v14  ;;  %v8196_v14 = vor.u32 %v9605_v39, %v8195_v27  ;;  %v7413_v27 = vld [vmem:[#allocation11 + $0x104] sm:$0xf0]  ;;  %v8839_v23 = vld [vmem:[#allocation11 + $0xc10] sm:$0xf] }
 0x226   :  { %5532 = vmatpush.bf16.msra.mxu2 %v7300_v53  ;;  %v9535_v53 = vld [vmem:[#allocation11 + $0x4f0] sm:$0xf0]  ;;  %v7747_v39 = vld [vmem:[#allocation11 + $0x388] sm:$0xf] }
 0x227   :  { %5416 = vmatmul.bf16.vlgmr.msrb.gmra.mxu3 %v10282_v42  ;;  %v7916_v59 = vor.u32 %v9535_v53, %v7915_v49  ;;  %v9420_v49 = vld [vmem:[#allocation11 + $0x15c] sm:$0xf]  ;;  %v7469_v53 = vld [vmem:[#allocation11 + $0x174] sm:$0xf0] }
 0x228   :  { %5540 = vmatpush.bf16.msra.mxu1 %v7664_v54  ;;  %v8280_v54 = vor.u32 %v9626_v22, %v8279_v35  ;;  %5512 = vmatpush.bf16.msrb.mxu3 %v9060_v25  ;;  %v8560_v35 = vor.u32 %v9696_v20, %v8559_v17  ;;  %v2999_v22 = vperm.slane %v10288_v11, 0  ;;  %v8531_v25 = vld [vmem:[#allocation11 + $0x9a8] sm:$0xf]  ;;  %v7472_v40 = vor.u32 %v9420_v49, %v7469_v53  ;;  %v9493_v17 = vld [vmem:[#allocation11 + $0x3a0] sm:$0xf0] }
 0x229   :  { %5533 = vmatmul.bf16.vlgmr.msra.gmra.mxu2 %v10233_v33  ;;  %5551 = vmatpush.bf16.msra.mxu0 %v7944_v28  ;;  %v9689_v28 = vld [vmem:[#allocation11 + $0x9c0] sm:$0xf0]  ;;  %v8167_v20 = vld [vmem:[#allocation11 + $0x6d0] sm:$0xf]  ;;  %v9759_v49 = vld [vmem:[#allocation11 + $0xbf0] sm:$0xf0] }
 0x22a   :  { %5577 = vmatpush.bf16.msrb.mxu2 %v8392_v56  ;;  %v9437_v56 = vld [vmem:[#allocation11 + $0x1e0] sm:$0xf0]  ;;  %5507 = vmatmul.bf16.vlgmr.msrb.gmra.mxu0 %v10272_v46  ;;  %v8532_v51 = vor.u32 %v9689_v28, %v8531_v25  ;;  %v7385_v25 = vld [vmem:[#allocation11 + $0xcc] sm:$0xf0]  ;;  %v8139_v28 = vld [vmem:[#allocation11 + $0x698] sm:$0xf] }
 0x22b   :  { %v7524_v1 = vor.u32 %v9437_v56, %v7523_v55  ;;  %v7803_v55 = vld [vmem:[#allocation11 + $0x3f8] sm:$0xf]  ;;  %v9507_v56 = vld [vmem:[#allocation11 + $0x410] sm:$0xf0]  ;;  %v8419_v53 = vld [vmem:[#allocation11 + $0x8c8] sm:$0xf] }
 0x22c   :  { %5541 = vmatpush.bf16.msra.mxu1 %v7636_v61  ;;  %v9001_v61 = vld [vmem:[#allocation11 + $0xd74] sm:$0xf0]  ;;  %v5326_v16 = vpop.f32.mrf.mxu2  ;;  %5513 = vmatpush.bf16.msrb.mxu3 %v9032_v52 }
 0x22d   :  { %5552 = vmatpush.bf16.msra.mxu0 %v7916_v59  ;;  %v9004_v18 = vor.u32 %v9804_v60, %v9001_v61  ;;  %v5327_v52 = vadd.f32 %v5326_v16, %v2999_v22  ;;  %v7804_v60 = vor.u32 %v9507_v56, %v7803_v55  ;;  %v9413_v61 = vld [vmem:[#allocation11 + $0x124] sm:$0xf]  ;;  %v8475_v16 = vld [vmem:[#allocation11 + $0x938] sm:$0xf]  ;;  %v9483_v56 = vld [vmem:[#allocation11 + $0x354] sm:$0xf] }
 0x22e   :  { %5578 = vmatpush.bf16.msrb.mxu2 %v8364_v24  ;;  %v7887_v24 = vld [vmem:[#allocation11 + $0x4a0] sm:$0xf]  ;;  %v10285_v63 = vpop.f32.mrf.mxu0 }
 0x22f   :  { %v7888_v6 = vor.u32 %v9528_v62, %v7887_v24  ;;  %v7441_v24 = vld [vmem:[#allocation11 + $0x13c] sm:$0xf0] }
 0x230   :  { %5542 = vmatpush.bf16.msra.mxu1 %v7608_v7  ;;  %v9797_v7 = vld [vmem:[#allocation11 + $0xd24] sm:$0xf]  ;;  %5514 = vmatpush.bf16.msrb.mxu3 %v9004_v18  ;;  %v7444_v18 = vor.u32 %v9413_v61, %v7441_v24  ;;  %v8783_v61 = vld [vmem:[#allocation11 + $0xba0] sm:$0xf]  ;;  %v9752_v24 = vld [vmem:[#allocation11 + $0xbb8] sm:$0xf0] }
 0x231   :  { %5553 = vmatpush.bf16.msra.mxu0 %v7888_v6  ;;  %v9675_v6 = vld [vmem:[#allocation11 + $0x950] sm:$0xf0] }
 0x232   :  { %5579 = vmatpush.bf16.msrb.mxu2 %v8336_v8  ;;  %v8973_v8 = vld [vmem:[#allocation11 + $0xd3c] sm:$0xf0] }
 0x233   :  { %v8976_v34 = vor.u32 %v9797_v7, %v8973_v8  ;;  %v9769_v7 = vld [vmem:[#allocation11 + $0xc44] sm:$0xf] }
 0x234   :  { %5543 = vmatpush.bf16.msra.mxu1 %v7580_v47  ;;  %v7860_v47 = vor.u32 %v9521_v10, %v7859_v9  ;;  %v5328_v38 = vpop.f32.mrf.mxu2  ;;  %v7776_v10 = vor.u32 %v9500_v4, %v7775_v44  ;;  %v7693_v44 = vld [vmem:[#allocation11 + $0x334] sm:$0xf0] }
 0x235   :  { %5515 = vmatpush.bf16.msrb.mxu3 %v8976_v34  ;;  %v8840_v38 = vor.u32 %v9766_v2, %v8839_v23  ;;  %v8727_v23 = vld [vmem:[#allocation11 + $0xb30] sm:$0xf]  ;;  %v9738_v2 = vld [vmem:[#allocation11 + $0xb48] sm:$0xf0] }
 0x236   :  { %5580 = vmatpush.bf16.msrb.mxu2 %v8308_v29  ;;  %v8945_v29 = vld [vmem:[#allocation11 + $0xd04] sm:$0xf0]  ;;  %v5354_v32 = vpop.f32.mrf.mxu0  ;;  %5554 = vmatpush.bf16.msra.mxu0 %v7860_v47  ;;  %v8476_v47 = vor.u32 %v9675_v6, %v8475_v16  ;;  %v9577_v6 = vld [vmem:[#allocation11 + $0x640] sm:$0xf0] }
 0x237   :  { %v8948_v41 = vor.u32 %v9790_v21, %v8945_v29  ;;  %5468 = vmatmul.bf16.vlgmr.msra.gmra.mxu3 %v10243_v19  ;;  %v9598_v21 = vld [vmem:[#allocation11 + $0x6e8] sm:$0xf0]  ;;  %v7748_v32 = vor.u32 %v9493_v17, %v7747_v39  ;;  %v8083_v16 = vld [vmem:[#allocation11 + $0x628] sm:$0xf] }
 0x238   :  { %5544 = vmatpush.bf16.msra.mxu1 %v7552_v43  ;;  %v7832_v43 = vor.u32 %v9514_v31, %v7831_v30  ;;  %v9668_v30 = vld [vmem:[#allocation11 + $0x918] sm:$0xf0]  ;;  %v8168_v22 = vor.u32 %v9598_v21, %v8167_v20  ;;  %v9378_v17 = vld [vmem:[#allocation11 + $0xc] sm:$0xf]  ;;  %v7301_v20 = vld [vmem:[#allocation11 + $0x24] sm:$0xf0] }
 0x239   :  { %5516 = vmatpush.bf16.msrb.mxu3 %v8948_v41  ;;  %v9570_v21 = vld [vmem:[#allocation11 + $0x608] sm:$0xf0] }
 0x23a   :  { %5581 = vmatpush.bf16.msrb.mxu2 %v8280_v54  ;;  %v8917_v54 = vld [vmem:[#allocation11 + $0xccc] sm:$0xf0]  ;;  %5555 = vmatpush.bf16.msra.mxu0 %v7832_v43  ;;  %v9591_v43 = vld [vmem:[#allocation11 + $0x6b0] sm:$0xf0] }
 0x23b   :  { %v8920_v59 = vor.u32 %v9783_v48, %v8917_v54  ;;  %v8811_v48 = vld [vmem:[#allocation11 + $0xbd8] sm:$0xf]  ;;  %v9661_v54 = vld [vmem:[#allocation11 + $0x8e0] sm:$0xf0] }
 0x23c   :  { %5545 = vmatpush.bf16.msra.mxu1 %v7524_v1  ;;  %v9776_v1 = vld [vmem:[#allocation11 + $0xc7c] sm:$0xf]  ;;  %v5339_v62 = vpop.f32.mrf.mxu1  ;;  %v8812_v57 = vor.u32 %v9759_v49, %v8811_v48 }
 0x23d   :  { %v5340_v0 = vadd.f32 %v5339_v62, %v5327_v52  ;;  %5517 = vmatpush.bf16.msrb.mxu3 %v8920_v59  ;;  %v7357_v52 = vld [vmem:[#allocation11 + $0x94] sm:$0xf0]  ;;  %v8111_v59 = vld [vmem:[#allocation11 + $0x660] sm:$0xf]  ;;  %v9644_v49 = vld [vmem:[#allocation11 + $0x85c] sm:$0xf] }
 0x23e   :  { %5582 = vmatpush.bf16.msrb.mxu2 %v8252_v3  ;;  %v5365_v3 = vpop.f32.mrf.mxu3  ;;  %5556 = vmatpush.bf16.msra.mxu0 %v7804_v60  ;;  %v8420_v60 = vor.u32 %v9661_v54, %v8419_v53  ;;  %v8365_v53 = vld [vmem:[#allocation11 + $0x874] sm:$0xf0] }
 0x23f   :  { %5546 = vmatmul.bf16.vlgmr.msra.gmra.mxu1 %v10248_v37  ;;  %v5353_v8 = vadd.f32 %v10285_v63, %v5340_v0  ;;  %v8447_v63 = vld [vmem:[#allocation11 + $0x900] sm:$0xf]  ;;  %v8784_v0 = vor.u32 %v9752_v24, %v8783_v61  ;;  %v9637_v61 = vld [vmem:[#allocation11 + $0x824] sm:$0xf]  ;;  %v9448_v24 = vld [vmem:[#allocation11 + $0x23c] sm:$0xf] }
 0x240   :  { %5590 = vmatpush.bf16.msrb.mxu1 %v8616_v26  ;;  %v8889_v26 = vld [vmem:[#allocation11 + $0xc94] sm:$0xf0]  ;;  %v8448_v41 = vor.u32 %v9668_v30, %v8447_v63  ;;  %v9651_v63 = vld [vmem:[#allocation11 + $0x894] sm:$0xf]  ;;  %v8393_v30 = vld [vmem:[#allocation11 + $0x8ac] sm:$0xf0] }
 0x241   :  { %v8892_v9 = vor.u32 %v9776_v1, %v8889_v26  ;;  %v10295_v34 = vadd.f32 %v5365_v3, %v5353_v8  ;;  %v9584_v1 = vld [vmem:[#allocation11 + $0x678] sm:$0xf0]  ;;  %v7360_v3 = vor.u32 %v9392_v58, %v7357_v52  ;;  %v9745_v8 = vld [vmem:[#allocation11 + $0xb80] sm:$0xf0]  ;;  %v8368_v58 = vor.u32 %v9644_v49, %v8365_v53  ;;  %v8253_v49 = vld [vmem:[#allocation11 + $0x794] sm:$0xf0] }
 0x242   :  { %5583 = vmatpush.bf16.msrb.mxu2 %v8224_v13  ;;  %v8861_v13 = vld [vmem:[#allocation11 + $0xc5c] sm:$0xf0]  ;;  %5557 = vmatpush.bf16.msra.mxu0 %v7776_v10  ;;  %v9476_v26 = vld [vmem:[#allocation11 + $0x31c] sm:$0xf]  ;;  %v8112_v4 = vor.u32 %v9584_v1, %v8111_v59 }
 0x243   :  { %5518 = vmatpush.bf16.msrb.mxu3 %v8892_v9  ;;  %v8864_v31 = vor.u32 %v9769_v7, %v8861_v13  ;;  %v8755_v7 = vld [vmem:[#allocation11 + $0xb68] sm:$0xf]  ;;  %v7696_v9 = vor.u32 %v9476_v26, %v7693_v44  ;;  %v9469_v13 = vld [vmem:[#allocation11 + $0x2e4] sm:$0xf]  ;;  %v9556_v52 = vld [vmem:[#allocation11 + $0x598] sm:$0xf0] }
 0x244   :  { %5591 = vmatpush.bf16.msrb.mxu1 %v8588_v15  ;;  %v9406_v15 = vld [vmem:[#allocation11 + $0xec] sm:$0xf]  ;;  %v8756_v39 = vor.u32 %v9745_v8, %v8755_v7  ;;  %v8671_v59 = vld [vmem:[#allocation11 + $0xac0] sm:$0xf]  ;;  %v7971_v44 = vld [vmem:[#allocation11 + $0x548] sm:$0xf] }
 0x245   :  { %v7416_v29 = vor.u32 %v9406_v15, %v7413_v27  ;;  %v7665_v15 = vld [vmem:[#allocation11 + $0x2fc] sm:$0xf0]  ;;  %v8084_v27 = vor.u32 %v9577_v6, %v8083_v16  ;;  %v9630_v16 = vld [vmem:[#allocation11 + $0x7ec] sm:$0xf]  ;;  %v8309_v6 = vld [vmem:[#allocation11 + $0x804] sm:$0xf0] }
 0x246   :  { %5584 = vmatpush.bf16.msrb.mxu2 %v8196_v14  ;;  %v5341_v14 = vpop.f32.mrf.mxu1  ;;  %5558 = vmatpush.bf16.msra.mxu0 %v7748_v32  ;;  %v9462_v32 = vld [vmem:[#allocation11 + $0x2ac] sm:$0xf]  ;;  %v9007_v53 = vld [vmem:[#allocation11 + $0xd60] sm:$0xf] }
 0x247   :  { %5519 = vmatpush.bf16.msrb.mxu3 %v8864_v31  ;;  %v7304_v31 = vor.u32 %v9378_v17, %v7301_v20  ;;  %v7637_v14 = vld [vmem:[#allocation11 + $0x2c4] sm:$0xf0] }
 0x248   :  { %5592 = vmatpush.bf16.msrb.mxu1 %v8560_v35  ;;  %v5367_v35 = vpop.f32.mrf.mxu3  ;;  %v7640_v48 = vor.u32 %v9462_v32, %v7637_v14  ;;  %v9532_v32 = vld [vmem:[#allocation11 + $0x4dc] sm:$0xf]  ;;  %v7917_v14 = vld [vmem:[#allocation11 + $0x4f4] sm:$0xf0] }
 0x249   :  { %5585 = vmatmul.bf16.vlgmr.msrb.gmra.mxu2 %v10253_v50  ;;  %5559 = vmatmul.bf16.vlgmr.msra.gmra.mxu0 %v10237_v12 }
 0x24a   :  { %5629 = vmatpush.bf16.msra.mxu2 %v7500_v45  ;;  %v9399_v45 = vld [vmem:[#allocation11 + $0xb4] sm:$0xf]  ;;  %5603 = vmatpush.bf16.msrb.mxu0 %v8840_v38  ;;  %v8027_v38 = vld [vmem:[#allocation11 + $0x5b8] sm:$0xf] }
 0x24b   :  { %v7388_v55 = vor.u32 %v9399_v45, %v7385_v25  ;;  %5564 = vmatpush.bf16.msra.mxu3 %v8168_v22  ;;  %v8728_v22 = vor.u32 %v9738_v2, %v8727_v23  ;;  %v8396_v45 = vor.u32 %v9651_v63, %v8393_v30  ;;  %v9563_v25 = vld [vmem:[#allocation11 + $0x5d0] sm:$0xf0]  ;;  %v8281_v2 = vld [vmem:[#allocation11 + $0x7cc] sm:$0xf0]  ;;  %v9035_v30 = vld [vmem:[#allocation11 + $0xd98] sm:$0xf] }
 0x24c   :  { %5593 = vmatpush.bf16.msrb.mxu1 %v8532_v51  ;;  %v7721_v51 = vld [vmem:[#allocation11 + $0x36c] sm:$0xf0]  ;;  %5520 = vmatmul.bf16.vlgmr.msrb.gmra.mxu3 %v10282_v42  ;;  %v9623_v23 = vld [vmem:[#allocation11 + $0x7b4] sm:$0xf] }
 0x24d   :  { %v7724_v62 = vor.u32 %v9483_v56, %v7721_v51  ;;  %v7609_v56 = vld [vmem:[#allocation11 + $0x28c] sm:$0xf0]  ;;  %v8028_v51 = vor.u32 %v9563_v25, %v8027_v38  ;;  %v9707_v38 = vld [vmem:[#allocation11 + $0xa54] sm:$0xf]  ;;  %v8284_v25 = vor.u32 %v9623_v23, %v8281_v2 }
 0x24e   :  { %5630 = vmatpush.bf16.msra.mxu2 %v7472_v40  ;;  %v8140_v40 = vor.u32 %v9591_v43, %v8139_v28  ;;  %5604 = vmatpush.bf16.msrb.mxu0 %v8812_v57  ;;  %v8699_v28 = vld [vmem:[#allocation11 + $0xaf8] sm:$0xf]  ;;  %v5378_v43 = vpop.f32.mrf.mxu2  ;;  %v7999_v57 = vld [vmem:[#allocation11 + $0x580] sm:$0xf] }
 0x24f   :  { %v10301_v54 = vadd.f32 %v5378_v43, %v10295_v34  ;;  %v8337_v34 = vld [vmem:[#allocation11 + $0x83c] sm:$0xf0]  ;;  %v7920_v43 = vor.u32 %v9532_v32, %v7917_v14  ;;  %v9504_v32 = vld [vmem:[#allocation11 + $0x3fc] sm:$0xf] }
 0x250   :  { %5594 = vmatpush.bf16.msrb.mxu1 %v8504_v5  ;;  %5565 = vmatpush.bf16.msra.mxu3 %v8140_v40  ;;  %v9385_v5 = vld [vmem:[#allocation11 + $0x44] sm:$0xf] }
 0x252   :  { %5631 = vmatpush.bf16.msra.mxu2 %v7444_v18  ;;  %v7329_v18 = vld [vmem:[#allocation11 + $0x5c] sm:$0xf0]  ;;  %5605 = vmatpush.bf16.msrb.mxu0 %v8784_v0  ;;  %v8643_v0 = vld [vmem:[#allocation11 + $0xa88] sm:$0xf] }
 0x253   :  { %v7332_v10 = vor.u32 %v9385_v5, %v7329_v18  ;;  %v8340_v5 = vor.u32 %v9637_v61, %v8337_v34  ;;  %v9717_v18 = vld [vmem:[#allocation11 + $0xaa0] sm:$0xf0]  ;;  %v8225_v34 = vld [vmem:[#allocation11 + $0x75c] sm:$0xf0] }
 0x254   :  { %5595 = vmatpush.bf16.msrb.mxu1 %v8476_v47  ;;  %5566 = vmatpush.bf16.msra.mxu3 %v8112_v4  ;;  %v8055_v47 = vld [vmem:[#allocation11 + $0x5f0] sm:$0xf]  ;;  %v9549_v4 = vld [vmem:[#allocation11 + $0x560] sm:$0xf0]  ;;  %v8644_v20 = vor.u32 %v9717_v18, %v8643_v0  ;;  %v8561_v0 = vld [vmem:[#allocation11 + $0x9fc] sm:$0xf0] }
 0x255   :  { %v8056_v35 = vor.u32 %v9570_v21, %v8055_v47  ;;  %v7972_v17 = vor.u32 %v9549_v4, %v7971_v44  ;;  %v8312_v47 = vor.u32 %v9630_v16, %v8309_v6  ;;  %v7861_v44 = vld [vmem:[#allocation11 + $0x484] sm:$0xf0]  ;;  %v9693_v4 = vld [vmem:[#allocation11 + $0x9e4] sm:$0xf]  ;;  %v9602_v6 = vld [vmem:[#allocation11 + $0x70c] sm:$0xf] }
 0x256   :  { %5632 = vmatpush.bf16.msra.mxu2 %v7416_v29  ;;  %v7668_v29 = vor.u32 %v9469_v13, %v7665_v15  ;;  %5606 = vmatpush.bf16.msrb.mxu0 %v8756_v39  ;;  %v5380_v7 = vpop.f32.mrf.mxu2  ;;  %v9539_v13 = vld [vmem:[#allocation11 + $0x514] sm:$0xf]  ;;  %v7945_v15 = vld [vmem:[#allocation11 + $0x52c] sm:$0xf0]  ;;  %v7553_v39 = vld [vmem:[#allocation11 + $0x21c] sm:$0xf0] }
 0x257   :  { %v8197_v7 = vld [vmem:[#allocation11 + $0x724] sm:$0xf0] }
 0x258   :  { %5596 = vmatpush.bf16.msrb.mxu1 %v8448_v41  ;;  %5567 = vmatpush.bf16.msra.mxu3 %v8084_v27  ;;  %v9731_v41 = vld [vmem:[#allocation11 + $0xb10] sm:$0xf0]  ;;  %v9441_v27 = vld [vmem:[#allocation11 + $0x204] sm:$0xf]  ;;  %v8200_v23 = vor.u32 %v9602_v6, %v8197_v7  ;;  %v8841_v7 = vld [vmem:[#allocation11 + $0xc2c] sm:$0xf0] }
 0x259   :  { %v8700_v40 = vor.u32 %v9731_v41, %v8699_v28  ;;  %v7556_v63 = vor.u32 %v9441_v27, %v7553_v39  ;;  %v9616_v41 = vld [vmem:[#allocation11 + $0x77c] sm:$0xf]  ;;  %v7833_v27 = vld [vmem:[#allocation11 + $0x44c] sm:$0xf0]  ;;  %v7503_v39 = vld [vmem:[#allocation11 + $0x198] sm:$0xf] }
 0x25a   :  { %5633 = vmatpush.bf16.msra.mxu2 %v7388_v55  ;;  %v9455_v55 = vld [vmem:[#allocation11 + $0x274] sm:$0xf]  ;;  %5607 = vmatpush.bf16.msrb.mxu0 %v8728_v22  ;;  %v7525_v22 = vld [vmem:[#allocation11 + $0x1e4] sm:$0xf0] }
 0x25b   :  { %v7612_v1 = vor.u32 %v9455_v55, %v7609_v56  ;;  %v9808_v55 = vld [vmem:[#allocation11 + $0xd78] sm:$0xf0]  ;;  %v9763_v6 = vld [vmem:[#allocation11 + $0xc14] sm:$0xf] }
 0x25c   :  { %5597 = vmatpush.bf16.msrb.mxu1 %v8420_v60  ;;  %5568 = vmatpush.bf16.msra.mxu3 %v8056_v35  ;;  %v9724_v60 = vld [vmem:[#allocation11 + $0xad8] sm:$0xf0]  ;;  %v9434_v35 = vld [vmem:[#allocation11 + $0x1cc] sm:$0xf] }
 0x25d   :  { %v8672_v26 = vor.u32 %v9724_v60, %v8671_v59  ;;  %v8256_v59 = vor.u32 %v9616_v41, %v8253_v49  ;;  %v9008_v60 = vor.u32 %v9808_v55, %v9007_v53  ;;  %v8895_v49 = vld [vmem:[#allocation11 + $0xc80] sm:$0xf]  ;;  %v9780_v53 = vld [vmem:[#allocation11 + $0xc98] sm:$0xf0]  ;;  %v9497_v55 = vld [vmem:[#allocation11 + $0x3c4] sm:$0xf] }
 0x25e   :  { %5634 = vmatpush.bf16.msra.mxu2 %v7360_v3  ;;  %5608 = vmatpush.bf16.msrb.mxu0 %v8700_v40  ;;  %v8000_v3 = vor.u32 %v9556_v52, %v7999_v57  ;;  %v7889_v40 = vld [vmem:[#allocation11 + $0x4bc] sm:$0xf0]  ;;  %v8589_v52 = vld [vmem:[#allocation11 + $0xa34] sm:$0xf0] }
 0x25f   :  { %5598 = vmatmul.bf16.vlgmr.msrb.gmra.mxu1 %v10261_v36 }
 0x260   :  { %5642 = vmatpush.bf16.msra.mxu1 %v7724_v62  ;;  %v7581_v62 = vld [vmem:[#allocation11 + $0x254] sm:$0xf0]  ;;  %5569 = vmatpush.bf16.msra.mxu3 %v8028_v51  ;;  %v9525_v51 = vld [vmem:[#allocation11 + $0x4a4] sm:$0xf] }
 0x261   :  { %v7584_v8 = vor.u32 %v9448_v24, %v7581_v62  ;;  %v7892_v61 = vor.u32 %v9525_v51, %v7889_v40  ;;  %v8979_v24 = vld [vmem:[#allocation11 + $0xd28] sm:$0xf]  ;;  %v9801_v62 = vld [vmem:[#allocation11 + $0xd40] sm:$0xf0]  ;;  %v7777_v51 = vld [vmem:[#allocation11 + $0x3dc] sm:$0xf0] }
 0x262   :  { %5635 = vmatpush.bf16.msra.mxu2 %v7332_v10  ;;  %v9822_v10 = vld [vmem:[#allocation11 + $0xde8] sm:$0xf0]  ;;  %5609 = vmatpush.bf16.msrb.mxu0 %v8672_v26  ;;  %v8980_v16 = vor.u32 %v9801_v62, %v8979_v24  ;;  %v7447_v40 = vld [vmem:[#allocation11 + $0x128] sm:$0xf]  ;;  %v9773_v62 = vld [vmem:[#allocation11 + $0xc60] sm:$0xf0] }
 0x263   :  { %v9518_v26 = vld [vmem:[#allocation11 + $0x46c] sm:$0xf] }
 0x264   :  { %5643 = vmatpush.bf16.msra.mxu1 %v7696_v9  ;;  %v9063_v9 = vld [vmem:[#allocation11 + $0xdd0] sm:$0xf]  ;;  %5570 = vmatpush.bf16.msra.mxu3 %v8000_v3 }
 0x265   :  { %v9064_v21 = vor.u32 %v9822_v10, %v9063_v9  ;;  %v8951_v9 = vld [vmem:[#allocation11 + $0xcf0] sm:$0xf]  ;;  %v9794_v10 = vld [vmem:[#allocation11 + $0xd08] sm:$0xf0] }
 0x266   :  { %5636 = vmatpush.bf16.msra.mxu2 %v7304_v31  ;;  %v9815_v31 = vld [vmem:[#allocation11 + $0xdb0] sm:$0xf0]  ;;  %5610 = vmatpush.bf16.msrb.mxu0 %v8644_v20  ;;  %v8952_v2 = vor.u32 %v9794_v10, %v8951_v9  ;;  %v9665_v10 = vld [vmem:[#allocation11 + $0x904] sm:$0xf] }
 0x267   :  { %v9036_v28 = vor.u32 %v9815_v31, %v9035_v30  ;;  %v8923_v30 = vld [vmem:[#allocation11 + $0xcb8] sm:$0xf]  ;;  %v9787_v31 = vld [vmem:[#allocation11 + $0xcd0] sm:$0xf0] }
 0x268   :  { %5644 = vmatpush.bf16.msra.mxu1 %v7668_v29  ;;  %v7948_v29 = vor.u32 %v9539_v13, %v7945_v15  ;;  %5571 = vmatpush.bf16.msra.mxu3 %v7972_v17  ;;  %v9511_v13 = vld [vmem:[#allocation11 + $0x434] sm:$0xf]  ;;  %v8564_v15 = vor.u32 %v9693_v4, %v8561_v0  ;;  %v8924_v41 = vor.u32 %v9787_v31, %v8923_v30  ;;  %v7419_v4 = vld [vmem:[#allocation11 + $0xf0] sm:$0xf]  ;;  %v9410_v0 = vld [vmem:[#allocation11 + $0x108] sm:$0xf0] }
 0x269   :  { %5637 = vmatmul.bf16.vlgmr.msra.gmra.mxu2 %v10233_v33  ;;  %5611 = vmatmul.bf16.vlgmr.msrb.gmra.mxu0 %v10272_v46  ;;  %v9431_v17 = vld [vmem:[#allocation11 + $0x1b0] sm:$0xf0]  ;;  %v9658_v30 = vld [vmem:[#allocation11 + $0x8cc] sm:$0xf]  ;;  %v8421_v31 = vld [vmem:[#allocation11 + $0x8e4] sm:$0xf0] }
 0x26a   :  { %5681 = vmatpush.bf16.msrb.mxu2 %v8396_v45  ;;  %v8617_v45 = vld [vmem:[#allocation11 + $0xa6c] sm:$0xf0]  ;;  %5655 = vmatpush.bf16.msra.mxu0 %v7948_v29  ;;  %v7836_v29 = vor.u32 %v9511_v13, %v7833_v27  ;;  %v8449_v13 = vld [vmem:[#allocation11 + $0x91c] sm:$0xf0] }
 0x26b   :  { %5572 = vmatmul.bf16.vlgmr.msra.gmra.mxu3 %v10243_v19  ;;  %v8620_v56 = vor.u32 %v9707_v38, %v8617_v45  ;;  %v9424_v38 = vld [vmem:[#allocation11 + $0x178] sm:$0xf0]  ;;  %v9679_v45 = vld [vmem:[#allocation11 + $0x974] sm:$0xf] }
 0x26c   :  { %5645 = vmatpush.bf16.msra.mxu1 %v7640_v48  ;;  %5616 = vmatpush.bf16.msrb.mxu3 %v9064_v21  ;;  %v7528_v48 = vor.u32 %v9434_v35, %v7525_v22  ;;  %v10306_v57 = vpop.f32.mrf.mxu2  ;;  %v8533_v21 = vld [vmem:[#allocation11 + $0x9c4] sm:$0xf0]  ;;  %v7805_v35 = vld [vmem:[#allocation11 + $0x414] sm:$0xf0]  ;;  %v7475_v22 = vld [vmem:[#allocation11 + $0x160] sm:$0xf] }
 0x26e   :  { %5682 = vmatpush.bf16.msrb.mxu2 %v8368_v58  ;;  %v9700_v58 = vld [vmem:[#allocation11 + $0xa1c] sm:$0xf]  ;;  %5656 = vmatpush.bf16.msra.mxu0 %v7920_v43  ;;  %v7808_v43 = vor.u32 %v9504_v32, %v7805_v35  ;;  %v9487_v35 = vld [vmem:[#allocation11 + $0x370] sm:$0xf0] }
 0x26f   :  { %v8592_v3 = vor.u32 %v9700_v58, %v8589_v52  ;;  %v9417_v58 = vld [vmem:[#allocation11 + $0x140] sm:$0xf0]  ;;  %v3000_v52 = vperm.slane %v10288_v11, 1 }
 0x270   :  { %5646 = vmatpush.bf16.msra.mxu1 %v7612_v1  ;;  %5617 = vmatpush.bf16.msrb.mxu3 %v9036_v28  ;;  %v9609_v1 = vld [vmem:[#allocation11 + $0x744] sm:$0xf]  ;;  %v7448_v24 = vor.u32 %v9417_v58, %v7447_v40  ;;  %v7699_v40 = vld [vmem:[#allocation11 + $0x320] sm:$0xf]  ;;  %v9480_v58 = vld [vmem:[#allocation11 + $0x338] sm:$0xf0] }
 0x271   :  { %v8228_v18 = vor.u32 %v9609_v1, %v8225_v34  ;;  %v8896_v1 = vor.u32 %v9780_v53, %v8895_v49  ;;  %v7780_v34 = vor.u32 %v9497_v55, %v7777_v51  ;;  %v5431_v11 = vadd.f32 %v10306_v57, %v3000_v52  ;;  %v9588_v57 = vld [vmem:[#allocation11 + $0x69c] sm:$0xf]  ;;  %v8785_v49 = vld [vmem:[#allocation11 + $0xbbc] sm:$0xf0] }
 0x272   :  { %5683 = vmatpush.bf16.msrb.mxu2 %v8340_v5  ;;  %v10308_v5 = vpop.f32.mrf.mxu1  ;;  %5657 = vmatpush.bf16.msra.mxu0 %v7892_v61  ;;  %v8867_v61 = vld [vmem:[#allocation11 + $0xc48] sm:$0xf] }
 0x273   :  { %v8868_v9 = vor.u32 %v9773_v62, %v8867_v61  ;;  %v9574_v61 = vld [vmem:[#allocation11 + $0x62c] sm:$0xf]  ;;  %v8757_v62 = vld [vmem:[#allocation11 + $0xb84] sm:$0xf0] }
 0x274   :  { %5647 = vmatpush.bf16.msra.mxu1 %v7584_v8  ;;  %5618 = vmatpush.bf16.msrb.mxu3 %v9008_v60  ;;  %v7864_v8 = vor.u32 %v9518_v26, %v7861_v44  ;;  %v5432_v20 = vpop.f32.mrf.mxu2  ;;  %v8477_v60 = vld [vmem:[#allocation11 + $0x954] sm:$0xf0]  ;;  %v7749_v26 = vld [vmem:[#allocation11 + $0x3a4] sm:$0xf0] }
 0x275   :  { %v8844_v20 = vor.u32 %v9763_v6, %v8841_v7  ;;  %v9382_v6 = vld [vmem:[#allocation11 + $0x28] sm:$0xf0]  ;;  %v9567_v7 = vld [vmem:[#allocation11 + $0x5f4] sm:$0xf] }
 0x276   :  { %5684 = vmatpush.bf16.msrb.mxu2 %v8312_v47  ;;  %v9686_v47 = vld [vmem:[#allocation11 + $0x9ac] sm:$0xf]  ;;  %5658 = vmatpush.bf16.msra.mxu0 %v7864_v8 }
 0x277   :  { %v8536_v14 = vor.u32 %v9686_v47, %v8533_v21  ;;  %v7391_v47 = vld [vmem:[#allocation11 + $0xb8] sm:$0xf]  ;;  %v9403_v21 = vld [vmem:[#allocation11 + $0xd0] sm:$0xf0] }
 0x278   :  { %5648 = vmatpush.bf16.msra.mxu1 %v7556_v63  ;;  %5619 = vmatpush.bf16.msrb.mxu3 %v8980_v16  ;;  %v7504_v63 = vor.u32 %v9431_v17, %v7503_v39  ;;  %v8169_v16 = vld [vmem:[#allocation11 + $0x6ec] sm:$0xf0]  ;;  %v7420_v39 = vor.u32 %v9410_v0, %v7419_v4  ;;  %v7392_v32 = vor.u32 %v9403_v21, %v7391_v47  ;;  %v7671_v4 = vld [vmem:[#allocation11 + $0x2e8] sm:$0xf]  ;;  %v9473_v0 = vld [vmem:[#allocation11 + $0x300] sm:$0xf0] }
 0x279   :  { %v7643_v47 = vld [vmem:[#allocation11 + $0x2b0] sm:$0xf]  ;;  %v9466_v21 = vld [vmem:[#allocation11 + $0x2c8] sm:$0xf0] }
 0x27a   :  { %5685 = vmatpush.bf16.msrb.mxu2 %v8284_v25  ;;  %v8505_v25 = vld [vmem:[#allocation11 + $0x98c] sm:$0xf0]  ;;  %v5393_v28 = vpop.f32.mrf.mxu1  ;;  %5659 = vmatpush.bf16.msra.mxu0 %v7836_v29  ;;  %v9756_v29 = vld [vmem:[#allocation11 + $0xbdc] sm:$0xf] }
 0x27b   :  { %v9581_v28 = vld [vmem:[#allocation11 + $0x664] sm:$0xf] }
 0x27c   :  { %5649 = vmatpush.bf16.msra.mxu1 %v7528_v48  ;;  %5620 = vmatpush.bf16.msrb.mxu3 %v8952_v2  ;;  %v7476_v48 = vor.u32 %v9424_v38, %v7475_v22  ;;  %v8141_v2 = vld [vmem:[#allocation11 + $0x6b4] sm:$0xf0] }
 0x27d   :  { %v8144_v22 = vor.u32 %v9588_v57, %v8141_v2  ;;  %v9560_v2 = vld [vmem:[#allocation11 + $0x5bc] sm:$0xf] }
 0x27e   :  { %5686 = vmatpush.bf16.msrb.mxu2 %v8256_v59  ;;  %v9672_v59 = vld [vmem:[#allocation11 + $0x93c] sm:$0xf]  ;;  %5660 = vmatpush.bf16.msra.mxu0 %v7808_v43  ;;  %v8113_v43 = vld [vmem:[#allocation11 + $0x67c] sm:$0xf0] }
 0x27f   :  { %5650 = vmatmul.bf16.vlgmr.msra.gmra.mxu1 %v10248_v37  ;;  %v8480_v44 = vor.u32 %v9672_v59, %v8477_v60  ;;  %v8116_v52 = vor.u32 %v9581_v28, %v8113_v43  ;;  %v7335_v60 = vld [vmem:[#allocation11 + $0x48] sm:$0xf]  ;;  %v9553_v43 = vld [vmem:[#allocation11 + $0x584] sm:$0xf] }
 0x280   :  { %5694 = vmatpush.bf16.msrb.mxu1 %v8620_v56  ;;  %v8508_v56 = vor.u32 %v9679_v45, %v8505_v25  ;;  %5621 = vmatpush.bf16.msrb.mxu3 %v8924_v41  ;;  %v7363_v45 = vld [vmem:[#allocation11 + $0x80] sm:$0xf]  ;;  %v9396_v25 = vld [vmem:[#allocation11 + $0x98] sm:$0xf0]  ;;  %v8424_v41 = vor.u32 %v9658_v30, %v8421_v31  ;;  %v8701_v31 = vld [vmem:[#allocation11 + $0xb14] sm:$0xf0] }
 0x281   :  { %v7364_v51 = vor.u32 %v9396_v25, %v7363_v45  ;;  %v9728_v30 = vld [vmem:[#allocation11 + $0xafc] sm:$0xf]  ;;  %v9459_v45 = vld [vmem:[#allocation11 + $0x290] sm:$0xf0] }
 0x282   :  { %5687 = vmatpush.bf16.msrb.mxu2 %v8228_v18  ;;  %v9595_v18 = vld [vmem:[#allocation11 + $0x6d4] sm:$0xf]  ;;  %v5443_v8 = vpop.f32.mrf.mxu1  ;;  %5661 = vmatpush.bf16.msra.mxu0 %v7780_v34  ;;  %v8085_v34 = vld [vmem:[#allocation11 + $0x644] sm:$0xf0] }
 0x283   :  { %v8172_v17 = vor.u32 %v9595_v18, %v8169_v16  ;;  %v8088_v18 = vor.u32 %v9574_v61, %v8085_v34  ;;  %v7307_v16 = vld [vmem:[#allocation11 + $0x10] sm:$0xf]  ;;  %v9546_v61 = vld [vmem:[#allocation11 + $0x54c] sm:$0xf]  ;;  %v7973_v34 = vld [vmem:[#allocation11 + $0x564] sm:$0xf0] }
 0x284   :  { %5695 = vmatpush.bf16.msrb.mxu1 %v8592_v3  ;;  %v9490_v3 = vld [vmem:[#allocation11 + $0x38c] sm:$0xf]  ;;  %5622 = vmatpush.bf16.msrb.mxu3 %v8896_v1  ;;  %v9389_v1 = vld [vmem:[#allocation11 + $0x60] sm:$0xf0] }
 0x285   :  { %v7752_v27 = vor.u32 %v9490_v3, %v7749_v26  ;;  %v7700_v3 = vor.u32 %v9480_v58, %v7699_v40  ;;  %v10320_v26 = vpop.f32.mrf.mxu0  ;;  %v8343_v40 = vld [vmem:[#allocation11 + $0x828] sm:$0xf]  ;;  %v9641_v58 = vld [vmem:[#allocation11 + $0x840] sm:$0xf0] }
 0x286   :  { %5688 = vmatpush.bf16.msrb.mxu2 %v8200_v23  ;;  %v8452_v23 = vor.u32 %v9665_v10, %v8449_v13  ;;  %v8729_v10 = vld [vmem:[#allocation11 + $0xb4c] sm:$0xf0] }
 0x287   :  { %5662 = vmatpush.bf16.msra.mxu0 %v7752_v27  ;;  %v7672_v27 = vor.u32 %v9473_v0, %v7671_v4  ;;  %v9634_v4 = vld [vmem:[#allocation11 + $0x808] sm:$0xf0] }
 0x288   :  { %5696 = vmatpush.bf16.msrb.mxu1 %v8564_v15  ;;  %v10314_v15 = vadd.f32 %v5443_v8, %v5431_v11  ;;  %5623 = vmatpush.bf16.msrb.mxu3 %v8868_v9  ;;  %v8057_v8 = vld [vmem:[#allocation11 + $0x60c] sm:$0xf0]  ;;  %v9735_v9 = vld [vmem:[#allocation11 + $0xb34] sm:$0xf] }
 0x289   :  { %5689 = vmatmul.bf16.vlgmr.msrb.gmra.mxu2 %v10253_v50  ;;  %v8060_v57 = vor.u32 %v9567_v7, %v8057_v8  ;;  %v9543_v7 = vld [vmem:[#allocation11 + $0x530] sm:$0xf0]  ;;  %v7559_v8 = vld [vmem:[#allocation11 + $0x208] sm:$0xf] }
 0x28a   :  { %5733 = vmatpush.bf16.msra.mxu2 %v7504_v63  ;;  %v8813_v63 = vld [vmem:[#allocation11 + $0xbf4] sm:$0xf0]  ;;  %5663 = vmatmul.bf16.vlgmr.msra.gmra.mxu0 %v10237_v12  ;;  %v5445_v53 = vpop.f32.mrf.mxu1 }
 0x28b   :  { %5707 = vmatpush.bf16.msrb.mxu0 %v8844_v20  ;;  %v8816_v38 = vor.u32 %v9756_v29, %v8813_v63  ;;  %5624 = vmatmul.bf16.vlgmr.msrb.gmra.mxu3 %v10282_v42  ;;  %v7308_v20 = vor.u32 %v9382_v6, %v7307_v16  ;;  %v8029_v63 = vld [vmem:[#allocation11 + $0x5d4] sm:$0xf0]  ;;  %v9721_v53 = vld [vmem:[#allocation11 + $0xac4] sm:$0xf] }
 0x28c   :  { %5697 = vmatpush.bf16.msrb.mxu1 %v8536_v14  ;;  %v7727_v14 = vld [vmem:[#allocation11 + $0x358] sm:$0xf]  ;;  %5668 = vmatpush.bf16.msra.mxu3 %v8172_v17  ;;  %v10318_v55 = vpop.f32.mrf.mxu2  ;;  %v9655_v17 = vld [vmem:[#allocation11 + $0x8b0] sm:$0xf0]  ;;  %v8032_v28 = vor.u32 %v9560_v2, %v8029_v63  ;;  %v9536_v63 = vld [vmem:[#allocation11 + $0x4f8] sm:$0xf0] }
 0x28d   :  { %v7951_v16 = vld [vmem:[#allocation11 + $0x518] sm:$0xf] }
 0x28e   :  { %5734 = vmatpush.bf16.msra.mxu2 %v7476_v48  ;;  %v9749_v48 = vld [vmem:[#allocation11 + $0xba4] sm:$0xf]  ;;  %v9037_v2 = vld [vmem:[#allocation11 + $0xdb4] sm:$0xf0] }
 0x28f   :  { %5708 = vmatpush.bf16.msrb.mxu0 %v8816_v38  ;;  %v8788_v59 = vor.u32 %v9749_v48, %v8785_v49  ;;  %v7615_v38 = vld [vmem:[#allocation11 + $0x278] sm:$0xf]  ;;  %v8001_v49 = vld [vmem:[#allocation11 + $0x59c] sm:$0xf0] }
 0x290   :  { %5698 = vmatpush.bf16.msrb.mxu1 %v8508_v56  ;;  %v7728_v56 = vor.u32 %v9487_v35, %v7727_v14  ;;  %5669 = vmatpush.bf16.msra.mxu3 %v8144_v22  ;;  %v8371_v14 = vld [vmem:[#allocation11 + $0x860] sm:$0xf]  ;;  %v9648_v35 = vld [vmem:[#allocation11 + $0x878] sm:$0xf0]  ;;  %v5406_v22 = vpop.f32.mrf.mxu0 }
 0x291   :  { %v8372_v48 = vor.u32 %v9648_v35, %v8371_v14  ;;  %v9711_v14 = vld [vmem:[#allocation11 + $0xa70] sm:$0xf0] }
 0x292   :  { %5735 = vmatpush.bf16.msra.mxu2 %v7448_v24  ;;  %v9742_v24 = vld [vmem:[#allocation11 + $0xb6c] sm:$0xf] }
 0x293   :  { %5709 = vmatpush.bf16.msrb.mxu0 %v8788_v59  ;;  %v8760_v11 = vor.u32 %v9742_v24, %v8757_v62  ;;  %v9452_v59 = vld [vmem:[#allocation11 + $0x258] sm:$0xf0]  ;;  %v9714_v24 = vld [vmem:[#allocation11 + $0xa8c] sm:$0xf]  ;;  %v8344_v62 = vor.u32 %v9641_v58, %v8343_v40  ;;  %v9529_v40 = vld [vmem:[#allocation11 + $0x4c0] sm:$0xf0] }
 0x294   :  { %5699 = vmatpush.bf16.msrb.mxu1 %v8480_v44  ;;  %v7336_v44 = vor.u32 %v9389_v1, %v7335_v60  ;;  %5670 = vmatpush.bf16.msra.mxu3 %v8116_v52  ;;  %v5484_v13 = vpop.f32.mrf.mxu2  ;;  %v7587_v52 = vld [vmem:[#allocation11 + $0x240] sm:$0xf]  ;;  %v8004_v60 = vor.u32 %v9553_v43, %v8001_v49  ;;  %v9805_v43 = vld [vmem:[#allocation11 + $0xd64] sm:$0xf] }
 0x295   :  { %v7588_v0 = vor.u32 %v9452_v59, %v7587_v52  ;;  %v7976_v13 = vor.u32 %v9546_v61, %v7973_v34  ;;  %v8595_v58 = vld [vmem:[#allocation11 + $0xa20] sm:$0xf]  ;;  %v9704_v52 = vld [vmem:[#allocation11 + $0xa38] sm:$0xf0]  ;;  %v9613_v34 = vld [vmem:[#allocation11 + $0x760] sm:$0xf0] }
 0x296   :  { %5736 = vmatpush.bf16.msra.mxu2 %v7420_v39  ;;  %v8399_v39 = vld [vmem:[#allocation11 + $0x898] sm:$0xf] }
 0x297   :  { %5710 = vmatpush.bf16.msrb.mxu0 %v8760_v11  ;;  %v8400_v29 = vor.u32 %v9655_v17, %v8399_v39  ;;  %v9065_v11 = vld [vmem:[#allocation11 + $0xdec] sm:$0xf0] }
 0x298   :  { %5700 = vmatpush.bf16.msrb.mxu1 %v8452_v23  ;;  %5671 = vmatpush.bf16.msra.mxu3 %v8088_v18  ;;  %v8732_v23 = vor.u32 %v9735_v9, %v8729_v10  ;;  %v9819_v18 = vld [vmem:[#allocation11 + $0xdd4] sm:$0xf]  ;;  %v10326_v6 = vpop.f32.mrf.mxu0  ;;  %v9445_v9 = vld [vmem:[#allocation11 + $0x220] sm:$0xf0] }
 0x299   :  { %v9068_v17 = vor.u32 %v9819_v18, %v9065_v11  ;;  %v9697_v18 = vld [vmem:[#allocation11 + $0xa00] sm:$0xf0] }
 0x29a   :  { %5737 = vmatpush.bf16.msra.mxu2 %v7392_v32  ;;  %v7644_v32 = vor.u32 %v9466_v21, %v7643_v47  ;;  %v9627_v47 = vld [vmem:[#allocation11 + $0x7d0] sm:$0xf0]  ;;  %v7952_v21 = vor.u32 %v9543_v7, %v7951_v16  ;;  %v8203_v7 = vld [vmem:[#allocation11 + $0x710] sm:$0xf] }
 0x29b   :  { %5711 = vmatpush.bf16.msrb.mxu0 %v8732_v23  ;;  %v9812_v23 = vld [vmem:[#allocation11 + $0xd9c] sm:$0xf] }
 0x29c   :  { %5701 = vmatpush.bf16.msrb.mxu1 %v8424_v41  ;;  %5672 = vmatpush.bf16.msra.mxu3 %v8060_v57  ;;  %v10323_v25 = vpop.f32.mrf.mxu1  ;;  %v8704_v41 = vor.u32 %v9728_v30, %v8701_v31  ;;  %v7560_v57 = vor.u32 %v9445_v9, %v7559_v8  ;;  %v7531_v30 = vld [vmem:[#allocation11 + $0x1d0] sm:$0xf]  ;;  %v9438_v31 = vld [vmem:[#allocation11 + $0x1e8] sm:$0xf0]  ;;  %v9040_v22 = vor.u32 %v9812_v23, %v9037_v2  ;;  %v7505_v23 = vld [vmem:[#allocation11 + $0x1b4] sm:$0xf0] }
 0x29d   :  { %v9606_v8 = vld [vmem:[#allocation11 + $0x728] sm:$0xf0]  ;;  %v8539_v2 = vld [vmem:[#allocation11 + $0x9b0] sm:$0xf] }
 0x29e   :  { %5738 = vmatpush.bf16.msra.mxu2 %v7364_v51  ;;  %v7616_v51 = vor.u32 %v9459_v45, %v7615_v38  ;;  %v8259_v38 = vld [vmem:[#allocation11 + $0x780] sm:$0xf] }
 0x29f   :  { %5702 = vmatmul.bf16.vlgmr.msrb.gmra.mxu1 %v10261_v36  ;;  %5712 = vmatpush.bf16.msrb.mxu0 %v8704_v41  ;;  %v9620_v41 = vld [vmem:[#allocation11 + $0x798] sm:$0xf0] }
 0x2a0   :  { %5746 = vmatpush.bf16.msra.mxu1 %v7728_v56  ;;  %v8673_v56 = vld [vmem:[#allocation11 + $0xadc] sm:$0xf0]  ;;  %5673 = vmatpush.bf16.msra.mxu3 %v8032_v28  ;;  %v7532_v28 = vor.u32 %v9438_v31, %v7531_v30  ;;  %v5458_v49 = vpop.f32.mrf.mxu0  ;;  %v8260_v59 = vor.u32 %v9620_v41, %v8259_v38  ;;  %v8925_v38 = vld [vmem:[#allocation11 + $0xcd4] sm:$0xf0] }
 0x2a1   :  { %v8676_v1 = vor.u32 %v9721_v53, %v8673_v56  ;;  %v10338_v30 = vld [vmem:[#allocation13] sm:$0xff]  ;;  %v8511_v49 = vld [vmem:[#allocation11 + $0x978] sm:$0xf] }
 0x2a2   :  { %5739 = vmatpush.bf16.msra.mxu2 %v7336_v44  ;;  %v8315_v44 = vld [vmem:[#allocation11 + $0x7f0] sm:$0xf]  ;;  %v3001_v31 = vperm.slane %v10338_v30, 2 }
 0x2a3   :  { %5713 = vmatpush.bf16.msrb.mxu0 %v8676_v1  ;;  %v8316_v39 = vor.u32 %v9634_v4, %v8315_v44  ;;  %v8231_v1 = vld [vmem:[#allocation11 + $0x748] sm:$0xf]  ;;  %v7867_v44 = vld [vmem:[#allocation11 + $0x470] sm:$0xf]  ;;  %v9522_v4 = vld [vmem:[#allocation11 + $0x488] sm:$0xf0] }
 0x2a4   :  { %5747 = vmatpush.bf16.msra.mxu1 %v7700_v3  ;;  %v8645_v3 = vld [vmem:[#allocation11 + $0xaa4] sm:$0xf0]  ;;  %5674 = vmatpush.bf16.msra.mxu3 %v8004_v60  ;;  %v5497_v10 = vpop.f32.mrf.mxu1  ;;  %v8232_v11 = vor.u32 %v9613_v34, %v8231_v1  ;;  %v7868_v9 = vor.u32 %v9522_v4, %v7867_v44  ;;  %v9777_v1 = vld [vmem:[#allocation11 + $0xc84] sm:$0xf] }
 0x2a5   :  { %v9791_v10 = vld [vmem:[#allocation11 + $0xcf4] sm:$0xf]  ;;  %v7783_v34 = vld [vmem:[#allocation11 + $0x3c8] sm:$0xf]  ;;  %v9501_v44 = vld [vmem:[#allocation11 + $0x3e0] sm:$0xf0] }
 0x2a6   :  { %5740 = vmatpush.bf16.msra.mxu2 %v7308_v20  ;;  %v8287_v20 = vld [vmem:[#allocation11 + $0x7b8] sm:$0xf]  ;;  %v7449_v4 = vld [vmem:[#allocation11 + $0x144] sm:$0xf0] }
 0x2a7   :  { %v8288_v35 = vor.u32 %v9627_v47, %v8287_v20 }
 0x2a8   :  { %5748 = vmatpush.bf16.msra.mxu1 %v7672_v27  ;;  %v8648_v27 = vor.u32 %v9714_v24, %v8645_v3  ;;  %5675 = vmatpush.bf16.msra.mxu3 %v7976_v13  ;;  %v9798_v24 = vld [vmem:[#allocation11 + $0xd2c] sm:$0xf]  ;;  %v8596_v3 = vor.u32 %v9704_v52, %v8595_v58  ;;  %v8953_v13 = vld [vmem:[#allocation11 + $0xd0c] sm:$0xf0] }
 0x2a9   :  { %5741 = vmatmul.bf16.vlgmr.msra.gmra.mxu2 %v10233_v33 }
 0x2aa   :  { %5785 = vmatpush.bf16.msrb.mxu2 %v8400_v29  ;;  %v7923_v29 = vld [vmem:[#allocation11 + $0x4e0] sm:$0xf]  ;;  %5714 = vmatpush.bf16.msrb.mxu0 %v8648_v27  ;;  %v7839_v27 = vld [vmem:[#allocation11 + $0x438] sm:$0xf] }
 0x2ab   :  { %v7924_v45 = vor.u32 %v9536_v63, %v7923_v29  ;;  %5676 = vmatmul.bf16.vlgmr.msra.gmra.mxu3 %v10243_v19  ;;  %v9690_v29 = vld [vmem:[#allocation11 + $0x9c8] sm:$0xf0] }
 0x2ac   :  { %5749 = vmatpush.bf16.msra.mxu1 %v7644_v32  ;;  %v8623_v32 = vld [vmem:[#allocation11 + $0xa58] sm:$0xf]  ;;  %5720 = vmatpush.bf16.msrb.mxu3 %v9068_v17  ;;  %v10330_v53 = vpop.f32.mrf.mxu2  ;;  %v10335_v17 = vpop.f32.mrf.mxu0  ;;  %v8540_v41 = vor.u32 %v9690_v29, %v8539_v2  ;;  %v9767_v2 = vld [vmem:[#allocation11 + $0xc30] sm:$0xf0] }
 0x2ad   :  { %5715 = vmatmul.bf16.vlgmr.msrb.gmra.mxu0 %v10272_v46  ;;  %v8624_v56 = vor.u32 %v9711_v14, %v8623_v32  ;;  %v8204_v32 = vor.u32 %v9606_v8, %v8203_v7  ;;  %v7784_v8 = vor.u32 %v9501_v44, %v7783_v34  ;;  %v7365_v44 = vld [vmem:[#allocation11 + $0x9c] sm:$0xf0] }
 0x2ae   :  { %5786 = vmatpush.bf16.msrb.mxu2 %v8372_v48  ;;  %5759 = vmatpush.bf16.msra.mxu0 %v7952_v21  ;;  %v9009_v48 = vld [vmem:[#allocation11 + $0xd7c] sm:$0xf0]  ;;  %v9515_v21 = vld [vmem:[#allocation11 + $0x450] sm:$0xf0] }
 0x2af   :  { %v9012_v60 = vor.u32 %v9805_v43, %v9009_v48  ;;  %v7840_v14 = vor.u32 %v9515_v21, %v7839_v27  ;;  %v9508_v43 = vld [vmem:[#allocation11 + $0x418] sm:$0xf0]  ;;  %v7477_v48 = vld [vmem:[#allocation11 + $0x17c] sm:$0xf0]  ;;  %v9494_v27 = vld [vmem:[#allocation11 + $0x3a8] sm:$0xf0] }
 0x2b0   :  { %5750 = vmatpush.bf16.msra.mxu1 %v7616_v51  ;;  %v7895_v51 = vld [vmem:[#allocation11 + $0x4a8] sm:$0xf]  ;;  %5721 = vmatpush.bf16.msrb.mxu3 %v9040_v22  ;;  %v9784_v22 = vld [vmem:[#allocation11 + $0xcbc] sm:$0xf]  ;;  %v8175_v21 = vld [vmem:[#allocation11 + $0x6d8] sm:$0xf] }
 0x2b1   :  { %v7896_v61 = vor.u32 %v9529_v40, %v7895_v51  ;;  %v5535_v51 = vadd.f32 %v10330_v53, %v3001_v31  ;;  %v8928_v58 = vor.u32 %v9784_v22, %v8925_v38  ;;  %v9414_v53 = vld [vmem:[#allocation11 + $0x12c] sm:$0xf]  ;;  %v8455_v31 = vld [vmem:[#allocation11 + $0x908] sm:$0xf]  ;;  %v9400_v22 = vld [vmem:[#allocation11 + $0xbc] sm:$0xf] }
 0x2b2   :  { %5787 = vmatpush.bf16.msrb.mxu2 %v8344_v62  ;;  %5760 = vmatpush.bf16.msra.mxu0 %v7924_v45  ;;  %v8981_v62 = vld [vmem:[#allocation11 + $0xd44] sm:$0xf0]  ;;  %v7811_v45 = vld [vmem:[#allocation11 + $0x400] sm:$0xf] }
 0x2b3   :  { %v8984_v16 = vor.u32 %v9798_v24, %v8981_v62 }
 0x2b4   :  { %5751 = vmatpush.bf16.msra.mxu1 %v7588_v0  ;;  %v8567_v0 = vld [vmem:[#allocation11 + $0x9e8] sm:$0xf]  ;;  %5722 = vmatpush.bf16.msrb.mxu3 %v9012_v60  ;;  %v5536_v20 = vpop.f32.mrf.mxu2  ;;  %v5510_v62 = vpop.f32.mrf.mxu0 }
 0x2b5   :  { %v8568_v47 = vor.u32 %v9697_v18, %v8567_v0  ;;  %v8483_v0 = vld [vmem:[#allocation11 + $0x940] sm:$0xf]  ;;  %v9676_v18 = vld [vmem:[#allocation11 + $0x958] sm:$0xf0]  ;;  %v9407_v20 = vld [vmem:[#allocation11 + $0xf4] sm:$0xf] }
 0x2b6   :  { %5788 = vmatpush.bf16.msrb.mxu2 %v8316_v39  ;;  %5761 = vmatpush.bf16.msra.mxu0 %v7896_v61  ;;  %v5392_v39 = vadd.f32 %v10308_v5, %v10301_v54  ;;  %v8956_v54 = vor.u32 %v9791_v10, %v8953_v13  ;;  %v5417_v5 = vpop.f32.mrf.mxu3  ;;  %v8897_v61 = vld [vmem:[#allocation11 + $0xc9c] sm:$0xf0]  ;;  %v8869_v10 = vld [vmem:[#allocation11 + $0xc64] sm:$0xf0]  ;;  %v7755_v13 = vld [vmem:[#allocation11 + $0x390] sm:$0xf] }
 0x2b8   :  { %5752 = vmatpush.bf16.msra.mxu1 %v7560_v57  ;;  %v9428_v57 = vld [vmem:[#allocation11 + $0x19c] sm:$0xf]  ;;  %v5405_v63 = vadd.f32 %v10320_v26, %v5392_v39  ;;  %5723 = vmatpush.bf16.msrb.mxu3 %v8984_v16  ;;  %v9421_v26 = vld [vmem:[#allocation11 + $0x164] sm:$0xf]  ;;  %v9770_v16 = vld [vmem:[#allocation11 + $0xc4c] sm:$0xf]  ;;  %v8484_v39 = vor.u32 %v9676_v18, %v8483_v0 }
 0x2b9   :  { %v7480_v60 = vor.u32 %v9421_v26, %v7477_v48  ;;  %v8791_v0 = vld [vmem:[#allocation11 + $0xba8] sm:$0xf]  ;;  %v9753_v18 = vld [vmem:[#allocation11 + $0xbc0] sm:$0xf0] }
 0x2ba   :  { %5789 = vmatpush.bf16.msrb.mxu2 %v8288_v35  ;;  %5762 = vmatpush.bf16.msra.mxu0 %v7868_v9  ;;  %v7508_v35 = vor.u32 %v9428_v57, %v7505_v23  ;;  %v7452_v9 = vor.u32 %v9414_v53, %v7449_v4  ;;  %v9599_v57 = vld [vmem:[#allocation11 + $0x6f0] sm:$0xf0]  ;;  %v8847_v23 = vld [vmem:[#allocation11 + $0xc18] sm:$0xf]  ;;  %v8119_v53 = vld [vmem:[#allocation11 + $0x668] sm:$0xf] }
 0x2bb   :  { %v8176_v38 = vor.u32 %v9599_v57, %v8175_v21  ;;  %v9585_v4 = vld [vmem:[#allocation11 + $0x680] sm:$0xf0]  ;;  %v8763_v21 = vld [vmem:[#allocation11 + $0xb70] sm:$0xf]  ;;  %v9746_v57 = vld [vmem:[#allocation11 + $0xb88] sm:$0xf0] }
 0x2bc   :  { %5753 = vmatpush.bf16.msra.mxu1 %v7532_v28  ;;  %v5418_v28 = vadd.f32 %v5417_v5, %v5405_v63  ;;  %5724 = vmatpush.bf16.msrb.mxu3 %v8956_v54  ;;  %v5547_v52 = vpop.f32.mrf.mxu1  ;;  %v8872_v63 = vor.u32 %v9770_v16, %v8869_v10  ;;  %v8120_v10 = vor.u32 %v9585_v4, %v8119_v53  ;;  %v9456_v53 = vld [vmem:[#allocation11 + $0x27c] sm:$0xf] }
 0x2bd   :  { %v10342_v24 = vadd.f32 %v5547_v52, %v5535_v51  ;;  %v5457_v51 = vadd.f32 %v10326_v6, %v10314_v15 }
 0x2be   :  { %5790 = vmatpush.bf16.msrb.mxu2 %v8260_v59  ;;  %v6045_v40 = vmul.f32 0.5, %v5418_v28  ;;  %5763 = vmatpush.bf16.msra.mxu0 %v7840_v14  ;;  %v7812_v59 = vor.u32 %v9508_v43, %v7811_v45  ;;  %v5419_v7 = vpop.f32.mrf.mxu3  ;;  %v7756_v14 = vor.u32 %v9494_v27, %v7755_v13  ;;  %v8848_v45 = vor.u32 %v9767_v2, %v8847_v23  ;;  %v7393_v28 = vld [vmem:[#allocation11 + $0xd4] sm:$0xf0]  ;;  %v9592_v43 = vld [vmem:[#allocation11 + $0x6b8] sm:$0xf0] }
 0x2bf   :  { %5754 = vmatmul.bf16.vlgmr.msra.gmra.mxu1 %v10248_v37  ;;  %v8792_v13 = vor.u32 %v9753_v18, %v8791_v0  ;;  %v9386_v27 = vld [vmem:[#allocation11 + $0x4c] sm:$0xf] }
 0x2c0   :  { %5798 = vmatpush.bf16.msrb.mxu1 %v8624_v56  ;;  %v9683_v56 = vld [vmem:[#allocation11 + $0x990] sm:$0xf0]  ;;  %9839 = vtanh.f32 %v6045_v40  ;;  %5725 = vmatpush.bf16.msrb.mxu3 %v8928_v58  ;;  %v8427_v40 = vld [vmem:[#allocation11 + $0x8d0] sm:$0xf]  ;;  %v9662_v58 = vld [vmem:[#allocation11 + $0x8e8] sm:$0xf0] }
 0x2c1   :  { %v8428_v6 = vor.u32 %v9662_v58, %v8427_v40 }
 0x2c2   :  { %5791 = vmatpush.bf16.msrb.mxu2 %v8232_v11  ;;  %v8900_v11 = vor.u32 %v9777_v1, %v8897_v61  ;;  %5764 = vmatpush.bf16.msra.mxu0 %v7812_v59  ;;  %v7396_v59 = vor.u32 %v9400_v22, %v7393_v28  ;;  %v7729_v1 = vld [vmem:[#allocation11 + $0x374] sm:$0xf0]  ;;  %v9739_v28 = vld [vmem:[#allocation11 + $0xb50] sm:$0xf0] }
 0x2c4   :  { %5799 = vmatpush.bf16.msrb.mxu1 %v8596_v3  ;;  %v8512_v3 = vor.u32 %v9683_v56, %v8511_v49  ;;  %5726 = vmatpush.bf16.msrb.mxu3 %v8900_v11  ;;  %v5549_v5 = vpop.f32.mrf.mxu1  ;;  %v8819_v49 = vld [vmem:[#allocation11 + $0xbe0] sm:$0xf]  ;;  %v9760_v56 = vld [vmem:[#allocation11 + $0xbf8] sm:$0xf0] }
 0x2c5   :  { %v8820_v62 = vor.u32 %v9760_v56, %v8819_v49  ;;  %v7309_v5 = vld [vmem:[#allocation11 + $0x2c] sm:$0xf0]  ;;  %v9463_v56 = vld [vmem:[#allocation11 + $0x2b4] sm:$0xf] }
 0x2c6   :  { %5792 = vmatpush.bf16.msrb.mxu2 %v8204_v32  ;;  %v9840_v29 = vpop.eup %9839  ;;  %v9669_v32 = vld [vmem:[#allocation11 + $0x920] sm:$0xf0]  ;;  %5765 = vmatpush.bf16.msra.mxu0 %v7784_v8  ;;  %v5469_v52 = vpop.f32.mrf.mxu3 }
 0x2c7   :  { %v6059_v54 = vmul.f32 0.5, %v9840_v29  ;;  %v8456_v48 = vor.u32 %v9669_v32, %v8455_v31  ;;  %v5470_v61 = vadd.f32 %v5469_v52, %v5457_v51  ;;  %v9477_v8 = vld [vmem:[#allocation11 + $0x324] sm:$0xf]  ;;  %v9470_v29 = vld [vmem:[#allocation11 + $0x2ec] sm:$0xf]  ;;  %v8764_v32 = vor.u32 %v9746_v57, %v8763_v21 }
 0x2c8   :  { %5800 = vmatpush.bf16.msrb.mxu1 %v8568_v47  ;;  %v7421_v47 = vld [vmem:[#allocation11 + $0x10c] sm:$0xf0]  ;;  %5727 = vmatpush.bf16.msrb.mxu3 %v8872_v63  ;;  %v7673_v63 = vld [vmem:[#allocation11 + $0x304] sm:$0xf0]  ;;  %v8035_v52 = vld [vmem:[#allocation11 + $0x5c0] sm:$0xf] }
 0x2c9   :  { %5793 = vmatmul.bf16.vlgmr.msrb.gmra.mxu2 %v10253_v50  ;;  %v6066_v26 = vadd.f32 0.5, %v6059_v54  ;;  %v5483_v11 = vadd.f32 %v10318_v55, %v5470_v61  ;;  %v9379_v54 = vld [vmem:[#allocation11 + $0x14] sm:$0xf]  ;;  %v7645_v51 = vld [vmem:[#allocation11 + $0x2cc] sm:$0xf0] }
 0x2ca   :  { %5837 = vmatpush.bf16.msra.mxu2 %v7508_v35  ;;  %v7424_v35 = vor.u32 %v9407_v20, %v7421_v47  ;;  %5766 = vmatpush.bf16.msra.mxu0 %v7756_v14  ;;  %v8091_v20 = vld [vmem:[#allocation11 + $0x630] sm:$0xf]  ;;  %v9578_v47 = vld [vmem:[#allocation11 + $0x648] sm:$0xf0]  ;;  %v8063_v14 = vld [vmem:[#allocation11 + $0x5f8] sm:$0xf]  ;;  %v7312_v49 = vor.u32 %v9379_v54, %v7309_v5 }
 0x2cb   :  { %6073 = vst [vmem:[#allocation14] sm:$0xff] %v6066_v26  ;;  %5728 = vmatmul.bf16.vlgmr.msrb.gmra.mxu3 %v10282_v42  ;;  %v8092_v31 = vor.u32 %v9578_v47, %v8091_v20  ;;  %v8401_v26 = vld [vmem:[#allocation11 + $0x8b4] sm:$0xf0]  ;;  %v9732_v61 = vld [vmem:[#allocation11 + $0xb18] sm:$0xf0] }
 0x2cc   :  { %5801 = vmatpush.bf16.msrb.mxu1 %v8540_v41  ;;  %v8147_v41 = vld [vmem:[#allocation11 + $0x6a0] sm:$0xf]  ;;  %5772 = vmatpush.bf16.msra.mxu3 %v8176_v38  ;;  %v10348_v15 = vpop.f32.mrf.mxu2  ;;  %v9571_v38 = vld [vmem:[#allocation11 + $0x610] sm:$0xf0]  ;;  %v8345_v20 = vld [vmem:[#allocation11 + $0x844] sm:$0xf0] }
 0x2cd   :  { %v8148_v34 = vor.u32 %v9592_v43, %v8147_v41  ;;  %5767 = vmatmul.bf16.vlgmr.msra.gmra.mxu0 %v10237_v12  ;;  %v7676_v41 = vor.u32 %v9470_v29, %v7673_v63  ;;  %v9652_v43 = vld [vmem:[#allocation11 + $0x89c] sm:$0xf]  ;;  %v8064_v40 = vor.u32 %v9571_v38, %v8063_v14  ;;  %v9449_v47 = vld [vmem:[#allocation11 + $0x244] sm:$0xf]  ;;  %v7589_v21 = vld [vmem:[#allocation11 + $0x25c] sm:$0xf0] }
 0x2ce   :  { %5838 = vmatpush.bf16.msra.mxu2 %v7480_v60  ;;  %v9484_v60 = vld [vmem:[#allocation11 + $0x35c] sm:$0xf]  ;;  %5811 = vmatpush.bf16.msrb.mxu0 %v8848_v45  ;;  %v5471_v23 = vpop.f32.mrf.mxu3  ;;  %v8735_v45 = vld [vmem:[#allocation11 + $0xb38] sm:$0xf]  ;;  %v8651_v29 = vld [vmem:[#allocation11 + $0xa90] sm:$0xf]  ;;  %v7592_v5 = vor.u32 %v9449_v47, %v7589_v21 }
 0x2cf   :  { %v7732_v16 = vor.u32 %v9484_v60, %v7729_v1  ;;  %v8736_v58 = vor.u32 %v9739_v28, %v8735_v45  ;;  %v9564_v60 = vld [vmem:[#allocation11 + $0x5d8] sm:$0xf0]  ;;  %v8707_v1 = vld [vmem:[#allocation11 + $0xb00] sm:$0xf]  ;;  %v7979_v23 = vld [vmem:[#allocation11 + $0x550] sm:$0xf] }
 0x2d0   :  { %5802 = vmatpush.bf16.msrb.mxu1 %v8512_v3  ;;  %v9393_v3 = vld [vmem:[#allocation11 + $0x84] sm:$0xf]  ;;  %5773 = vmatpush.bf16.msra.mxu3 %v8148_v34  ;;  %v8036_v18 = vor.u32 %v9564_v60, %v8035_v52  ;;  %v8317_v54 = vld [vmem:[#allocation11 + $0x80c] sm:$0xf0]  ;;  %v9071_v14 = vld [vmem:[#allocation11 + $0xdd8] sm:$0xf] }
 0x2d1   :  { %v7368_v7 = vor.u32 %v9393_v3, %v7365_v44  ;;  %v9645_v3 = vld [vmem:[#allocation11 + $0x864] sm:$0xf]  ;;  %v8373_v44 = vld [vmem:[#allocation11 + $0x87c] sm:$0xf0]  ;;  %v9540_v38 = vld [vmem:[#allocation11 + $0x51c] sm:$0xf] }
 0x2d2   :  { %5839 = vmatpush.bf16.msra.mxu2 %v7452_v9  ;;  %v7701_v9 = vld [vmem:[#allocation11 + $0x33c] sm:$0xf0]  ;;  %5812 = vmatpush.bf16.msrb.mxu0 %v8820_v62  ;;  %v7648_v62 = vor.u32 %v9463_v56, %v7645_v51  ;;  %v7953_v28 = vld [vmem:[#allocation11 + $0x534] sm:$0xf0]  ;;  %v9701_v47 = vld [vmem:[#allocation11 + $0xa24] sm:$0xf] }
 0x2d3   :  { %v7704_v55 = vor.u32 %v9477_v8, %v7701_v9  ;;  %v8376_v8 = vor.u32 %v9645_v3, %v8373_v44  ;;  %v9557_v9 = vld [vmem:[#allocation11 + $0x5a0] sm:$0xf0]  ;;  %v9043_v52 = vld [vmem:[#allocation11 + $0xda0] sm:$0xf]  ;;  %v7956_v60 = vor.u32 %v9540_v38, %v7953_v28  ;;  %v9435_v44 = vld [vmem:[#allocation11 + $0x1d4] sm:$0xf] }
 0x2d4   :  { %5803 = vmatpush.bf16.msrb.mxu1 %v8484_v39  ;;  %v7337_v39 = vld [vmem:[#allocation11 + $0x64] sm:$0xf0]  ;;  %5774 = vmatpush.bf16.msra.mxu3 %v8120_v10  ;;  %v5588_v22 = vpop.f32.mrf.mxu2  ;;  %v9725_v10 = vld [vmem:[#allocation11 + $0xae0] sm:$0xf0]  ;;  %v8597_v21 = vld [vmem:[#allocation11 + $0xa3c] sm:$0xf0] }
 0x2d5   :  { %v7340_v2 = vor.u32 %v9386_v27, %v7337_v39  ;;  %v9638_v39 = vld [vmem:[#allocation11 + $0x82c] sm:$0xf]  ;;  %v9823_v22 = vld [vmem:[#allocation11 + $0xdf0] sm:$0xf0] }
 0x2d6   :  { %5840 = vmatpush.bf16.msra.mxu2 %v7424_v35  ;;  %5813 = vmatpush.bf16.msrb.mxu0 %v8792_v13  ;;  %v10353_v35 = vpop.f32.mrf.mxu0  ;;  %v8348_v63 = vor.u32 %v9638_v39, %v8345_v20  ;;  %v9072_v51 = vor.u32 %v9823_v22, %v9071_v14  ;;  %v9526_v39 = vld [vmem:[#allocation11 + $0x4ac] sm:$0xf]  ;;  %v7897_v20 = vld [vmem:[#allocation11 + $0x4c4] sm:$0xf0]  ;;  %v9603_v28 = vld [vmem:[#allocation11 + $0x714] sm:$0xf] }
 0x2d7   :  { %v9694_v14 = vld [vmem:[#allocation11 + $0x9ec] sm:$0xf]  ;;  %v8569_v22 = vld [vmem:[#allocation11 + $0xa04] sm:$0xf0] }
 0x2d8   :  { %5804 = vmatpush.bf16.msrb.mxu1 %v8456_v48  ;;  %v5496_v48 = vadd.f32 %v10323_v25, %v5483_v11  ;;  %5775 = vmatpush.bf16.msra.mxu3 %v8092_v31  ;;  %v5521_v25 = vpop.f32.mrf.mxu3  ;;  %v8708_v11 = vor.u32 %v9732_v61, %v8707_v1  ;;  %v9718_v31 = vld [vmem:[#allocation11 + $0xaa8] sm:$0xf0]  ;;  %v9816_v61 = vld [vmem:[#allocation11 + $0xdb8] sm:$0xf0] }
 0x2da   :  { %5841 = vmatpush.bf16.msra.mxu2 %v7396_v59  ;;  %5814 = vmatpush.bf16.msrb.mxu0 %v8764_v32  ;;  %v8404_v59 = vor.u32 %v9652_v43, %v8401_v26  ;;  %v5509_v34 = vadd.f32 %v10335_v17, %v5496_v48  ;;  %v8679_v17 = vld [vmem:[#allocation11 + $0xac8] sm:$0xf]  ;;  %v9631_v32 = vld [vmem:[#allocation11 + $0x7f4] sm:$0xf] }
 0x2db   :  { %v7561_v43 = vld [vmem:[#allocation11 + $0x224] sm:$0xf0]  ;;  %v8320_v56 = vor.u32 %v9631_v32, %v8317_v54  ;;  %v8600_v32 = vor.u32 %v9701_v47, %v8597_v21  ;;  %v9519_v54 = vld [vmem:[#allocation11 + $0x474] sm:$0xf] }
 0x2dc   :  { %5805 = vmatpush.bf16.msrb.mxu1 %v8428_v6  ;;  %v7617_v6 = vld [vmem:[#allocation11 + $0x294] sm:$0xf0]  ;;  %5776 = vmatpush.bf16.msra.mxu3 %v8064_v40  ;;  %v5522_v4 = vadd.f32 %v5521_v25, %v5509_v34  ;;  %v10357_v0 = vpop.f32.mrf.mxu1  ;;  %v9624_v40 = vld [vmem:[#allocation11 + $0x7bc] sm:$0xf]  ;;  %v9533_v34 = vld [vmem:[#allocation11 + $0x4e4] sm:$0xf] }
 0x2dd   :  { %v7620_v27 = vor.u32 %v9456_v53, %v7617_v6  ;;  %v7533_v25 = vld [vmem:[#allocation11 + $0x1ec] sm:$0xf0]  ;;  %v9708_v53 = vld [vmem:[#allocation11 + $0xa5c] sm:$0xf]  ;;  %v8625_v6 = vld [vmem:[#allocation11 + $0xa74] sm:$0xf0] }
 0x2de   :  { %5842 = vmatpush.bf16.msra.mxu2 %v7368_v7  ;;  %5815 = vmatpush.bf16.msrb.mxu0 %v8736_v58  ;;  %v5562_v7 = vpop.f32.mrf.mxu0  ;;  %v6046_v13 = vmul.f32 0.5, %v5522_v4  ;;  %v8289_v58 = vld [vmem:[#allocation11 + $0x7d4] sm:$0xf0]  ;;  %v8903_v21 = vld [vmem:[#allocation11 + $0xc88] sm:$0xf] }
 0x2df   :  { %5806 = vmatmul.bf16.vlgmr.msrb.gmra.mxu1 %v10261_v36 }
 0x2e0   :  { %5850 = vmatpush.bf16.msra.mxu1 %v7732_v16  ;;  %v8007_v16 = vld [vmem:[#allocation11 + $0x588] sm:$0xf]  ;;  %9841 = vtanh.f32 %v6046_v13  ;;  %5777 = vmatpush.bf16.msra.mxu3 %v8036_v18  ;;  %v5523_v45 = vpop.f32.mrf.mxu3  ;;  %v8292_v18 = vor.u32 %v9624_v40, %v8289_v58  ;;  %v8572_v40 = vor.u32 %v9694_v14, %v8569_v22  ;;  %v7841_v58 = vld [vmem:[#allocation11 + $0x454] sm:$0xf0] }
 0x2e1   :  { %v8008_v57 = vor.u32 %v9557_v9, %v8007_v16  ;;  %v9617_v16 = vld [vmem:[#allocation11 + $0x784] sm:$0xf]  ;;  %v8261_v9 = vld [vmem:[#allocation11 + $0x79c] sm:$0xf0] }
 0x2e2   :  { %5843 = vmatpush.bf16.msra.mxu2 %v7340_v2  ;;  %5816 = vmatpush.bf16.msrb.mxu0 %v8708_v11  ;;  %v9550_v2 = vld [vmem:[#allocation11 + $0x568] sm:$0xf0]  ;;  %v9044_v11 = vor.u32 %v9816_v61, %v9043_v52  ;;  %v7511_v52 = vld [vmem:[#allocation11 + $0x1a0] sm:$0xf]  ;;  %v8541_v61 = vld [vmem:[#allocation11 + $0x9cc] sm:$0xf0] }
 0x2e3   :  { %v7980_v48 = vor.u32 %v9550_v2, %v7979_v23  ;;  %v9610_v23 = vld [vmem:[#allocation11 + $0x74c] sm:$0xf]  ;;  %v7900_v2 = vor.u32 %v9526_v39, %v7897_v20 }
 0x2e4   :  { %5851 = vmatpush.bf16.msra.mxu1 %v7704_v55  ;;  %v8680_v55 = vor.u32 %v9725_v10, %v8679_v17  ;;  %5778 = vmatpush.bf16.msra.mxu3 %v8008_v57  ;;  %v5601_v26 = vpop.f32.mrf.mxu1  ;;  %v9015_v17 = vld [vmem:[#allocation11 + $0xd68] sm:$0xf]  ;;  %v9809_v10 = vld [vmem:[#allocation11 + $0xd80] sm:$0xf0]  ;;  %v8264_v57 = vor.u32 %v9617_v16, %v8261_v9  ;;  %v9680_v9 = vld [vmem:[#allocation11 + $0x97c] sm:$0xf] }
 0x2e5   :  { %v7483_v16 = vld [vmem:[#allocation11 + $0x168] sm:$0xf] }
 0x2e6   :  { %5844 = vmatpush.bf16.msra.mxu2 %v7312_v49  ;;  %5817 = vmatpush.bf16.msrb.mxu0 %v8680_v55  ;;  %v8652_v49 = vor.u32 %v9718_v31, %v8651_v29  ;;  %v9016_v55 = vor.u32 %v9809_v10, %v9015_v17  ;;  %v8233_v29 = vld [vmem:[#allocation11 + $0x764] sm:$0xf0]  ;;  %v9802_v31 = vld [vmem:[#allocation11 + $0xd48] sm:$0xf0]  ;;  %v8513_v17 = vld [vmem:[#allocation11 + $0x994] sm:$0xf0] }
 0x2e7   :  { %v8236_v38 = vor.u32 %v9610_v23, %v8233_v29  ;;  %v8516_v23 = vor.u32 %v9680_v9, %v8513_v17  ;;  %v7455_v29 = vld [vmem:[#allocation11 + $0x130] sm:$0xf] }
 0x2e8   :  { %5852 = vmatpush.bf16.msra.mxu1 %v7676_v41  ;;  %v9442_v41 = vld [vmem:[#allocation11 + $0x20c] sm:$0xf]  ;;  %5779 = vmatpush.bf16.msra.mxu3 %v7980_v48  ;;  %v8959_v48 = vld [vmem:[#allocation11 + $0xcf8] sm:$0xf] }
 0x2e9   :  { %5845 = vmatmul.bf16.vlgmr.msra.gmra.mxu2 %v10233_v33  ;;  %v7564_v1 = vor.u32 %v9442_v41, %v7561_v43  ;;  %v8205_v41 = vld [vmem:[#allocation11 + $0x72c] sm:$0xf0]  ;;  %v10363_v43 = vpop.f32.mrf.mxu0 }
 0x2ea   :  { %5889 = vmatpush.bf16.msrb.mxu2 %v8404_v59  ;;  %v9842_v59 = vpop.eup %9841  ;;  %5818 = vmatpush.bf16.msrb.mxu0 %v8652_v49  ;;  %v9795_v49 = vld [vmem:[#allocation11 + $0xd10] sm:$0xf0] }
 0x2eb   :  { %v6060_v3 = vmul.f32 0.5, %v9842_v59  ;;  %5780 = vmatmul.bf16.vlgmr.msra.gmra.mxu3 %v10243_v19  ;;  %v9432_v59 = vld [vmem:[#allocation11 + $0x1b8] sm:$0xf0] }
 0x2ec   :  { %5853 = vmatpush.bf16.msra.mxu1 %v7648_v62  ;;  %v7925_v62 = vld [vmem:[#allocation11 + $0x4fc] sm:$0xf0]  ;;  %5824 = vmatpush.bf16.msrb.mxu3 %v9072_v51  ;;  %v5638_v13 = vpop.f32.mrf.mxu2 }
 0x2ed   :  { %v6067_v4 = vadd.f32 0.5, %v6060_v3  ;;  %v7928_v7 = vor.u32 %v9533_v34, %v7925_v62  ;;  %5819 = vmatmul.bf16.vlgmr.msrb.gmra.mxu0 %v10272_v46  ;;  %v8208_v34 = vor.u32 %v9603_v28, %v8205_v41  ;;  %v8960_v62 = vor.u32 %v9795_v49, %v8959_v48  ;;  %v7427_v41 = vld [vmem:[#allocation11 + $0xf8] sm:$0xf]  ;;  %v9596_v48 = vld [vmem:[#allocation11 + $0x6dc] sm:$0xf] }
 0x2ee   :  { %5890 = vmatpush.bf16.msrb.mxu2 %v8376_v8  ;;  %5863 = vmatpush.bf16.msra.mxu0 %v7956_v60  ;;  %v7536_v8 = vor.u32 %v9435_v44, %v7533_v25  ;;  %v3002_v60 = vperm.slane %v10338_v30, 3  ;;  %v7512_v44 = vor.u32 %v9432_v59, %v7511_v52  ;;  %v8931_v25 = vld [vmem:[#allocation11 + $0xcc0] sm:$0xf]  ;;  %v9425_v30 = vld [vmem:[#allocation11 + $0x180] sm:$0xf0] }
 0x2ef   :  { %6074 = vst [vmem:[#allocation14 + $0x8] sm:$0xff] %v6067_v4  ;;  %v5561_v4 = vadd.f32 %v10353_v35, %v10342_v24  ;;  %v7484_v35 = vor.u32 %v9425_v30, %v7483_v16  ;;  %v9666_v59 = vld [vmem:[#allocation11 + $0x90c] sm:$0xf]  ;;  %v8429_v16 = vld [vmem:[#allocation11 + $0x8ec] sm:$0xf0] }
 0x2f0   :  { %5854 = vmatpush.bf16.msra.mxu1 %v7620_v27  ;;  %v8628_v27 = vor.u32 %v9708_v53, %v8625_v6  ;;  %5825 = vmatpush.bf16.msrb.mxu3 %v9044_v11  ;;  %v9788_v53 = vld [vmem:[#allocation11 + $0xcd8] sm:$0xf0]  ;;  %v9505_v6 = vld [vmem:[#allocation11 + $0x404] sm:$0xf]  ;;  %v7813_v11 = vld [vmem:[#allocation11 + $0x41c] sm:$0xf0] }
 0x2f1   :  { %v8932_v39 = vor.u32 %v9788_v53, %v8931_v25  ;;  %v5614_v47 = vpop.f32.mrf.mxu0  ;;  %v7816_v24 = vor.u32 %v9505_v6, %v7813_v11  ;;  %v9589_v25 = vld [vmem:[#allocation11 + $0x6a4] sm:$0xf]  ;;  %v8149_v6 = vld [vmem:[#allocation11 + $0x6bc] sm:$0xf0]  ;;  %v9659_v11 = vld [vmem:[#allocation11 + $0x8d4] sm:$0xf] }
 0x2f2   :  { %5891 = vmatpush.bf16.msrb.mxu2 %v8348_v63  ;;  %5864 = vmatpush.bf16.msra.mxu0 %v7928_v7  ;;  %v8987_v63 = vld [vmem:[#allocation11 + $0xd30] sm:$0xf]  ;;  %v5639_v7 = vadd.f32 %v5638_v13, %v3002_v60  ;;  %v8457_v60 = vld [vmem:[#allocation11 + $0x924] sm:$0xf0]  ;;  %v8152_v9 = vor.u32 %v9589_v25, %v8149_v6  ;;  %v8432_v47 = vor.u32 %v9659_v11, %v8429_v16  ;;  %v9467_v25 = vld [vmem:[#allocation11 + $0x2d0] sm:$0xf0] }
 0x2f3   :  { %v8988_v45 = vor.u32 %v9802_v31, %v8987_v63  ;;  %v9418_v63 = vld [vmem:[#allocation11 + $0x148] sm:$0xf0]  ;;  %v9673_v31 = vld [vmem:[#allocation11 + $0x944] sm:$0xf]  ;;  %v8460_v53 = vor.u32 %v9666_v59, %v8457_v60  ;;  %v8737_v59 = vld [vmem:[#allocation11 + $0xb54] sm:$0xf0] }
 0x2f4   :  { %5855 = vmatpush.bf16.msra.mxu1 %v7592_v5  ;;  %v7869_v5 = vld [vmem:[#allocation11 + $0x48c] sm:$0xf0]  ;;  %5826 = vmatpush.bf16.msrb.mxu3 %v9016_v55  ;;  %v5640_v51 = vpop.f32.mrf.mxu2  ;;  %v9498_v55 = vld [vmem:[#allocation11 + $0x3cc] sm:$0xf]  ;;  %v7456_v22 = vor.u32 %v9418_v63, %v7455_v29  ;;  %v9481_v29 = vld [vmem:[#allocation11 + $0x340] sm:$0xf0] }
 0x2f5   :  { %v7872_v26 = vor.u32 %v9519_v54, %v7869_v5  ;;  %v8875_v5 = vld [vmem:[#allocation11 + $0xc50] sm:$0xf]  ;;  %v9764_v51 = vld [vmem:[#allocation11 + $0xc1c] sm:$0xf]  ;;  %v8037_v16 = vld [vmem:[#allocation11 + $0x5dc] sm:$0xf0] }
 0x2f6   :  { %5892 = vmatpush.bf16.msrb.mxu2 %v8320_v56  ;;  %5865 = vmatpush.bf16.msra.mxu0 %v7900_v2  ;;  %v9512_v56 = vld [vmem:[#allocation11 + $0x43c] sm:$0xf]  ;;  %v7785_v2 = vld [vmem:[#allocation11 + $0x3e4] sm:$0xf0] }
 0x2f7   :  { %v7844_v3 = vor.u32 %v9512_v56, %v7841_v58  ;;  %v7788_v14 = vor.u32 %v9498_v55, %v7785_v2  ;;  %v8177_v56 = vld [vmem:[#allocation11 + $0x6f4] sm:$0xf0]  ;;  %v7707_v2 = vld [vmem:[#allocation11 + $0x328] sm:$0xf] }
 0x2f8   :  { %5856 = vmatpush.bf16.msra.mxu1 %v7564_v1  ;;  %v9687_v1 = vld [vmem:[#allocation11 + $0x9b4] sm:$0xf]  ;;  %5827 = vmatpush.bf16.msrb.mxu3 %v8988_v45 }
 0x2f9   :  { %v9491_v45 = vld [vmem:[#allocation11 + $0x394] sm:$0xf] }
 0x2fa   :  { %5893 = vmatpush.bf16.msrb.mxu2 %v8292_v18  ;;  %5866 = vmatpush.bf16.msra.mxu0 %v7872_v26  ;;  %v8544_v18 = vor.u32 %v9687_v1, %v8541_v61  ;;  %v9411_v26 = vld [vmem:[#allocation11 + $0x110] sm:$0xf0] }
 0x2fb   :  { %v7428_v61 = vor.u32 %v9411_v26, %v7427_v41  ;;  %v9474_v41 = vld [vmem:[#allocation11 + $0x308] sm:$0xf0] }
 0x2fc   :  { %5857 = vmatpush.bf16.msra.mxu1 %v7536_v8  ;;  %v5573_v8 = vpop.f32.mrf.mxu3  ;;  %5828 = vmatpush.bf16.msrb.mxu3 %v8960_v62 }
 0x2fd   :  { %v5574_v10 = vadd.f32 %v5573_v8, %v5561_v4  ;;  %v9757_v4 = vld [vmem:[#allocation11 + $0xbe4] sm:$0xf]  ;;  %v9488_v8 = vld [vmem:[#allocation11 + $0x378] sm:$0xf0] }
 0x2fe   :  { %5894 = vmatpush.bf16.msrb.mxu2 %v8264_v57  ;;  %5867 = vmatpush.bf16.msra.mxu0 %v7844_v3  ;;  %v9781_v57 = vld [vmem:[#allocation11 + $0xca0] sm:$0xf0]  ;;  %v7399_v3 = vld [vmem:[#allocation11 + $0xc0] sm:$0xf] }
 0x2ff   :  { %5858 = vmatmul.bf16.vlgmr.msra.gmra.mxu1 %v10248_v37  ;;  %v10371_v13 = vadd.f32 %v10348_v15, %v5574_v10  ;;  %v8904_v54 = vor.u32 %v9781_v57, %v8903_v21  ;;  %v7757_v15 = vld [vmem:[#allocation11 + $0x3ac] sm:$0xf0]  ;;  %v7371_v10 = vld [vmem:[#allocation11 + $0x88] sm:$0xf] }
 0x300   :  { %5902 = vmatpush.bf16.msrb.mxu1 %v8628_v27  ;;  %v5651_v27 = vpop.f32.mrf.mxu1  ;;  %5829 = vmatpush.bf16.msrb.mxu3 %v8932_v39  ;;  %v7760_v1 = vor.u32 %v9491_v45, %v7757_v15  ;;  %v9582_v39 = vld [vmem:[#allocation11 + $0x66c] sm:$0xf]  ;;  %v8793_v21 = vld [vmem:[#allocation11 + $0xbc4] sm:$0xf0]  ;;  %v7708_v45 = vor.u32 %v9481_v29, %v7707_v2 }
 0x301   :  { %v10368_v20 = vadd.f32 %v5651_v27, %v5639_v7  ;;  %v7735_v7 = vld [vmem:[#allocation11 + $0x360] sm:$0xf]  ;;  %v9397_v27 = vld [vmem:[#allocation11 + $0xa0] sm:$0xf0]  ;;  %v5600_v60 = vadd.f32 %v10357_v0, %v10371_v13  ;;  %v9722_v2 = vld [vmem:[#allocation11 + $0xacc] sm:$0xf] }
 0x302   :  { %5895 = vmatpush.bf16.msrb.mxu2 %v8236_v38  ;;  %5868 = vmatpush.bf16.msra.mxu0 %v7816_v24  ;;  %v9774_v38 = vld [vmem:[#allocation11 + $0xc68] sm:$0xf0]  ;;  %v8121_v24 = vld [vmem:[#allocation11 + $0x684] sm:$0xf0]  ;;  %v7736_v55 = vor.u32 %v9488_v8, %v7735_v7  ;;  %v8709_v0 = vld [vmem:[#allocation11 + $0xb1c] sm:$0xf0] }
 0x303   :  { %v8876_v52 = vor.u32 %v9774_v38, %v8875_v5  ;;  %v8124_v63 = vor.u32 %v9582_v39, %v8121_v24  ;;  %v9575_v5 = vld [vmem:[#allocation11 + $0x634] sm:$0xf]  ;;  %v8765_v38 = vld [vmem:[#allocation11 + $0xb8c] sm:$0xf0]  ;;  %v5613_v11 = vadd.f32 %v10363_v43, %v5600_v60  ;;  %v8379_v8 = vld [vmem:[#allocation11 + $0x868] sm:$0xf] }
 0x304   :  { %5903 = vmatpush.bf16.msrb.mxu1 %v8600_v32  ;;  %v8485_v32 = vld [vmem:[#allocation11 + $0x95c] sm:$0xf0]  ;;  %v5575_v49 = vpop.f32.mrf.mxu3  ;;  %5830 = vmatpush.bf16.msrb.mxu3 %v8904_v54  ;;  %v9390_v54 = vld [vmem:[#allocation11 + $0x68] sm:$0xf0]  ;;  %v8009_v43 = vld [vmem:[#allocation11 + $0x5a4] sm:$0xf0] }
 0x305   :  { %v8488_v28 = vor.u32 %v9673_v31, %v8485_v32  ;;  %v7343_v32 = vld [vmem:[#allocation11 + $0x50] sm:$0xf]  ;;  %v7315_v49 = vld [vmem:[#allocation11 + $0x18] sm:$0xf]  ;;  %v8681_v29 = vld [vmem:[#allocation11 + $0xae4] sm:$0xf0] }
 0x306   :  { %5896 = vmatpush.bf16.msrb.mxu2 %v8208_v34  ;;  %5869 = vmatpush.bf16.msra.mxu0 %v7788_v14  ;;  %v8180_v34 = vor.u32 %v9596_v48, %v8177_v56  ;;  %v8093_v14 = vld [vmem:[#allocation11 + $0x64c] sm:$0xf0]  ;;  %v7344_v15 = vor.u32 %v9390_v54, %v7343_v32  ;;  %v9383_v56 = vld [vmem:[#allocation11 + $0x30] sm:$0xf0]  ;;  %v9642_v32 = vld [vmem:[#allocation11 + $0x848] sm:$0xf0] }
 0x307   :  { %v8096_v26 = vor.u32 %v9575_v5, %v8093_v14  ;;  %v7595_v54 = vld [vmem:[#allocation11 + $0x248] sm:$0xf]  ;;  %v9453_v5 = vld [vmem:[#allocation11 + $0x260] sm:$0xf0]  ;;  %v9446_v60 = vld [vmem:[#allocation11 + $0x228] sm:$0xf0] }
 0x308   :  { %5904 = vmatpush.bf16.msrb.mxu1 %v8572_v40  ;;  %v8849_v40 = vld [vmem:[#allocation11 + $0xc34] sm:$0xf0]  ;;  %v5653_v58 = vpop.f32.mrf.mxu1  ;;  %5831 = vmatpush.bf16.msrb.mxu3 %v8876_v52  ;;  %v9736_v52 = vld [vmem:[#allocation11 + $0xb3c] sm:$0xf] }
 0x309   :  { %5897 = vmatmul.bf16.vlgmr.msrb.gmra.mxu2 %v10253_v50  ;;  %v8852_v62 = vor.u32 %v9764_v51, %v8849_v40  ;;  %v9568_v51 = vld [vmem:[#allocation11 + $0x5fc] sm:$0xf]  ;;  %v10379_v40 = vpop.f32.mrf.mxu0  ;;  %v8065_v58 = vld [vmem:[#allocation11 + $0x614] sm:$0xf0]  ;;  %v8740_v6 = vor.u32 %v9736_v52, %v8737_v59  ;;  %v7567_v59 = vld [vmem:[#allocation11 + $0x210] sm:$0xf] }
 0x30a   :  { %5941 = vmatpush.bf16.msra.mxu2 %v7512_v44  ;;  %v9404_v44 = vld [vmem:[#allocation11 + $0xd8] sm:$0xf0]  ;;  %5870 = vmatpush.bf16.msra.mxu0 %v7760_v1 }
 0x30b   :  { %v7400_v30 = vor.u32 %v9404_v44, %v7399_v3  ;;  %5832 = vmatmul.bf16.vlgmr.msrb.gmra.mxu3 %v10282_v42  ;;  %v7316_v3 = vor.u32 %v9383_v56, %v7315_v49  ;;  %v7651_v44 = vld [vmem:[#allocation11 + $0x2b8] sm:$0xf]  ;;  %v7596_v49 = vor.u32 %v9453_v5, %v7595_v54  ;;  %v9820_v56 = vld [vmem:[#allocation11 + $0xddc] sm:$0xf] }
 0x30c   :  { %5905 = vmatpush.bf16.msrb.mxu1 %v8544_v18  ;;  %v8821_v18 = vld [vmem:[#allocation11 + $0xbfc] sm:$0xf0]  ;;  %5876 = vmatpush.bf16.msra.mxu3 %v8180_v34  ;;  %v10376_v57 = vpop.f32.mrf.mxu2  ;;  %v7652_v7 = vor.u32 %v9467_v25, %v7651_v44  ;;  %v9544_v52 = vld [vmem:[#allocation11 + $0x538] sm:$0xf0] }
 0x30d   :  { %v8824_v17 = vor.u32 %v9757_v4, %v8821_v18  ;;  %5871 = vmatmul.bf16.vlgmr.msra.gmra.mxu0 %v10237_v12  ;;  %v8407_v34 = vld [vmem:[#allocation11 + $0x8a0] sm:$0xf]  ;;  %v9561_v4 = vld [vmem:[#allocation11 + $0x5c4] sm:$0xf] }
 0x30e   :  { %5942 = vmatpush.bf16.msra.mxu2 %v7484_v35  ;;  %5915 = vmatpush.bf16.msrb.mxu0 %v8852_v62  ;;  %v9750_v35 = vld [vmem:[#allocation11 + $0xbac] sm:$0xf]  ;;  %v9656_v62 = vld [vmem:[#allocation11 + $0x8b8] sm:$0xf0]  ;;  %v5625_v13 = vpop.f32.mrf.mxu3  ;;  %v8295_v25 = vld [vmem:[#allocation11 + $0x7c0] sm:$0xf] }
 0x30f   :  { %v8796_v31 = vor.u32 %v9750_v35, %v8793_v21  ;;  %v8408_v18 = vor.u32 %v9656_v62, %v8407_v34  ;;  %v9554_v35 = vld [vmem:[#allocation11 + $0x58c] sm:$0xf] }
 0x310   :  { %5906 = vmatpush.bf16.msrb.mxu1 %v8516_v23  ;;  %v7372_v23 = vor.u32 %v9397_v27, %v7371_v10  ;;  %5877 = vmatpush.bf16.msra.mxu3 %v8152_v9  ;;  %v9649_v9 = vld [vmem:[#allocation11 + $0x880] sm:$0xf0]  ;;  %v7623_v10 = vld [vmem:[#allocation11 + $0x280] sm:$0xf]  ;;  %v9460_v27 = vld [vmem:[#allocation11 + $0x298] sm:$0xf0]  ;;  %v8012_v14 = vor.u32 %v9554_v35, %v8009_v43 }
 0x312   :  { %5943 = vmatpush.bf16.msra.mxu2 %v7456_v22  ;;  %5916 = vmatpush.bf16.msrb.mxu0 %v8824_v17  ;;  %v9743_v22 = vld [vmem:[#allocation11 + $0xb74] sm:$0xf]  ;;  %v5626_v17 = vadd.f32 %v5625_v13, %v5613_v11  ;;  %v7568_v11 = vor.u32 %v9446_v60, %v7567_v59  ;;  %v7539_v13 = vld [vmem:[#allocation11 + $0x1d8] sm:$0xf]  ;;  %v9792_v60 = vld [vmem:[#allocation11 + $0xcfc] sm:$0xf] }
 0x313   :  { %v8768_v48 = vor.u32 %v9743_v22, %v8765_v38  ;;  %v8684_v22 = vor.u32 %v9722_v2, %v8681_v29  ;;  %v9547_v38 = vld [vmem:[#allocation11 + $0x554] sm:$0xf]  ;;  %v7903_v29 = vld [vmem:[#allocation11 + $0x4b0] sm:$0xf] }
 0x314   :  { %5907 = vmatpush.bf16.msrb.mxu1 %v8488_v28  ;;  %v7679_v28 = vld [vmem:[#allocation11 + $0x2f0] sm:$0xf]  ;;  %5878 = vmatpush.bf16.msra.mxu3 %v8124_v63  ;;  %v5692_v1 = vpop.f32.mrf.mxu2  ;;  %v6047_v21 = vmul.f32 0.5, %v5626_v17  ;;  %v7624_v63 = vor.u32 %v9460_v27, %v7623_v10  ;;  %v9712_v17 = vld [vmem:[#allocation11 + $0xa78] sm:$0xf0] }
 0x315   :  { %v9607_v59 = vld [vmem:[#allocation11 + $0x730] sm:$0xf0] }
 0x316   :  { %5944 = vmatpush.bf16.msra.mxu2 %v7428_v61  ;;  %5917 = vmatpush.bf16.msrb.mxu0 %v8796_v31  ;;  %v7680_v61 = vor.u32 %v9474_v41, %v7679_v28  ;;  %v8351_v31 = vld [vmem:[#allocation11 + $0x830] sm:$0xf]  ;;  %9843 = vtanh.f32 %v6047_v21  ;;  %v9806_v21 = vld [vmem:[#allocation11 + $0xd6c] sm:$0xf] }
 0x317   :  { %v8352_v28 = vor.u32 %v9642_v32, %v8351_v31  ;;  %v8653_v41 = vld [vmem:[#allocation11 + $0xaac] sm:$0xf0]  ;;  %v8603_v31 = vld [vmem:[#allocation11 + $0xa28] sm:$0xf]  ;;  %v9705_v32 = vld [vmem:[#allocation11 + $0xa40] sm:$0xf0] }
 0x318   :  { %5908 = vmatpush.bf16.msrb.mxu1 %v8460_v53  ;;  %5879 = vmatpush.bf16.msra.mxu3 %v8096_v26  ;;  %v8068_v53 = vor.u32 %v9568_v51, %v8065_v58  ;;  %v8323_v26 = vld [vmem:[#allocation11 + $0x7f8] sm:$0xf]  ;;  %v7959_v58 = vld [vmem:[#allocation11 + $0x520] sm:$0xf] }
 0x319   :  { %v9073_v51 = vld [vmem:[#allocation11 + $0xdf4] sm:$0xf0] }
 0x31a   :  { %5945 = vmatpush.bf16.msra.mxu2 %v7400_v30  ;;  %5918 = vmatpush.bf16.msrb.mxu0 %v8768_v48  ;;  %v9729_v30 = vld [vmem:[#allocation11 + $0xb04] sm:$0xf]  ;;  %v9635_v48 = vld [vmem:[#allocation11 + $0x810] sm:$0xf0]  ;;  %v9076_v44 = vor.u32 %v9820_v56, %v9073_v51  ;;  %v8211_v51 = vld [vmem:[#allocation11 + $0x718] sm:$0xf] }
 0x31b   :  { %v8712_v24 = vor.u32 %v9729_v30, %v8709_v0  ;;  %v7931_v30 = vld [vmem:[#allocation11 + $0x4e8] sm:$0xf]  ;;  %v9537_v0 = vld [vmem:[#allocation11 + $0x500] sm:$0xf0] }
 0x31c   :  { %5909 = vmatpush.bf16.msrb.mxu1 %v8432_v47  ;;  %5880 = vmatpush.bf16.msra.mxu3 %v8068_v53  ;;  %v10384_v39 = vpop.f32.mrf.mxu1  ;;  %v8040_v47 = vor.u32 %v9561_v4, %v8037_v16  ;;  %v9844_v62 = vpop.eup %9843  ;;  %v9628_v53 = vld [vmem:[#allocation11 + $0x7d8] sm:$0xf0]  ;;  %v9045_v16 = vld [vmem:[#allocation11 + $0xdbc] sm:$0xf0]  ;;  %v7932_v35 = vor.u32 %v9537_v0, %v7931_v30  ;;  %v5665_v30 = vadd.f32 %v10379_v40, %v10368_v20  ;;  %v8905_v20 = vld [vmem:[#allocation11 + $0xca4] sm:$0xf0] }
 0x31d   :  { %v6061_v4 = vmul.f32 0.5, %v9844_v62  ;;  %v8296_v10 = vor.u32 %v9628_v53, %v8295_v25  ;;  %v7847_v62 = vld [vmem:[#allocation11 + $0x440] sm:$0xf]  ;;  %v8547_v53 = vld [vmem:[#allocation11 + $0x9b8] sm:$0xf] }
 0x31e   :  { %5946 = vmatpush.bf16.msra.mxu2 %v7372_v23  ;;  %5919 = vmatpush.bf16.msrb.mxu0 %v8740_v6  ;;  %v8380_v23 = vor.u32 %v9649_v9, %v8379_v8  ;;  %v9813_v6 = vld [vmem:[#allocation11 + $0xda4] sm:$0xf]  ;;  %v8631_v9 = vld [vmem:[#allocation11 + $0xa60] sm:$0xf] }
 0x31f   :  { %5910 = vmatmul.bf16.vlgmr.msrb.gmra.mxu1 %v10261_v36  ;;  %v6068_v8 = vadd.f32 0.5, %v6061_v4  ;;  %v9048_v27 = vor.u32 %v9813_v6, %v9045_v16  ;;  %v8632_v2 = vor.u32 %v9712_v17, %v8631_v9  ;;  %v9691_v6 = vld [vmem:[#allocation11 + $0x9d0] sm:$0xf0]  ;;  %v8933_v16 = vld [vmem:[#allocation11 + $0xcdc] sm:$0xf0] }
 0x320   :  { %5954 = vmatpush.bf16.msra.mxu1 %v7736_v55  ;;  %v5666_v55 = vpop.f32.mrf.mxu0  ;;  %5881 = vmatpush.bf16.msra.mxu3 %v8040_v47  ;;  %v8267_v47 = vld [vmem:[#allocation11 + $0x788] sm:$0xf]  ;;  %v8548_v0 = vor.u32 %v9691_v6, %v8547_v53  ;;  %v8519_v17 = vld [vmem:[#allocation11 + $0x980] sm:$0xf] }
 0x321   :  { %6075 = vst [vmem:[#allocation14 + $0x10] sm:$0xff] %v6068_v8  ;;  %v9017_v55 = vld [vmem:[#allocation11 + $0xd84] sm:$0xf0] }
 0x322   :  { %5947 = vmatpush.bf16.msra.mxu2 %v7344_v15  ;;  %5920 = vmatpush.bf16.msrb.mxu0 %v8712_v24  ;;  %v9715_v15 = vld [vmem:[#allocation11 + $0xa94] sm:$0xf]  ;;  %v9621_v24 = vld [vmem:[#allocation11 + $0x7a0] sm:$0xf0]  ;;  %v9020_v5 = vor.u32 %v9806_v21, %v9017_v55  ;;  %v9778_v55 = vld [vmem:[#allocation11 + $0xc8c] sm:$0xf] }
 0x323   :  { %v8656_v34 = vor.u32 %v9715_v15, %v8653_v41  ;;  %v8268_v54 = vor.u32 %v9621_v24, %v8267_v47  ;;  %v8989_v15 = vld [vmem:[#allocation11 + $0xd4c] sm:$0xf0]  ;;  %v7875_v41 = vld [vmem:[#allocation11 + $0x478] sm:$0xf] }
 0x324   :  { %5955 = vmatpush.bf16.msra.mxu1 %v7708_v45  ;;  %v7981_v45 = vld [vmem:[#allocation11 + $0x56c] sm:$0xf0]  ;;  %5882 = vmatpush.bf16.msra.mxu3 %v8012_v14  ;;  %v5705_v1 = vpop.f32.mrf.mxu1 }
 0x325   :  { %v8239_v14 = vld [vmem:[#allocation11 + $0x750] sm:$0xf]  ;;  %v8961_v1 = vld [vmem:[#allocation11 + $0xd14] sm:$0xf0] }
 0x326   :  { %5948 = vmatpush.bf16.msra.mxu2 %v7316_v3  ;;  %5921 = vmatpush.bf16.msrb.mxu0 %v8684_v22  ;;  %v8324_v3 = vor.u32 %v9635_v48, %v8323_v26  ;;  %v9523_v26 = vld [vmem:[#allocation11 + $0x490] sm:$0xf0]  ;;  %v8575_v48 = vld [vmem:[#allocation11 + $0x9f0] sm:$0xf]  ;;  %v8964_v4 = vor.u32 %v9792_v60, %v8961_v1  ;;  %v8155_v60 = vld [vmem:[#allocation11 + $0x6a8] sm:$0xf] }
 0x327   :  { %v9593_v1 = vld [vmem:[#allocation11 + $0x6c0] sm:$0xf0] }
 0x328   :  { %5956 = vmatpush.bf16.msra.mxu1 %v7680_v61  ;;  %v7984_v61 = vor.u32 %v9547_v38, %v7981_v45  ;;  %v9614_v38 = vld [vmem:[#allocation11 + $0x768] sm:$0xf0]  ;;  %v9799_v45 = vld [vmem:[#allocation11 + $0xd34] sm:$0xf] }
 0x329   :  { %5949 = vmatmul.bf16.vlgmr.msra.gmra.mxu2 %v10233_v33  ;;  %v5627_v33 = vpop.f32.mrf.mxu3  ;;  %v8992_v56 = vor.u32 %v9799_v45, %v8989_v15  ;;  %v9600_v15 = vld [vmem:[#allocation11 + $0x6f8] sm:$0xf0] }
 0x32a   :  { %5993 = vmatpush.bf16.msrb.mxu2 %v8408_v18  ;;  %v7960_v18 = vor.u32 %v9544_v52, %v7959_v58  ;;  %5883 = vmatpush.bf16.msra.mxu3 %v7984_v61  ;;  %v9698_v33 = vld [vmem:[#allocation11 + $0xa08] sm:$0xf0]  ;;  %v10390_v58 = vpop.f32.mrf.mxu0  ;;  %v7876_v52 = vor.u32 %v9523_v26, %v7875_v41  ;;  %v9768_v26 = vld [vmem:[#allocation11 + $0xc38] sm:$0xf0] }
 0x32b   :  { %5922 = vmatpush.bf16.msrb.mxu0 %v8656_v34  ;;  %v8576_v34 = vor.u32 %v9698_v33, %v8575_v48  ;;  %v8463_v48 = vld [vmem:[#allocation11 + $0x910] sm:$0xf]  ;;  %v9670_v33 = vld [vmem:[#allocation11 + $0x928] sm:$0xf0] }
 0x32c   :  { %5957 = vmatpush.bf16.msra.mxu1 %v7652_v7  ;;  %v9439_v7 = vld [vmem:[#allocation11 + $0x1f0] sm:$0xf0] }
 0x32d   :  { %v7540_v43 = vor.u32 %v9439_v7, %v7539_v13  ;;  %5884 = vmatmul.bf16.vlgmr.msra.gmra.mxu3 %v10243_v19  ;;  %v7819_v13 = vld [vmem:[#allocation11 + $0x408] sm:$0xf]  ;;  %v9509_v7 = vld [vmem:[#allocation11 + $0x420] sm:$0xf0] }
 0x32e   :  { %5994 = vmatpush.bf16.msrb.mxu2 %v8380_v23  ;;  %5928 = vmatpush.bf16.msrb.mxu3 %v9076_v44  ;;  %v5742_v23 = vpop.f32.mrf.mxu2  ;;  %v10392_v44 = vld [vmem:[#allocation13] sm:$0xff]  ;;  %v7820_v21 = vor.u32 %v9509_v7, %v7819_v13  ;;  %v8099_v13 = vld [vmem:[#allocation11 + $0x638] sm:$0xf]  ;;  %v9579_v7 = vld [vmem:[#allocation11 + $0x650] sm:$0xf0] }
 0x32f   :  { %5967 = vmatpush.bf16.msra.mxu0 %v7960_v18  ;;  %v3003_v25 = vperm.slane %v10392_v44, 4 }
 0x330   :  { %5958 = vmatpush.bf16.msra.mxu1 %v7624_v63  ;;  %5923 = vmatmul.bf16.vlgmr.msrb.gmra.mxu0 %v10272_v46  ;;  %v9530_v63 = vld [vmem:[#allocation11 + $0x4c8] sm:$0xf0] }
 0x331   :  { %v7904_v22 = vor.u32 %v9530_v63, %v7903_v29  ;;  %v5743_v8 = vadd.f32 %v5742_v23, %v3003_v25  ;;  %v5677_v9 = vpop.f32.mrf.mxu3  ;;  %v9502_v29 = vld [vmem:[#allocation11 + $0x3e8] sm:$0xf0]  ;;  %v8491_v63 = vld [vmem:[#allocation11 + $0x948] sm:$0xf]  ;;  %v8156_v25 = vor.u32 %v9593_v1, %v8155_v60 }
 0x332   :  { %5995 = vmatpush.bf16.msrb.mxu2 %v8352_v28  ;;  %5929 = vmatpush.bf16.msrb.mxu3 %v9048_v27  ;;  %v8604_v28 = vor.u32 %v9705_v32, %v8603_v31  ;;  %v5678_v27 = vadd.f32 %v5677_v9, %v5665_v30  ;;  %v9677_v31 = vld [vmem:[#allocation11 + $0x960] sm:$0xf0]  ;;  %v8908_v32 = vor.u32 %v9778_v55, %v8905_v20  ;;  %v9747_v9 = vld [vmem:[#allocation11 + $0xb90] sm:$0xf0] }
 0x333   :  { %5968 = vmatpush.bf16.msra.mxu0 %v7932_v35  ;;  %v8492_v45 = vor.u32 %v9677_v31, %v8491_v63  ;;  %v8715_v63 = vld [vmem:[#allocation11 + $0xb08] sm:$0xf]  ;;  %v9733_v31 = vld [vmem:[#allocation11 + $0xb20] sm:$0xf0] }
 0x334   :  { %5959 = vmatpush.bf16.msra.mxu1 %v7596_v49  ;;  %v8240_v49 = vor.u32 %v9614_v38, %v8239_v14  ;;  %v10400_v40 = vadd.f32 %v10376_v57, %v5678_v27  ;;  %v8877_v14 = vld [vmem:[#allocation11 + $0xc6c] sm:$0xf0]  ;;  %v9495_v38 = vld [vmem:[#allocation11 + $0x3b0] sm:$0xf0]  ;;  %v8183_v57 = vld [vmem:[#allocation11 + $0x6e0] sm:$0xf] }
 0x335   :  { %v8071_v27 = vld [vmem:[#allocation11 + $0x600] sm:$0xf] }
 0x336   :  { %5996 = vmatpush.bf16.msrb.mxu2 %v8324_v3  ;;  %5930 = vmatpush.bf16.msrb.mxu3 %v9020_v5  ;;  %v5744_v61 = vpop.f32.mrf.mxu2  ;;  %v9516_v3 = vld [vmem:[#allocation11 + $0x458] sm:$0xf0] }
 0x337   :  { %5969 = vmatpush.bf16.msra.mxu0 %v7904_v22  ;;  %v7848_v18 = vor.u32 %v9516_v3, %v7847_v62  ;;  %v7763_v22 = vld [vmem:[#allocation11 + $0x398] sm:$0xf]  ;;  %v8827_v61 = vld [vmem:[#allocation11 + $0xbe8] sm:$0xf]  ;;  %v9663_v3 = vld [vmem:[#allocation11 + $0x8f0] sm:$0xf0] }
 0x338   :  { %5960 = vmatpush.bf16.msra.mxu1 %v7568_v11  ;;  %v9785_v11 = vld [vmem:[#allocation11 + $0xcc4] sm:$0xf]  ;;  %v8435_v62 = vld [vmem:[#allocation11 + $0x8d8] sm:$0xf] }
 0x339   :  { %v8936_v24 = vor.u32 %v9785_v11, %v8933_v16  ;;  %v5679_v41 = vpop.f32.mrf.mxu3  ;;  %v8436_v6 = vor.u32 %v9663_v3, %v8435_v62  ;;  %v9754_v11 = vld [vmem:[#allocation11 + $0xbc8] sm:$0xf0] }
 0x33a   :  { %5997 = vmatpush.bf16.msrb.mxu2 %v8296_v10  ;;  %5931 = vmatpush.bf16.msrb.mxu3 %v8992_v56  ;;  %v9684_v10 = vld [vmem:[#allocation11 + $0x998] sm:$0xf0]  ;;  %v7764_v56 = vor.u32 %v9495_v38, %v7763_v22  ;;  %v8716_v22 = vor.u32 %v9733_v31, %v8715_v63  ;;  %v7987_v41 = vld [vmem:[#allocation11 + $0x558] sm:$0xf]  ;;  %v9775_v31 = vld [vmem:[#allocation11 + $0xc70] sm:$0xf0] }
 0x33b   :  { %5970 = vmatpush.bf16.msra.mxu0 %v7876_v52  ;;  %v8520_v23 = vor.u32 %v9684_v10, %v8519_v17  ;;  %v8100_v17 = vor.u32 %v9579_v7, %v8099_v13  ;;  %v9796_v13 = vld [vmem:[#allocation11 + $0xd18] sm:$0xf0]  ;;  %v8883_v63 = vld [vmem:[#allocation11 + $0xc58] sm:$0xf] }
 0x33c   :  { %5961 = vmatpush.bf16.msra.mxu1 %v7540_v43  ;;  %v5755_v47 = vpop.f32.mrf.mxu1  ;;  %v5718_v43 = vpop.f32.mrf.mxu0 }
 0x33d   :  { %v10397_v35 = vadd.f32 %v5755_v47, %v5743_v8  ;;  %v8771_v8 = vld [vmem:[#allocation11 + $0xb78] sm:$0xf]  ;;  %v9572_v47 = vld [vmem:[#allocation11 + $0x618] sm:$0xf0] }
 0x33e   :  { %5998 = vmatpush.bf16.msrb.mxu2 %v8268_v54  ;;  %5932 = vmatpush.bf16.msrb.mxu3 %v8964_v4  ;;  %v9771_v54 = vld [vmem:[#allocation11 + $0xc54] sm:$0xf]  ;;  %v9586_v4 = vld [vmem:[#allocation11 + $0x688] sm:$0xf0]  ;;  %v8772_v10 = vor.u32 %v9747_v9, %v8771_v8  ;;  %v9740_v43 = vld [vmem:[#allocation11 + $0xb58] sm:$0xf0]  ;;  %v8072_v20 = vor.u32 %v9572_v47, %v8071_v27 }
 0x33f   :  { %5962 = vmatmul.bf16.vlgmr.msra.gmra.mxu1 %v10248_v37  ;;  %v8212_v37 = vor.u32 %v9607_v59, %v8211_v51  ;;  %5971 = vmatpush.bf16.msra.mxu0 %v7848_v18  ;;  %v8184_v51 = vor.u32 %v9600_v15, %v8183_v57  ;;  %v8464_v59 = vor.u32 %v9670_v33, %v8463_v48  ;;  %v8799_v18 = vld [vmem:[#allocation11 + $0xbb0] sm:$0xf]  ;;  %v9726_v15 = vld [vmem:[#allocation11 + $0xae8] sm:$0xf0]  ;;  %v8659_v48 = vld [vmem:[#allocation11 + $0xa98] sm:$0xf] }
 0x340   :  { %6006 = vmatpush.bf16.msrb.mxu1 %v8632_v2  ;;  %v7791_v2 = vld [vmem:[#allocation11 + $0x3d0] sm:$0xf]  ;;  %v9719_v33 = vld [vmem:[#allocation11 + $0xab0] sm:$0xf0]  ;;  %v3004_v9 = vperm.slane %v10392_v44, 5 }
 0x341   :  { %v7792_v5 = vor.u32 %v9502_v29, %v7791_v2  ;;  %v8043_v2 = vld [vmem:[#allocation11 + $0x5c8] sm:$0xf]  ;;  %v9565_v29 = vld [vmem:[#allocation11 + $0x5e0] sm:$0xf0]  ;;  %v8687_v57 = vld [vmem:[#allocation11 + $0xad0] sm:$0xf] }
 0x342   :  { %5999 = vmatpush.bf16.msrb.mxu2 %v8240_v49  ;;  %5933 = vmatpush.bf16.msrb.mxu3 %v8936_v24  ;;  %v8880_v49 = vor.u32 %v9771_v54, %v8877_v14  ;;  %v8743_v24 = vld [vmem:[#allocation11 + $0xb40] sm:$0xf]  ;;  %v9789_v27 = vld [vmem:[#allocation11 + $0xce0] sm:$0xf0] }
 0x343   :  { %5972 = vmatpush.bf16.msra.mxu0 %v7820_v21  ;;  %v5704_v21 = vadd.f32 %v10384_v39, %v10400_v40  ;;  %v8015_v39 = vld [vmem:[#allocation11 + $0x590] sm:$0xf]  ;;  %v9558_v40 = vld [vmem:[#allocation11 + $0x5a8] sm:$0xf0] }
 0x344   :  { %6007 = vmatpush.bf16.msrb.mxu1 %v8604_v28  ;;  %v8855_v28 = vld [vmem:[#allocation11 + $0xc20] sm:$0xf] }
 0x345   :  { %v8856_v52 = vor.u32 %v9768_v26, %v8855_v28  ;;  %v8016_v28 = vor.u32 %v9558_v40, %v8015_v39  ;;  %v9551_v26 = vld [vmem:[#allocation11 + $0x570] sm:$0xf0] }
 0x346   :  { %6000 = vmatpush.bf16.msrb.mxu2 %v8212_v37  ;;  %5934 = vmatpush.bf16.msrb.mxu3 %v8908_v32  ;;  %v8127_v37 = vld [vmem:[#allocation11 + $0x670] sm:$0xf] }
 0x347   :  { %5973 = vmatpush.bf16.msra.mxu0 %v7792_v5  ;;  %v8128_v30 = vor.u32 %v9586_v4, %v8127_v37  ;;  %v8044_v5 = vor.u32 %v9565_v29, %v8043_v2 }
 0x348   :  { %6008 = vmatpush.bf16.msrb.mxu1 %v8576_v34  ;;  %v9761_v34 = vld [vmem:[#allocation11 + $0xc00] sm:$0xf0] }
 0x349   :  { %6001 = vmatmul.bf16.vlgmr.msrb.gmra.mxu2 %v10253_v50  ;;  %v5757_v50 = vpop.f32.mrf.mxu1  ;;  %v8828_v53 = vor.u32 %v9761_v34, %v8827_v61  ;;  %v9051_v61 = vld [vmem:[#allocation11 + $0xda8] sm:$0xf]  ;;  %v9817_v34 = vld [vmem:[#allocation11 + $0xdc0] sm:$0xf0] }
 0x34a   :  { %5935 = vmatpush.bf16.msrb.mxu3 %v8880_v49  ;;  %v9079_v50 = vld [vmem:[#allocation11 + $0xde0] sm:$0xf]  ;;  %v9824_v49 = vld [vmem:[#allocation11 + $0xdf8] sm:$0xf0] }
 0x34b   :  { %5974 = vmatpush.bf16.msra.mxu0 %v7764_v56  ;;  %v9080_v60 = vor.u32 %v9824_v49, %v9079_v50  ;;  %v3005_v49 = vperm.slane %v10392_v44, 6 }
 0x34c   :  { %6009 = vmatpush.bf16.msrb.mxu1 %v8548_v0  ;;  %v10405_v16 = vpop.f32.mrf.mxu2  ;;  %v8800_v0 = vor.u32 %v9754_v11, %v8799_v18  ;;  %v8995_v18 = vld [vmem:[#allocation11 + $0xd38] sm:$0xf]  ;;  %v9803_v11 = vld [vmem:[#allocation11 + $0xd50] sm:$0xf0] }
 0x34d   :  { %5936 = vmatmul.bf16.vlgmr.msrb.gmra.mxu3 %v10282_v42 }
 0x34e   :  { %5980 = vmatpush.bf16.msra.mxu3 %v8184_v51  ;;  %5975 = vmatmul.bf16.vlgmr.msra.gmra.mxu0 %v10237_v12  ;;  %v10408_v12 = vpop.f32.mrf.mxu0  ;;  %v5729_v32 = vpop.f32.mrf.mxu3  ;;  %v7988_v51 = vor.u32 %v9551_v26, %v7987_v41 }
 0x34f   :  { %6019 = vmatpush.bf16.msrb.mxu0 %v8856_v52 }
 0x350   :  { %6010 = vmatpush.bf16.msrb.mxu1 %v8520_v23  ;;  %v8744_v23 = vor.u32 %v9740_v43, %v8743_v24 }
 0x352   :  { %5981 = vmatpush.bf16.msra.mxu3 %v8156_v25  ;;  %v9052_v25 = vor.u32 %v9817_v34, %v9051_v61 }
 0x353   :  { %6020 = vmatpush.bf16.msrb.mxu0 %v8828_v53  ;;  %v9023_v53 = vld [vmem:[#allocation11 + $0xd70] sm:$0xf] }
 0x354   :  { %6011 = vmatpush.bf16.msrb.mxu1 %v8492_v45  ;;  %v5796_v55 = vpop.f32.mrf.mxu2 }
 0x355   :  { %v8911_v55 = vld [vmem:[#allocation11 + $0xc90] sm:$0xf] }
 0x356   :  { %5982 = vmatpush.bf16.msra.mxu3 %v8128_v30  ;;  %v5770_v45 = vpop.f32.mrf.mxu0  ;;  %v5731_v56 = vpop.f32.mrf.mxu3  ;;  %v8996_v30 = vor.u32 %v9803_v11, %v8995_v18 }
 0x357   :  { %6021 = vmatpush.bf16.msrb.mxu0 %v8800_v0  ;;  %v8967_v0 = vld [vmem:[#allocation11 + $0xd00] sm:$0xf] }
 0x358   :  { %6012 = vmatpush.bf16.msrb.mxu1 %v8464_v59  ;;  %v8660_v59 = vor.u32 %v9719_v33, %v8659_v48 }
 0x35a   :  { %5983 = vmatpush.bf16.msra.mxu3 %v8100_v17  ;;  %v8968_v17 = vor.u32 %v9796_v13, %v8967_v0 }
 0x35b   :  { %6022 = vmatpush.bf16.msrb.mxu0 %v8772_v10  ;;  %v8939_v10 = vld [vmem:[#allocation11 + $0xcc8] sm:$0xf] }
 0x35c   :  { %6013 = vmatpush.bf16.msrb.mxu1 %v8436_v6  ;;  %v10413_v14 = vpop.f32.mrf.mxu1  ;;  %v9810_v6 = vld [vmem:[#allocation11 + $0xd88] sm:$0xf0]  ;;  %v8940_v24 = vor.u32 %v9789_v27, %v8939_v10 }
 0x35d   :  { %v9024_v4 = vor.u32 %v9810_v6, %v9023_v53 }
 0x35e   :  { %5984 = vmatpush.bf16.msra.mxu3 %v8072_v20  ;;  %v9782_v20 = vld [vmem:[#allocation11 + $0xca8] sm:$0xf0] }
 0x35f   :  { %6014 = vmatmul.bf16.vlgmr.msrb.gmra.mxu1 %v10261_v36  ;;  %v5717_v36 = vadd.f32 %v10390_v58, %v5704_v21  ;;  %6023 = vmatpush.bf16.msrb.mxu0 %v8744_v23  ;;  %v8688_v58 = vor.u32 %v9726_v15, %v8687_v57 }
 0x361   :  { %v5730_v54 = vadd.f32 %v5729_v32, %v5717_v36  ;;  %v8912_v36 = vor.u32 %v9782_v20, %v8911_v55 }
 0x362   :  { %5985 = vmatpush.bf16.msra.mxu3 %v8044_v5 }
 0x363   :  { %v6048_v38 = vmul.f32 0.5, %v5730_v54  ;;  %6024 = vmatpush.bf16.msrb.mxu0 %v8716_v22  ;;  %v8884_v54 = vor.u32 %v9775_v31, %v8883_v63 }
 0x364   :  { %v5809_v52 = vpop.f32.mrf.mxu1 }
 0x365   :  { %9845 = vtanh.f32 %v6048_v38 }
 0x366   :  { %5986 = vmatpush.bf16.msra.mxu3 %v8016_v28 }
 0x367   :  { %6025 = vmatpush.bf16.msrb.mxu0 %v8688_v58 }
 0x36a   :  { %5987 = vmatpush.bf16.msra.mxu3 %v7988_v51  ;;  %v5820_v7 = vpop.f32.mrf.mxu0 }
 0x36b   :  { %v9846_v1 = vpop.eup %9845  ;;  %6026 = vmatpush.bf16.msrb.mxu0 %v8660_v59 }
 0x36c   :  { %v6062_v62 = vmul.f32 0.5, %v9846_v1  ;;  %v5846_v37 = vpop.f32.mrf.mxu2 }
 0x36d   :  { %5988 = vmatmul.bf16.vlgmr.msra.gmra.mxu3 %v10243_v19  ;;  %v5769_v19 = vadd.f32 %v10408_v12, %v10397_v35 }
 0x36e   :  { %v6069_v3 = vadd.f32 0.5, %v6062_v62  ;;  %6032 = vmatpush.bf16.msrb.mxu3 %v9080_v60  ;;  %6027 = vmatmul.bf16.vlgmr.msrb.gmra.mxu0 %v10272_v46  ;;  %v5847_v46 = vadd.f32 %v5846_v37, %v3004_v9  ;;  %v5781_v47 = vpop.f32.mrf.mxu3 }
 0x36f   :  { %v5782_v43 = vadd.f32 %v5781_v47, %v5769_v19 }
 0x370   :  { %6076 = vst [vmem:[#allocation14 + $0x18] sm:$0xff] %v6069_v3 }
 0x371   :  { %v5795_v29 = vadd.f32 %v10405_v16, %v5782_v43 }
 0x372   :  { %6033 = vmatpush.bf16.msrb.mxu3 %v9052_v25  ;;  %v5822_v2 = vpop.f32.mrf.mxu0 }
 0x373   :  { %v5808_v22 = vadd.f32 %v10413_v14, %v5795_v29 }
 0x374   :  { %v5848_v8 = vpop.f32.mrf.mxu2 }
 0x375   :  { %v5821_v40 = vadd.f32 %v5820_v7, %v5808_v22 }
 0x376   :  { %6034 = vmatpush.bf16.msrb.mxu3 %v9024_v4  ;;  %v5783_v32 = vpop.f32.mrf.mxu3 }
 0x37a   :  { %6035 = vmatpush.bf16.msrb.mxu3 %v8996_v30 }
 0x37c   :  { %v5859_v21 = vpop.f32.mrf.mxu1 }
 0x37d   :  { %v5860_v23 = vadd.f32 %v5859_v21, %v5847_v46 }
 0x37e   :  { %6036 = vmatpush.bf16.msrb.mxu3 %v8968_v17 }
 0x382   :  { %6037 = vmatpush.bf16.msrb.mxu3 %v8940_v24 }
 0x384   :  { %v5861_v35 = vpop.f32.mrf.mxu1 }
 0x386   :  { %6038 = vmatpush.bf16.msrb.mxu3 %v8912_v36 }
 0x38a   :  { %6039 = vmatpush.bf16.msrb.mxu3 %v8884_v54  ;;  %v5872_v5 = vpop.f32.mrf.mxu0 }
 0x38b   :  { %v5873_v14 = vadd.f32 %v5872_v5, %v5860_v23 }
 0x38c   :  { %v5898_v12 = vpop.f32.mrf.mxu2 }
 0x38d   :  { %6040 = vmatmul.bf16.vlgmr.msrb.gmra.mxu3 %v10282_v42 }
 0x38e   :  { %v5833_v38 = vpop.f32.mrf.mxu3 }
 0x38f   :  { %v5834_v45 = vadd.f32 %v5833_v38, %v5821_v40 }
 0x391   :  { %v6049_v57 = vmul.f32 0.5, %v5834_v45 }
 0x392   :  { %v5874_v15 = vpop.f32.mrf.mxu0 }
 0x393   :  { %9847 = vtanh.f32 %v6049_v57 }
 0x394   :  { %v5900_v39 = vpop.f32.mrf.mxu2 }
 0x396   :  { %v5835_v28 = vpop.f32.mrf.mxu3 }
 0x399   :  { %v9848_v41 = vpop.eup %9847 }
 0x39a   :  { %v6063_v26 = vmul.f32 0.5, %v9848_v41 }
 0x39c   :  { %v5911_v16 = vpop.f32.mrf.mxu1  ;;  %v6070_v48 = vadd.f32 0.5, %v6063_v26 }
 0x39e   :  { %6077 = vst [vmem:[#allocation14 + $0x20] sm:$0xff] %v6070_v48 }
 0x3a4   :  { %v5913_v58 = vpop.f32.mrf.mxu1 }
 0x3ac   :  { %v5950_v33 = vpop.f32.mrf.mxu2 }
 0x3ad   :  { %v5924_v42 = vpop.f32.mrf.mxu0  ;;  %v5951_v56 = vadd.f32 %v5950_v33, %v3005_v49 }
 0x3b0   :  { %v5885_v51 = vpop.f32.mrf.mxu3 }
 0x3b1   :  { %v5886_v52 = vadd.f32 %v5885_v51, %v5873_v14 }
 0x3b3   :  { %v5899_v61 = vadd.f32 %v5898_v12, %v5886_v52 }
 0x3b4   :  { %v5952_v50 = vpop.f32.mrf.mxu2 }
 0x3b5   :  { %v5926_v1 = vpop.f32.mrf.mxu0  ;;  %v5912_v53 = vadd.f32 %v5911_v16, %v5899_v61 }
 0x3b7   :  { %v5925_v37 = vadd.f32 %v5924_v42, %v5912_v53 }
 0x3b8   :  { %v5887_v34 = vpop.f32.mrf.mxu3 }
 0x3bc   :  { %v5963_v59 = vpop.f32.mrf.mxu1 }
 0x3bd   :  { %v5964_v60 = vadd.f32 %v5963_v59, %v5951_v56 }
 0x3c4   :  { %v5965_v62 = vpop.f32.mrf.mxu1 }
 0x3cb   :  { %v5976_v25 = vpop.f32.mrf.mxu0 }
 0x3cc   :  { %v6002_v3 = vpop.f32.mrf.mxu2  ;;  %v5977_v10 = vadd.f32 %v5976_v25, %v5964_v60 }
 0x3d0   :  { %v5937_v4 = vpop.f32.mrf.mxu3 }
 0x3d1   :  { %v5938_v11 = vadd.f32 %v5937_v4, %v5925_v37 }
 0x3d3   :  { %v6050_v30 = vmul.f32 0.5, %v5938_v11  ;;  %v5978_v44 = vpop.f32.mrf.mxu0 }
 0x3d4   :  { %v6004_v6 = vpop.f32.mrf.mxu2 }
 0x3d5   :  { %9849 = vtanh.f32 %v6050_v30 }
 0x3d8   :  { %v5939_v0 = vpop.f32.mrf.mxu3 }
 0x3db   :  { %v9850_v7 = vpop.eup %9849 }
 0x3dc   :  { %v6015_v18 = vpop.f32.mrf.mxu1  ;;  %v6064_v8 = vmul.f32 0.5, %v9850_v7 }
 0x3de   :  { %v6071_v9 = vadd.f32 0.5, %v6064_v8 }
 0x3e0   :  { %6078 = vst [vmem:[#allocation14 + $0x28] sm:$0xff] %v6071_v9 }
 0x3e4   :  { %v6017_v13 = vpop.f32.mrf.mxu1 }
 0x3eb   :  { %v6028_v17 = vpop.f32.mrf.mxu0 }
 0x3f0   :  { %v5989_v27 = vpop.f32.mrf.mxu3 }
 0x3f1   :  { %v5990_v19 = vadd.f32 %v5989_v27, %v5977_v10 }
 0x3f3   :  { %v6003_v46 = vadd.f32 %v6002_v3, %v5990_v19  ;;  %v6030_v47 = vpop.f32.mrf.mxu0 }
 0x3f5   :  { %v6016_v43 = vadd.f32 %v6015_v18, %v6003_v46 }
 0x3f7   :  { %v6029_v21 = vadd.f32 %v6028_v17, %v6016_v43 }
 0x3f8   :  { %v5991_v24 = vpop.f32.mrf.mxu3 }
 0x410   :  { %v6041_v55 = vpop.f32.mrf.mxu3 }
 0x411   :  { %v6042_v20 = vadd.f32 %v6041_v55, %v6029_v21 }
 0x413   :  { %v6051_v23 = vmul.f32 0.5, %v6042_v20 }
 0x415   :  { %9851 = vtanh.f32 %v6051_v23 }
 0x418   :  { %v6043_v2 = vpop.f32.mrf.mxu3 }
 0x41b   :  { %v9852_v29 = vpop.eup %9851 }
 0x41c   :  { %v6065_v36 = vmul.f32 0.5, %v9852_v29 }
 0x41e   :  { %v6072_v63 = vadd.f32 0.5, %v6065_v36 }
 0x420   :  { %6080 = vst.msk [vmem:[#allocation14 + $0x30] sm:$0xff] %vm6079_vm1, %v6072_v63 }
 0x421   :  { %6091 = dma.vmem_to_hbm [thread:$0]  %s6087_s6, 896, %s6089_s15, [#allocation4]  }
 0x422   :  { %10056 = dma.done.wait [#allocation4], 896  }
 0x423   :  { %10057 = vsyncadd [#allocation4], 4294966400 }
 0x424   :  { %6096 = vsyncpa [#allocation3], 1 }
 0x425   :  { %6097 = vsyncpa [#allocation6], 1 }
 0x426   :  { %6098 = vsyncpa [#allocation9], 1 }
 0x427   :  { %6099 = vsyncpa [#allocation12], 1 }
 0x428   :  { %6100 = vsyncpa [#allocation4], 1 }

</bundles_post_ra>
